<compile_context>
chip_gen: v7x
topology: tpu7x:2x2x1
jax: 0.10.0
libtpu: 0.0.40
codegen_flags: <defaults>
</compile_context>

<pallas_src>
import math

import numpy as np
import jax
import jax.numpy as jnp
from jax.experimental import pallas as pl
from jax.experimental.pallas import tpu as pltpu

# ----------------------------- model hyper-params -----------------------------
INPUT_DIM = 16          # vocab size
OUTPUT_DIM = 16
DIM = 32                # emb_dim
DEPTH = 2
N_BLOCKS = 2
N_LAYERS = N_BLOCKS * DEPTH
MAX_SEQ_LEN = 16
NUM_TIMESTEPS = 1000
RESCALE_STEPS = 4000.0
HEADS = 4
DH = DIM // HEADS       # dim_head = 8
LOCAL_WINDOW = 8
NW = MAX_SEQ_LEN // LOCAL_WINDOW  # 2
LANES = 128


# ------------------------- weight-slab layout (static) -------------------------
def _layout_entries():
  e = [
      ("t_freqs", (1, DIM)),
      ("t_phase", (1, DIM)),
      ("head_mask", (DIM, DIM)),
      ("pos", (MAX_SEQ_LEN, DIM)),
      ("emb", (INPUT_DIM, DIM)),
      ("mlp_w1", (DIM, 4 * DIM)),
      ("mlp_b1", (1, 4 * DIM)),
      ("mlp_w2", (4 * DIM, N_LAYERS * DIM)),
      ("mlp_b2", (1, N_LAYERS * DIM)),
      ("norm_g", (1, DIM)),
      ("norm_b", (1, DIM)),
      ("out_w", (DIM, LANES)),     # zero-padded to 128 lanes (lane-dense store)
      ("out_b", (1, LANES)),
  ]
  for l in range(N_LAYERS):
    e += [
        (f"ln1_g{l}", (1, DIM)), (f"ln1_b{l}", (1, DIM)),
        (f"wqkv{l}", (DIM, 3 * DIM)),
        (f"wo{l}", (DIM, DIM)), (f"bo{l}", (1, DIM)),
        (f"ln2_g{l}", (1, DIM)), (f"ln2_b{l}", (1, DIM)),
        (f"ff_w1{l}", (DIM, 4 * DIM)), (f"ff_b1{l}", (1, 4 * DIM)),
        (f"ff_w2{l}", (4 * DIM, DIM)), (f"ff_b2{l}", (1, DIM)),
    ]
  return e


def _build_layout():
  layout, r = {}, 0
  for name, (rr, cc) in _layout_entries():
    assert cc <= LANES
    layout[name] = (r, rr, cc)
    r += rr + ((-rr) % 8)          # 8-row (sublane) alignment per entry
  return layout, r


_LAYOUT, _SLAB_ROWS = _build_layout()


# ------------------------------ fused Pallas kernel ----------------------------
def _fused_forward_kernel(t_sref, tok_ref, w_ref, o_ref):
  """Whole forward for one batch element; all weights live in one VMEM slab."""
  f32 = jnp.float32
  D = DIM
  S = tok_ref.shape[1]
  C = INPUT_DIM
  b = pl.program_id(0)

  def W(name):                                   # static slab slice -> load
    r0, rr, cc = _LAYOUT[name]
    return w_ref[r0:r0 + rr, 0:cc]

  def layernorm(x, g, bb):
    mean = jnp.mean(x, axis=-1, keepdims=True)
    xc = x - mean
    var = jnp.mean(xc * xc, axis=-1, keepdims=True)
    return xc * jax.lax.rsqrt(var + 1e-5) * g + bb

  def gelu(y):  # exact (erf) GELU -- matches torch nn.GELU default
    return 0.5 * y * (1.0 + jax.lax.erf(y * 0.7071067811865476))

  def softplus(y):  # torch Softplus(beta=1, threshold=20)
    return jnp.where(y > 20.0, y, jnp.log1p(jnp.exp(jnp.minimum(y, 20.0))))

  head_mask = W("head_mask")                     # (D, D) block-diagonal ones

  # ---- SinusoidalPosEmb fused in-kernel: emb = sin(t' * freqs + phase) ----
  tt = t_sref[b].astype(f32) * (RESCALE_STEPS / float(NUM_TIMESTEPS))
  temb = jnp.sin(tt * W("t_freqs") + W("t_phase"))                    # (1, D)

  # ---- time MLP: Linear -> Softplus -> Linear (columns pre-permuted layer-major)
  h1 = softplus(jnp.dot(temb, W("mlp_w1"), preferred_element_type=f32)
                + W("mlp_b1"))
  tmlp = jnp.dot(h1, W("mlp_w2"), preferred_element_type=f32) + W("mlp_b2")

  # ---- token one-hot embedding ((S,C)@(C,D)) + summed axial positional emb ----
  tok_col = tok_ref[0]                                                # (S, 1) i32
  cls = jax.lax.broadcasted_iota(jnp.int32, (S, C), 1)
  onehot = (cls == tok_col).astype(f32)                               # (S, C)
  x_axial = jnp.dot(onehot, W("emb"), preferred_element_type=f32) + W("pos")

  h = jnp.zeros((S, D), f32)
  for i in range(N_BLOCKS):
    h = h + x_axial            # reference re-injects token+pos embedding per block
    for j in range(DEPTH):
      l = i * DEPTH + j
      x = h + tmlp[:, l * D:(l + 1) * D]

      # --- PreNorm global linear self-attention (block-diagonal head form) ---
      xn = layernorm(x, W(f"ln1_g{l}"), W(f"ln1_b{l}"))
      qkv = jnp.dot(xn, W(f"wqkv{l}"), preferred_element_type=f32)    # scale folded
      q = qkv[:, 0:D]
      k = qkv[:, D:2 * D]
      v = qkv[:, 2 * D:3 * D]
      # per-head softmax of q over feature lanes; one full-row max (cancels per head)
      eq = jnp.exp(q - jnp.max(q, axis=-1, keepdims=True))
      qden = jnp.dot(eq, head_mask, preferred_element_type=f32)       # per-head sums
      q_soft = eq * pl.reciprocal(qden, approx=True)
      # softmax of k over the sequence axis (column-wise)
      ek = jnp.exp(k - jnp.max(k, axis=0, keepdims=True))
      k_soft = ek * pl.reciprocal(jnp.sum(ek, axis=0, keepdims=True), approx=True)
      # ctx = k^T v masked to per-head DHxDH blocks; attn = q @ ctx
      ctx = jax.lax.dot_general(k_soft, v, (((0,), (0,)), ((), ())),
                                preferred_element_type=f32) * head_mask
      attn = jnp.dot(q_soft, ctx, preferred_element_type=f32)         # (S, D)
      x = x + jnp.dot(attn, W(f"wo{l}"), preferred_element_type=f32) + W(f"bo{l}")

      # --- PreNorm feed-forward (GELU, mult=4) ---
      xn2 = layernorm(x, W(f"ln2_g{l}"), W(f"ln2_b{l}"))
      f1 = gelu(jnp.dot(xn2, W(f"ff_w1{l}"), preferred_element_type=f32)
                + W(f"ff_b1{l}"))
      x = x + jnp.dot(f1, W(f"ff_w2{l}"), preferred_element_type=f32) + W(f"ff_b2{l}")

      h = x

  hn = layernorm(h, W("norm_g"), W("norm_b"))
  out = jnp.dot(hn, W("out_w"), preferred_element_type=f32) + W("out_b")  # (S,128)
  o_ref[0] = out.astype(o_ref.dtype)


# --------------------------------- parameters ---------------------------------
def init_params(key):
  keys = jax.random.split(key, 64)
  it = iter(keys)
  nxt = lambda: next(it)
  dense = lambda k, shape, s=0.02: jax.random.normal(k, shape, jnp.float32) * s

  params = {
      "emb": dense(nxt(), (INPUT_DIM, DIM), 1.0),
      "ax0": dense(nxt(), (NW, DIM), 1.0),
      "ax1": dense(nxt(), (LOCAL_WINDOW, DIM), 1.0),
      "mlp_w1": dense(nxt(), (DIM, DIM * 4)),
      "mlp_b1": jnp.zeros((DIM * 4,), jnp.float32),
      "mlp_w2": dense(nxt(), (DIM * 4, DIM * N_LAYERS)),
      "mlp_b2": jnp.zeros((DIM * N_LAYERS,), jnp.float32),
      "norm_g": jnp.ones((1, DIM), jnp.float32),
      "norm_b": jnp.zeros((1, DIM), jnp.float32),
      "out_w": dense(nxt(), (DIM, OUTPUT_DIM)),
      "out_b": jnp.zeros((OUTPUT_DIM,), jnp.float32),
  }
  blocks = []
  for _ in range(N_BLOCKS):
    block = []
    for _ in range(DEPTH):
      block.append({
          "ln1_g": jnp.ones((1, DIM), jnp.float32),
          "ln1_b": jnp.zeros((1, DIM), jnp.float32),
          "wq": dense(nxt(), (DIM, HEADS * DH)),
          "wk": dense(nxt(), (DIM, HEADS * DH)),
          "wv": dense(nxt(), (DIM, HEADS * DH)),
          "wo": dense(nxt(), (HEADS * DH, DIM)),
          "bo": jnp.zeros((DIM,), jnp.float32),
          "ln2_g": jnp.ones((1, DIM), jnp.float32),
          "ln2_b": jnp.zeros((1, DIM), jnp.float32),
          "ff_w1": dense(nxt(), (DIM, DIM * 4)),
          "ff_b1": jnp.zeros((DIM * 4,), jnp.float32),
          "ff_w2": dense(nxt(), (DIM * 4, DIM)),
          "ff_b2": jnp.zeros((DIM,), jnp.float32),
      })
    blocks.append(block)
  params["blocks"] = blocks
  return params


def pack_params(p):
  """Pack all (pre-transformed) weights into a single (R, 128) f32 slab."""
  L = N_LAYERS
  half = DIM // 2
  scale = float(DH) ** -0.25

  def npy(a):
    return np.asarray(jax.device_get(a), np.float32)

  # layer-major permutation of the time-MLP output columns:
  # torch flat column f = d*L + l  -> packed column f' = l*DIM + d
  perm = (np.arange(L)[:, None] + L * np.arange(DIM)[None, :]).reshape(-1)

  # summed axial positional embedding flattened to (S, DIM)
  pos = (npy(p["ax0"])[:, None, :] + npy(p["ax1"])[None, :, :]).reshape(
      NW * LOCAL_WINDOW, DIM)[:MAX_SEQ_LEN]

  # sinusoidal time-embedding constants (cos(x) = sin(x + pi/2))
  base = np.exp(np.arange(half, dtype=np.float32)
                * -(math.log(10000.0) / (half - 1)))
  t_freqs = np.concatenate([base, base]).astype(np.float32).reshape(1, DIM)
  t_phase = np.concatenate([np.zeros(half), np.full(half, 0.5 * math.pi)]
                           ).astype(np.float32).reshape(1, DIM)

  # per-head block-diagonal mask (DH x DH blocks of ones)
  hid = np.arange(DIM) // DH
  head_mask = (hid[:, None] == hid[None, :]).astype(np.float32)

  layers = [p["blocks"][i][j] for i in range(N_BLOCKS) for j in range(DEPTH)]
  tensors = {
      "t_freqs": t_freqs,
      "t_phase": t_phase,
      "head_mask": head_mask,
      "pos": pos,
      "emb": npy(p["emb"]),
      "mlp_w1": npy(p["mlp_w1"]),
      "mlp_b1": npy(p["mlp_b1"]).reshape(1, -1),
      "mlp_w2": npy(p["mlp_w2"])[:, perm],
      "mlp_b2": npy(p["mlp_b2"])[perm].reshape(1, -1),
      "norm_g": npy(p["norm_g"]),
      "norm_b": npy(p["norm_b"]),
      # zero-pad output projection to 128 lanes for an unmasked (lane-dense) store
      "out_w": np.pad(npy(p["out_w"]), ((0, 0), (0, LANES - OUTPUT_DIM))),
      "out_b": np.pad(npy(p["out_b"]).reshape(1, -1),
                      ((0, 0), (0, LANES - OUTPUT_DIM))),
  }
  for l, blk in enumerate(layers):
    tensors[f"ln1_g{l}"] = npy(blk["ln1_g"])
    tensors[f"ln1_b{l}"] = npy(blk["ln1_b"])
    # concat q|k|v and fold the dim_head**-0.25 pre-softmax scale into wq / wk
    tensors[f"wqkv{l}"] = np.concatenate(
        [npy(blk["wq"]) * scale, npy(blk["wk"]) * scale, npy(blk["wv"])], axis=1)
    tensors[f"wo{l}"] = npy(blk["wo"])
    tensors[f"bo{l}"] = npy(blk["bo"]).reshape(1, -1)
    tensors[f"ln2_g{l}"] = npy(blk["ln2_g"])
    tensors[f"ln2_b{l}"] = npy(blk["ln2_b"])
    tensors[f"ff_w1{l}"] = npy(blk["ff_w1"])
    tensors[f"ff_b1{l}"] = npy(blk["ff_b1"]).reshape(1, -1)
    tensors[f"ff_w2{l}"] = npy(blk["ff_w2"])
    tensors[f"ff_b2{l}"] = npy(blk["ff_b2"]).reshape(1, -1)

  slab = np.zeros((_SLAB_ROWS, LANES), np.float32)
  for name, (r0, rr, cc) in _LAYOUT.items():
    a = tensors[name]
    assert a.shape == (rr, cc), (name, a.shape, (rr, cc))
    slab[r0:r0 + rr, 0:cc] = a
  return jnp.asarray(slab)


# --------------------------------- forward pass --------------------------------
@jax.jit
def forward(slab, x_tokens, t):
  B, S = x_tokens.shape
  tok = x_tokens.astype(jnp.int32)[:, :, None]            # (B, S, 1): tokens on sublanes

  out = pl.pallas_call(
      _fused_forward_kernel,
      out_shape=jax.ShapeDtypeStruct((B, S, LANES), jnp.float32),
      grid_spec=pltpu.PrefetchScalarGridSpec(
          num_scalar_prefetch=1,                           # t -> SMEM scalar prefetch
          grid=(B,),
          in_specs=[
              pl.BlockSpec((1, S, 1), lambda b, t_ref: (b, 0, 0)),       # tokens
              pl.BlockSpec((_SLAB_ROWS, LANES), lambda b, t_ref: (0, 0)),  # weight slab
          ],
          out_specs=pl.BlockSpec((1, S, LANES), lambda b, t_ref: (b, 0, 0)),
      ),
      compiler_params=pltpu.CompilerParams(
          dimension_semantics=("parallel",),               # v7x: one batch element per TC
          vmem_limit_bytes=16 * 1024 * 1024),              # footprint ~0.75 MiB
  )(t.astype(jnp.int32), tok, slab)
  return out[..., :OUTPUT_DIM]                             # lane-dense store, slice outside


# ------------------------------------ main -------------------------------------
if __name__ == "__main__":
  key = jax.random.PRNGKey(0)
  k_params, k_tok, k_t = jax.random.split(key, 3)

  params = init_params(k_params)
  slab = pack_params(params)
  x_tokens = jax.random.randint(k_tok, (2, MAX_SEQ_LEN), 0, INPUT_DIM, dtype=jnp.int32)
  t = jax.random.randint(k_t, (2,), 0, NUM_TIMESTEPS, dtype=jnp.int32)

  out = forward(slab, x_tokens, t)
  out = jax.block_until_ready(out)
  assert out.shape == (2, MAX_SEQ_LEN, OUTPUT_DIM)
  assert bool(jnp.all(jnp.isfinite(out)))
  print("KERNEL_OK")
</pallas_src>

<mosaic_0001>
module attributes {stable_mosaic.version = 11 : i64} {
  func.func @_fused_forward_kernel(%arg0: i32, %arg1: memref<2xi32, #tpu.memory_space<smem>>, %arg2: memref<1x16x1xi32, #tpu.memory_space<vmem>>, %arg3: memref<1432x128xf32, #tpu.memory_space<vmem>>, %arg4: memref<1x16x128xf32, #tpu.memory_space<vmem>>) attributes {dimension_semantics = [#tpu.dimension_semantics<parallel>], iteration_bounds = array<i64: 2>, scalar_prefetch = 1 : i64, scratch_operands = 0 : i64, tpu.core_type = #tpu.core_type<tc>, window_params = [{transform_indices = @transform_0, window_bounds = array<i64: 1, 16, 1>}, {pipeline_mode = #tpu.pipeline_mode<synchronous>, transform_indices = @transform_1, window_bounds = array<i64: 1432, 128>}, {transform_indices = @transform_2, window_bounds = array<i64: 1, 16, 128>}]} {
    %c16 = arith.constant 16 : index
    %c0 = arith.constant 0 : index
    %0 = vector.load %arg3[%c16, %c0] : memref<1432x128xf32, #tpu.memory_space<vmem>>, vector<32x32xf32>
    %1 = arith.index_cast %arg0 : i32 to index
    %2 = memref.load %arg1[%1] : memref<2xi32, #tpu.memory_space<smem>>
    %3 = arith.sitofp %2 : i32 to f32
    %cst = arith.constant 4.000000e+00 : f32
    %4 = arith.mulf %3, %cst : f32
    %c0_0 = arith.constant 0 : index
    %c0_1 = arith.constant 0 : index
    %5 = vector.load %arg3[%c0_0, %c0_1] : memref<1432x128xf32, #tpu.memory_space<vmem>>, vector<1x32xf32>
    %6 = vector.broadcast %4 : f32 to vector<1x32xf32>
    %7 = arith.mulf %6, %5 : vector<1x32xf32>
    %c8 = arith.constant 8 : index
    %c0_2 = arith.constant 0 : index
    %8 = vector.load %arg3[%c8, %c0_2] : memref<1432x128xf32, #tpu.memory_space<vmem>>, vector<1x32xf32>
    %9 = arith.addf %7, %8 : vector<1x32xf32>
    %10 = math.sin %9 : vector<1x32xf32>
    %c80 = arith.constant 80 : index
    %c0_3 = arith.constant 0 : index
    %11 = vector.load %arg3[%c80, %c0_3] : memref<1432x128xf32, #tpu.memory_space<vmem>>, vector<32x128xf32>
    %cst_4 = arith.constant dense<0.000000e+00> : vector<1x128xf32>
    %12 = tpu.matmul %10, %11, %cst_4 {dimension_numbers = #tpu.dot_dimension_numbers<[1], [0], [0], [1], [0, 0, 1, 1], [], []>} : vector<1x32xf32>, vector<32x128xf32>, vector<1x128xf32> -> vector<1x128xf32>
    %c112 = arith.constant 112 : index
    %c0_5 = arith.constant 0 : index
    %13 = vector.load %arg3[%c112, %c0_5] : memref<1432x128xf32, #tpu.memory_space<vmem>>, vector<1x128xf32>
    %14 = arith.addf %12, %13 : vector<1x128xf32>
    %cst_6 = arith.constant 2.000000e+01 : f32
    %15 = vector.broadcast %cst_6 : f32 to vector<1x128xf32>
    %16 = arith.cmpf ogt, %14, %15 : vector<1x128xf32>
    %cst_7 = arith.constant 2.000000e+01 : f32
    %17 = vector.broadcast %cst_7 : f32 to vector<1x128xf32>
    %18 = arith.minimumf %14, %17 : vector<1x128xf32>
    %19 = math.exp %18 : vector<1x128xf32>
    %20 = math.log1p %19 : vector<1x128xf32>
    %21 = arith.select %16, %14, %20 : vector<1x128xi1>, vector<1x128xf32>
    %c120 = arith.constant 120 : index
    %c0_8 = arith.constant 0 : index
    %22 = vector.load %arg3[%c120, %c0_8] : memref<1432x128xf32, #tpu.memory_space<vmem>>, vector<128x128xf32>
    %cst_9 = arith.constant dense<0.000000e+00> : vector<1x128xf32>
    %23 = tpu.matmul %21, %22, %cst_9 {dimension_numbers = #tpu.dot_dimension_numbers<[1], [0], [0], [1], [0, 0, 1, 1], [], []>} : vector<1x128xf32>, vector<128x128xf32>, vector<1x128xf32> -> vector<1x128xf32>
    %c248 = arith.constant 248 : index
    %c0_10 = arith.constant 0 : index
    %24 = vector.load %arg3[%c248, %c0_10] : memref<1432x128xf32, #tpu.memory_space<vmem>>, vector<1x128xf32>
    %25 = arith.addf %23, %24 : vector<1x128xf32>
    %c0_11 = arith.constant 0 : index
    %c0_12 = arith.constant 0 : index
    %c0_13 = arith.constant 0 : index
    %26 = vector.load %arg2[%c0_11, %c0_12, %c0_13] : memref<1x16x1xi32, #tpu.memory_space<vmem>>, vector<1x16x1xi32>
    %27 = vector.shape_cast %26 : vector<1x16x1xi32> to vector<16x1xi32>
    %28 = tpu.iota {dimensions = array<i32: 1>} : vector<16x16xi32>
    %29 = vector.broadcast %27 : vector<16x1xi32> to vector<16x16xi32>
    %30 = arith.cmpi eq, %28, %29 : vector<16x16xi32>
    %31 = arith.extui %30 : vector<16x16xi1> to vector<16x16xi32>
    %32 = arith.sitofp %31 : vector<16x16xi32> to vector<16x16xf32>
    %c64 = arith.constant 64 : index
    %c0_14 = arith.constant 0 : index
    %33 = vector.load %arg3[%c64, %c0_14] : memref<1432x128xf32, #tpu.memory_space<vmem>>, vector<16x32xf32>
    %cst_15 = arith.constant dense<0.000000e+00> : vector<16x32xf32>
    %34 = tpu.matmul %32, %33, %cst_15 {dimension_numbers = #tpu.dot_dimension_numbers<[1], [0], [0], [1], [0, 0, 1, 1], [], []>} : vector<16x16xf32>, vector<16x32xf32>, vector<16x32xf32> -> vector<16x32xf32>
    %c48 = arith.constant 48 : index
    %c0_16 = arith.constant 0 : index
    %35 = vector.load %arg3[%c48, %c0_16] : memref<1432x128xf32, #tpu.memory_space<vmem>>, vector<16x32xf32>
    %36 = arith.addf %34, %35 : vector<16x32xf32>
    %cst_17 = arith.constant 0.000000e+00 : f32
    %37 = vector.broadcast %cst_17 : f32 to vector<16x32xf32>
    %38 = arith.addf %37, %36 : vector<16x32xf32>
    %39 = vector.extract_strided_slice %25 {offsets = [0, 0], sizes = [1, 32], strides = [1, 1]} : vector<1x128xf32> to vector<1x32xf32>
    %40 = vector.broadcast %39 : vector<1x32xf32> to vector<16x32xf32>
    %41 = arith.addf %38, %40 : vector<16x32xf32>
    %c312 = arith.constant 312 : index
    %c0_18 = arith.constant 0 : index
    %42 = vector.load %arg3[%c312, %c0_18] : memref<1432x128xf32, #tpu.memory_space<vmem>>, vector<1x32xf32>
    %c320 = arith.constant 320 : index
    %c0_19 = arith.constant 0 : index
    %43 = vector.load %arg3[%c320, %c0_19] : memref<1432x128xf32, #tpu.memory_space<vmem>>, vector<1x32xf32>
    %cst_20 = arith.constant dense<0.000000e+00> : vector<16xf32>
    %44 = vector.multi_reduction <add>, %41, %cst_20 [1] : vector<16x32xf32> to vector<16xf32>
    %45 = vector.shape_cast %44 : vector<16xf32> to vector<16x1xf32>
    %cst_21 = arith.constant 3.200000e+01 : f32
    %46 = vector.broadcast %cst_21 : f32 to vector<16x1xf32>
    %47 = arith.divf %45, %46 : vector<16x1xf32>
    %48 = vector.broadcast %47 : vector<16x1xf32> to vector<16x32xf32>
    %49 = arith.subf %41, %48 : vector<16x32xf32>
    %50 = arith.mulf %49, %49 : vector<16x32xf32>
    %cst_22 = arith.constant dense<0.000000e+00> : vector<16xf32>
    %51 = vector.multi_reduction <add>, %50, %cst_22 [1] : vector<16x32xf32> to vector<16xf32>
    %52 = vector.shape_cast %51 : vector<16xf32> to vector<16x1xf32>
    %cst_23 = arith.constant 3.200000e+01 : f32
    %53 = vector.broadcast %cst_23 : f32 to vector<16x1xf32>
    %54 = arith.divf %52, %53 : vector<16x1xf32>
    %cst_24 = arith.constant 9.99999974E-6 : f32
    %55 = vector.broadcast %cst_24 : f32 to vector<16x1xf32>
    %56 = arith.addf %54, %55 : vector<16x1xf32>
    %57 = math.rsqrt %56 : vector<16x1xf32>
    %58 = vector.broadcast %57 : vector<16x1xf32> to vector<16x32xf32>
    %59 = arith.mulf %49, %58 : vector<16x32xf32>
    %60 = vector.broadcast %42 : vector<1x32xf32> to vector<16x32xf32>
    %61 = arith.mulf %59, %60 : vector<16x32xf32>
    %62 = vector.broadcast %43 : vector<1x32xf32> to vector<16x32xf32>
    %63 = arith.addf %61, %62 : vector<16x32xf32>
    %c328 = arith.constant 328 : index
    %c0_25 = arith.constant 0 : index
    %64 = vector.load %arg3[%c328, %c0_25] : memref<1432x128xf32, #tpu.memory_space<vmem>>, vector<32x96xf32>
    %cst_26 = arith.constant dense<0.000000e+00> : vector<16x96xf32>
    %65 = tpu.matmul %63, %64, %cst_26 {dimension_numbers = #tpu.dot_dimension_numbers<[1], [0], [0], [1], [0, 0, 1, 1], [], []>} : vector<16x32xf32>, vector<32x96xf32>, vector<16x96xf32> -> vector<16x96xf32>
    %66 = vector.extract_strided_slice %65 {offsets = [0, 0], sizes = [16, 32], strides = [1, 1]} : vector<16x96xf32> to vector<16x32xf32>
    %67 = vector.extract_strided_slice %65 {offsets = [0, 32], sizes = [16, 32], strides = [1, 1]} : vector<16x96xf32> to vector<16x32xf32>
    %68 = vector.extract_strided_slice %65 {offsets = [0, 64], sizes = [16, 32], strides = [1, 1]} : vector<16x96xf32> to vector<16x32xf32>
    %cst_27 = arith.constant dense<0xFF800000> : vector<16xf32>
    %69 = vector.multi_reduction <maximumf>, %66, %cst_27 [1] : vector<16x32xf32> to vector<16xf32>
    %70 = vector.shape_cast %69 : vector<16xf32> to vector<16x1xf32>
    %71 = vector.broadcast %70 : vector<16x1xf32> to vector<16x32xf32>
    %72 = arith.subf %66, %71 : vector<16x32xf32>
    %73 = math.exp %72 : vector<16x32xf32>
    %cst_28 = arith.constant dense<0.000000e+00> : vector<16x32xf32>
    %74 = tpu.matmul %73, %0, %cst_28 {dimension_numbers = #tpu.dot_dimension_numbers<[1], [0], [0], [1], [0, 0, 1, 1], [], []>} : vector<16x32xf32>, vector<32x32xf32>, vector<16x32xf32> -> vector<16x32xf32>
    %75 = tpu.reciprocal %74 {approx = true} : vector<16x32xf32> -> vector<16x32xf32>
    %76 = arith.mulf %73, %75 : vector<16x32xf32>
    %cst_29 = arith.constant dense<0xFF800000> : vector<32xf32>
    %77 = vector.multi_reduction <maximumf>, %67, %cst_29 [0] : vector<16x32xf32> to vector<32xf32>
    %78 = vector.shape_cast %77 : vector<32xf32> to vector<1x32xf32>
    %79 = vector.broadcast %78 : vector<1x32xf32> to vector<16x32xf32>
    %80 = arith.subf %67, %79 : vector<16x32xf32>
    %81 = math.exp %80 : vector<16x32xf32>
    %cst_30 = arith.constant dense<0.000000e+00> : vector<32xf32>
    %82 = vector.multi_reduction <add>, %81, %cst_30 [0] : vector<16x32xf32> to vector<32xf32>
    %83 = vector.shape_cast %82 : vector<32xf32> to vector<1x32xf32>
    %84 = tpu.reciprocal %83 {approx = true} : vector<1x32xf32> -> vector<1x32xf32>
    %85 = vector.broadcast %84 : vector<1x32xf32> to vector<16x32xf32>
    %86 = arith.mulf %81, %85 : vector<16x32xf32>
    %cst_31 = arith.constant dense<0.000000e+00> : vector<32x32xf32>
    %87 = tpu.matmul %86, %68, %cst_31 {dimension_numbers = #tpu.dot_dimension_numbers<[0], [0], [1], [1], [0, 1, 1, 1], [], []>} : vector<16x32xf32>, vector<16x32xf32>, vector<32x32xf32> -> vector<32x32xf32>
    %88 = arith.mulf %87, %0 : vector<32x32xf32>
    %cst_32 = arith.constant dense<0.000000e+00> : vector<16x32xf32>
    %89 = tpu.matmul %76, %88, %cst_32 {dimension_numbers = #tpu.dot_dimension_numbers<[1], [0], [0], [1], [0, 0, 1, 1], [], []>} : vector<16x32xf32>, vector<32x32xf32>, vector<16x32xf32> -> vector<16x32xf32>
    %c360 = arith.constant 360 : index
    %c0_33 = arith.constant 0 : index
    %90 = vector.load %arg3[%c360, %c0_33] : memref<1432x128xf32, #tpu.memory_space<vmem>>, vector<32x32xf32>
    %cst_34 = arith.constant dense<0.000000e+00> : vector<16x32xf32>
    %91 = tpu.matmul %89, %90, %cst_34 {dimension_numbers = #tpu.dot_dimension_numbers<[1], [0], [0], [1], [0, 0, 1, 1], [], []>} : vector<16x32xf32>, vector<32x32xf32>, vector<16x32xf32> -> vector<16x32xf32>
    %92 = arith.addf %41, %91 : vector<16x32xf32>
    %c392 = arith.constant 392 : index
    %c0_35 = arith.constant 0 : index
    %93 = vector.load %arg3[%c392, %c0_35] : memref<1432x128xf32, #tpu.memory_space<vmem>>, vector<1x32xf32>
    %94 = vector.broadcast %93 : vector<1x32xf32> to vector<16x32xf32>
    %95 = arith.addf %92, %94 : vector<16x32xf32>
    %c400 = arith.constant 400 : index
    %c0_36 = arith.constant 0 : index
    %96 = vector.load %arg3[%c400, %c0_36] : memref<1432x128xf32, #tpu.memory_space<vmem>>, vector<1x32xf32>
    %c408 = arith.constant 408 : index
    %c0_37 = arith.constant 0 : index
    %97 = vector.load %arg3[%c408, %c0_37] : memref<1432x128xf32, #tpu.memory_space<vmem>>, vector<1x32xf32>
    %cst_38 = arith.constant dense<0.000000e+00> : vector<16xf32>
    %98 = vector.multi_reduction <add>, %95, %cst_38 [1] : vector<16x32xf32> to vector<16xf32>
    %99 = vector.shape_cast %98 : vector<16xf32> to vector<16x1xf32>
    %cst_39 = arith.constant 3.200000e+01 : f32
    %100 = vector.broadcast %cst_39 : f32 to vector<16x1xf32>
    %101 = arith.divf %99, %100 : vector<16x1xf32>
    %102 = vector.broadcast %101 : vector<16x1xf32> to vector<16x32xf32>
    %103 = arith.subf %95, %102 : vector<16x32xf32>
    %104 = arith.mulf %103, %103 : vector<16x32xf32>
    %cst_40 = arith.constant dense<0.000000e+00> : vector<16xf32>
    %105 = vector.multi_reduction <add>, %104, %cst_40 [1] : vector<16x32xf32> to vector<16xf32>
    %106 = vector.shape_cast %105 : vector<16xf32> to vector<16x1xf32>
    %cst_41 = arith.constant 3.200000e+01 : f32
    %107 = vector.broadcast %cst_41 : f32 to vector<16x1xf32>
    %108 = arith.divf %106, %107 : vector<16x1xf32>
    %cst_42 = arith.constant 9.99999974E-6 : f32
    %109 = vector.broadcast %cst_42 : f32 to vector<16x1xf32>
    %110 = arith.addf %108, %109 : vector<16x1xf32>
    %111 = math.rsqrt %110 : vector<16x1xf32>
    %112 = vector.broadcast %111 : vector<16x1xf32> to vector<16x32xf32>
    %113 = arith.mulf %103, %112 : vector<16x32xf32>
    %114 = vector.broadcast %96 : vector<1x32xf32> to vector<16x32xf32>
    %115 = arith.mulf %113, %114 : vector<16x32xf32>
    %116 = vector.broadcast %97 : vector<1x32xf32> to vector<16x32xf32>
    %117 = arith.addf %115, %116 : vector<16x32xf32>
    %c416 = arith.constant 416 : index
    %c0_43 = arith.constant 0 : index
    %118 = vector.load %arg3[%c416, %c0_43] : memref<1432x128xf32, #tpu.memory_space<vmem>>, vector<32x128xf32>
    %cst_44 = arith.constant dense<0.000000e+00> : vector<16x128xf32>
    %119 = tpu.matmul %117, %118, %cst_44 {dimension_numbers = #tpu.dot_dimension_numbers<[1], [0], [0], [1], [0, 0, 1, 1], [], []>} : vector<16x32xf32>, vector<32x128xf32>, vector<16x128xf32> -> vector<16x128xf32>
    %c448 = arith.constant 448 : index
    %c0_45 = arith.constant 0 : index
    %120 = vector.load %arg3[%c448, %c0_45] : memref<1432x128xf32, #tpu.memory_space<vmem>>, vector<1x128xf32>
    %121 = vector.broadcast %120 : vector<1x128xf32> to vector<16x128xf32>
    %122 = arith.addf %119, %121 : vector<16x128xf32>
    %cst_46 = arith.constant 5.000000e-01 : f32
    %123 = vector.broadcast %cst_46 : f32 to vector<16x128xf32>
    %124 = arith.mulf %123, %122 : vector<16x128xf32>
    %cst_47 = arith.constant 0.707106769 : f32
    %125 = vector.broadcast %cst_47 : f32 to vector<16x128xf32>
    %126 = arith.mulf %122, %125 : vector<16x128xf32>
    %127 = math.erf %126 : vector<16x128xf32>
    %cst_48 = arith.constant 1.000000e+00 : f32
    %128 = vector.broadcast %cst_48 : f32 to vector<16x128xf32>
    %129 = arith.addf %128, %127 : vector<16x128xf32>
    %130 = arith.mulf %124, %129 : vector<16x128xf32>
    %c456 = arith.constant 456 : index
    %c0_49 = arith.constant 0 : index
    %131 = vector.load %arg3[%c456, %c0_49] : memref<1432x128xf32, #tpu.memory_space<vmem>>, vector<128x32xf32>
    %cst_50 = arith.constant dense<0.000000e+00> : vector<16x32xf32>
    %132 = tpu.matmul %130, %131, %cst_50 {dimension_numbers = #tpu.dot_dimension_numbers<[1], [0], [0], [1], [0, 0, 1, 1], [], []>} : vector<16x128xf32>, vector<128x32xf32>, vector<16x32xf32> -> vector<16x32xf32>
    %133 = arith.addf %95, %132 : vector<16x32xf32>
    %c584 = arith.constant 584 : index
    %c0_51 = arith.constant 0 : index
    %134 = vector.load %arg3[%c584, %c0_51] : memref<1432x128xf32, #tpu.memory_space<vmem>>, vector<1x32xf32>
    %135 = vector.broadcast %134 : vector<1x32xf32> to vector<16x32xf32>
    %136 = arith.addf %133, %135 : vector<16x32xf32>
    %137 = vector.extract_strided_slice %25 {offsets = [0, 32], sizes = [1, 32], strides = [1, 1]} : vector<1x128xf32> to vector<1x32xf32>
    %138 = vector.broadcast %137 : vector<1x32xf32> to vector<16x32xf32>
    %139 = arith.addf %136, %138 : vector<16x32xf32>
    %c592 = arith.constant 592 : index
    %c0_52 = arith.constant 0 : index
    %140 = vector.load %arg3[%c592, %c0_52] : memref<1432x128xf32, #tpu.memory_space<vmem>>, vector<1x32xf32>
    %c600 = arith.constant 600 : index
    %c0_53 = arith.constant 0 : index
    %141 = vector.load %arg3[%c600, %c0_53] : memref<1432x128xf32, #tpu.memory_space<vmem>>, vector<1x32xf32>
    %cst_54 = arith.constant dense<0.000000e+00> : vector<16xf32>
    %142 = vector.multi_reduction <add>, %139, %cst_54 [1] : vector<16x32xf32> to vector<16xf32>
    %143 = vector.shape_cast %142 : vector<16xf32> to vector<16x1xf32>
    %cst_55 = arith.constant 3.200000e+01 : f32
    %144 = vector.broadcast %cst_55 : f32 to vector<16x1xf32>
    %145 = arith.divf %143, %144 : vector<16x1xf32>
    %146 = vector.broadcast %145 : vector<16x1xf32> to vector<16x32xf32>
    %147 = arith.subf %139, %146 : vector<16x32xf32>
    %148 = arith.mulf %147, %147 : vector<16x32xf32>
    %cst_56 = arith.constant dense<0.000000e+00> : vector<16xf32>
    %149 = vector.multi_reduction <add>, %148, %cst_56 [1] : vector<16x32xf32> to vector<16xf32>
    %150 = vector.shape_cast %149 : vector<16xf32> to vector<16x1xf32>
    %cst_57 = arith.constant 3.200000e+01 : f32
    %151 = vector.broadcast %cst_57 : f32 to vector<16x1xf32>
    %152 = arith.divf %150, %151 : vector<16x1xf32>
    %cst_58 = arith.constant 9.99999974E-6 : f32
    %153 = vector.broadcast %cst_58 : f32 to vector<16x1xf32>
    %154 = arith.addf %152, %153 : vector<16x1xf32>
    %155 = math.rsqrt %154 : vector<16x1xf32>
    %156 = vector.broadcast %155 : vector<16x1xf32> to vector<16x32xf32>
    %157 = arith.mulf %147, %156 : vector<16x32xf32>
    %158 = vector.broadcast %140 : vector<1x32xf32> to vector<16x32xf32>
    %159 = arith.mulf %157, %158 : vector<16x32xf32>
    %160 = vector.broadcast %141 : vector<1x32xf32> to vector<16x32xf32>
    %161 = arith.addf %159, %160 : vector<16x32xf32>
    %c608 = arith.constant 608 : index
    %c0_59 = arith.constant 0 : index
    %162 = vector.load %arg3[%c608, %c0_59] : memref<1432x128xf32, #tpu.memory_space<vmem>>, vector<32x96xf32>
    %cst_60 = arith.constant dense<0.000000e+00> : vector<16x96xf32>
    %163 = tpu.matmul %161, %162, %cst_60 {dimension_numbers = #tpu.dot_dimension_numbers<[1], [0], [0], [1], [0, 0, 1, 1], [], []>} : vector<16x32xf32>, vector<32x96xf32>, vector<16x96xf32> -> vector<16x96xf32>
    %164 = vector.extract_strided_slice %163 {offsets = [0, 0], sizes = [16, 32], strides = [1, 1]} : vector<16x96xf32> to vector<16x32xf32>
    %165 = vector.extract_strided_slice %163 {offsets = [0, 32], sizes = [16, 32], strides = [1, 1]} : vector<16x96xf32> to vector<16x32xf32>
    %166 = vector.extract_strided_slice %163 {offsets = [0, 64], sizes = [16, 32], strides = [1, 1]} : vector<16x96xf32> to vector<16x32xf32>
    %cst_61 = arith.constant dense<0xFF800000> : vector<16xf32>
    %167 = vector.multi_reduction <maximumf>, %164, %cst_61 [1] : vector<16x32xf32> to vector<16xf32>
    %168 = vector.shape_cast %167 : vector<16xf32> to vector<16x1xf32>
    %169 = vector.broadcast %168 : vector<16x1xf32> to vector<16x32xf32>
    %170 = arith.subf %164, %169 : vector<16x32xf32>
    %171 = math.exp %170 : vector<16x32xf32>
    %cst_62 = arith.constant dense<0.000000e+00> : vector<16x32xf32>
    %172 = tpu.matmul %171, %0, %cst_62 {dimension_numbers = #tpu.dot_dimension_numbers<[1], [0], [0], [1], [0, 0, 1, 1], [], []>} : vector<16x32xf32>, vector<32x32xf32>, vector<16x32xf32> -> vector<16x32xf32>
    %173 = tpu.reciprocal %172 {approx = true} : vector<16x32xf32> -> vector<16x32xf32>
    %174 = arith.mulf %171, %173 : vector<16x32xf32>
    %cst_63 = arith.constant dense<0xFF800000> : vector<32xf32>
    %175 = vector.multi_reduction <maximumf>, %165, %cst_63 [0] : vector<16x32xf32> to vector<32xf32>
    %176 = vector.shape_cast %175 : vector<32xf32> to vector<1x32xf32>
    %177 = vector.broadcast %176 : vector<1x32xf32> to vector<16x32xf32>
    %178 = arith.subf %165, %177 : vector<16x32xf32>
    %179 = math.exp %178 : vector<16x32xf32>
    %cst_64 = arith.constant dense<0.000000e+00> : vector<32xf32>
    %180 = vector.multi_reduction <add>, %179, %cst_64 [0] : vector<16x32xf32> to vector<32xf32>
    %181 = vector.shape_cast %180 : vector<32xf32> to vector<1x32xf32>
    %182 = tpu.reciprocal %181 {approx = true} : vector<1x32xf32> -> vector<1x32xf32>
    %183 = vector.broadcast %182 : vector<1x32xf32> to vector<16x32xf32>
    %184 = arith.mulf %179, %183 : vector<16x32xf32>
    %cst_65 = arith.constant dense<0.000000e+00> : vector<32x32xf32>
    %185 = tpu.matmul %184, %166, %cst_65 {dimension_numbers = #tpu.dot_dimension_numbers<[0], [0], [1], [1], [0, 1, 1, 1], [], []>} : vector<16x32xf32>, vector<16x32xf32>, vector<32x32xf32> -> vector<32x32xf32>
    %186 = arith.mulf %185, %0 : vector<32x32xf32>
    %cst_66 = arith.constant dense<0.000000e+00> : vector<16x32xf32>
    %187 = tpu.matmul %174, %186, %cst_66 {dimension_numbers = #tpu.dot_dimension_numbers<[1], [0], [0], [1], [0, 0, 1, 1], [], []>} : vector<16x32xf32>, vector<32x32xf32>, vector<16x32xf32> -> vector<16x32xf32>
    %c640 = arith.constant 640 : index
    %c0_67 = arith.constant 0 : index
    %188 = vector.load %arg3[%c640, %c0_67] : memref<1432x128xf32, #tpu.memory_space<vmem>>, vector<32x32xf32>
    %cst_68 = arith.constant dense<0.000000e+00> : vector<16x32xf32>
    %189 = tpu.matmul %187, %188, %cst_68 {dimension_numbers = #tpu.dot_dimension_numbers<[1], [0], [0], [1], [0, 0, 1, 1], [], []>} : vector<16x32xf32>, vector<32x32xf32>, vector<16x32xf32> -> vector<16x32xf32>
    %190 = arith.addf %139, %189 : vector<16x32xf32>
    %c672 = arith.constant 672 : index
    %c0_69 = arith.constant 0 : index
    %191 = vector.load %arg3[%c672, %c0_69] : memref<1432x128xf32, #tpu.memory_space<vmem>>, vector<1x32xf32>
    %192 = vector.broadcast %191 : vector<1x32xf32> to vector<16x32xf32>
    %193 = arith.addf %190, %192 : vector<16x32xf32>
    %c680 = arith.constant 680 : index
    %c0_70 = arith.constant 0 : index
    %194 = vector.load %arg3[%c680, %c0_70] : memref<1432x128xf32, #tpu.memory_space<vmem>>, vector<1x32xf32>
    %c688 = arith.constant 688 : index
    %c0_71 = arith.constant 0 : index
    %195 = vector.load %arg3[%c688, %c0_71] : memref<1432x128xf32, #tpu.memory_space<vmem>>, vector<1x32xf32>
    %cst_72 = arith.constant dense<0.000000e+00> : vector<16xf32>
    %196 = vector.multi_reduction <add>, %193, %cst_72 [1] : vector<16x32xf32> to vector<16xf32>
    %197 = vector.shape_cast %196 : vector<16xf32> to vector<16x1xf32>
    %cst_73 = arith.constant 3.200000e+01 : f32
    %198 = vector.broadcast %cst_73 : f32 to vector<16x1xf32>
    %199 = arith.divf %197, %198 : vector<16x1xf32>
    %200 = vector.broadcast %199 : vector<16x1xf32> to vector<16x32xf32>
    %201 = arith.subf %193, %200 : vector<16x32xf32>
    %202 = arith.mulf %201, %201 : vector<16x32xf32>
    %cst_74 = arith.constant dense<0.000000e+00> : vector<16xf32>
    %203 = vector.multi_reduction <add>, %202, %cst_74 [1] : vector<16x32xf32> to vector<16xf32>
    %204 = vector.shape_cast %203 : vector<16xf32> to vector<16x1xf32>
    %cst_75 = arith.constant 3.200000e+01 : f32
    %205 = vector.broadcast %cst_75 : f32 to vector<16x1xf32>
    %206 = arith.divf %204, %205 : vector<16x1xf32>
    %cst_76 = arith.constant 9.99999974E-6 : f32
    %207 = vector.broadcast %cst_76 : f32 to vector<16x1xf32>
    %208 = arith.addf %206, %207 : vector<16x1xf32>
    %209 = math.rsqrt %208 : vector<16x1xf32>
    %210 = vector.broadcast %209 : vector<16x1xf32> to vector<16x32xf32>
    %211 = arith.mulf %201, %210 : vector<16x32xf32>
    %212 = vector.broadcast %194 : vector<1x32xf32> to vector<16x32xf32>
    %213 = arith.mulf %211, %212 : vector<16x32xf32>
    %214 = vector.broadcast %195 : vector<1x32xf32> to vector<16x32xf32>
    %215 = arith.addf %213, %214 : vector<16x32xf32>
    %c696 = arith.constant 696 : index
    %c0_77 = arith.constant 0 : index
    %216 = vector.load %arg3[%c696, %c0_77] : memref<1432x128xf32, #tpu.memory_space<vmem>>, vector<32x128xf32>
    %cst_78 = arith.constant dense<0.000000e+00> : vector<16x128xf32>
    %217 = tpu.matmul %215, %216, %cst_78 {dimension_numbers = #tpu.dot_dimension_numbers<[1], [0], [0], [1], [0, 0, 1, 1], [], []>} : vector<16x32xf32>, vector<32x128xf32>, vector<16x128xf32> -> vector<16x128xf32>
    %c728 = arith.constant 728 : index
    %c0_79 = arith.constant 0 : index
    %218 = vector.load %arg3[%c728, %c0_79] : memref<1432x128xf32, #tpu.memory_space<vmem>>, vector<1x128xf32>
    %219 = vector.broadcast %218 : vector<1x128xf32> to vector<16x128xf32>
    %220 = arith.addf %217, %219 : vector<16x128xf32>
    %cst_80 = arith.constant 5.000000e-01 : f32
    %221 = vector.broadcast %cst_80 : f32 to vector<16x128xf32>
    %222 = arith.mulf %221, %220 : vector<16x128xf32>
    %cst_81 = arith.constant 0.707106769 : f32
    %223 = vector.broadcast %cst_81 : f32 to vector<16x128xf32>
    %224 = arith.mulf %220, %223 : vector<16x128xf32>
    %225 = math.erf %224 : vector<16x128xf32>
    %cst_82 = arith.constant 1.000000e+00 : f32
    %226 = vector.broadcast %cst_82 : f32 to vector<16x128xf32>
    %227 = arith.addf %226, %225 : vector<16x128xf32>
    %228 = arith.mulf %222, %227 : vector<16x128xf32>
    %c736 = arith.constant 736 : index
    %c0_83 = arith.constant 0 : index
    %229 = vector.load %arg3[%c736, %c0_83] : memref<1432x128xf32, #tpu.memory_space<vmem>>, vector<128x32xf32>
    %cst_84 = arith.constant dense<0.000000e+00> : vector<16x32xf32>
    %230 = tpu.matmul %228, %229, %cst_84 {dimension_numbers = #tpu.dot_dimension_numbers<[1], [0], [0], [1], [0, 0, 1, 1], [], []>} : vector<16x128xf32>, vector<128x32xf32>, vector<16x32xf32> -> vector<16x32xf32>
    %231 = arith.addf %193, %230 : vector<16x32xf32>
    %c864 = arith.constant 864 : index
    %c0_85 = arith.constant 0 : index
    %232 = vector.load %arg3[%c864, %c0_85] : memref<1432x128xf32, #tpu.memory_space<vmem>>, vector<1x32xf32>
    %233 = vector.broadcast %232 : vector<1x32xf32> to vector<16x32xf32>
    %234 = arith.addf %231, %233 : vector<16x32xf32>
    %235 = arith.addf %234, %36 : vector<16x32xf32>
    %236 = vector.extract_strided_slice %25 {offsets = [0, 64], sizes = [1, 32], strides = [1, 1]} : vector<1x128xf32> to vector<1x32xf32>
    %237 = vector.broadcast %236 : vector<1x32xf32> to vector<16x32xf32>
    %238 = arith.addf %235, %237 : vector<16x32xf32>
    %c872 = arith.constant 872 : index
    %c0_86 = arith.constant 0 : index
    %239 = vector.load %arg3[%c872, %c0_86] : memref<1432x128xf32, #tpu.memory_space<vmem>>, vector<1x32xf32>
    %c880 = arith.constant 880 : index
    %c0_87 = arith.constant 0 : index
    %240 = vector.load %arg3[%c880, %c0_87] : memref<1432x128xf32, #tpu.memory_space<vmem>>, vector<1x32xf32>
    %cst_88 = arith.constant dense<0.000000e+00> : vector<16xf32>
    %241 = vector.multi_reduction <add>, %238, %cst_88 [1] : vector<16x32xf32> to vector<16xf32>
    %242 = vector.shape_cast %241 : vector<16xf32> to vector<16x1xf32>
    %cst_89 = arith.constant 3.200000e+01 : f32
    %243 = vector.broadcast %cst_89 : f32 to vector<16x1xf32>
    %244 = arith.divf %242, %243 : vector<16x1xf32>
    %245 = vector.broadcast %244 : vector<16x1xf32> to vector<16x32xf32>
    %246 = arith.subf %238, %245 : vector<16x32xf32>
    %247 = arith.mulf %246, %246 : vector<16x32xf32>
    %cst_90 = arith.constant dense<0.000000e+00> : vector<16xf32>
    %248 = vector.multi_reduction <add>, %247, %cst_90 [1] : vector<16x32xf32> to vector<16xf32>
    %249 = vector.shape_cast %248 : vector<16xf32> to vector<16x1xf32>
    %cst_91 = arith.constant 3.200000e+01 : f32
    %250 = vector.broadcast %cst_91 : f32 to vector<16x1xf32>
    %251 = arith.divf %249, %250 : vector<16x1xf32>
    %cst_92 = arith.constant 9.99999974E-6 : f32
    %252 = vector.broadcast %cst_92 : f32 to vector<16x1xf32>
    %253 = arith.addf %251, %252 : vector<16x1xf32>
    %254 = math.rsqrt %253 : vector<16x1xf32>
    %255 = vector.broadcast %254 : vector<16x1xf32> to vector<16x32xf32>
    %256 = arith.mulf %246, %255 : vector<16x32xf32>
    %257 = vector.broadcast %239 : vector<1x32xf32> to vector<16x32xf32>
    %258 = arith.mulf %256, %257 : vector<16x32xf32>
    %259 = vector.broadcast %240 : vector<1x32xf32> to vector<16x32xf32>
    %260 = arith.addf %258, %259 : vector<16x32xf32>
    %c888 = arith.constant 888 : index
    %c0_93 = arith.constant 0 : index
    %261 = vector.load %arg3[%c888, %c0_93] : memref<1432x128xf32, #tpu.memory_space<vmem>>, vector<32x96xf32>
    %cst_94 = arith.constant dense<0.000000e+00> : vector<16x96xf32>
    %262 = tpu.matmul %260, %261, %cst_94 {dimension_numbers = #tpu.dot_dimension_numbers<[1], [0], [0], [1], [0, 0, 1, 1], [], []>} : vector<16x32xf32>, vector<32x96xf32>, vector<16x96xf32> -> vector<16x96xf32>
    %263 = vector.extract_strided_slice %262 {offsets = [0, 0], sizes = [16, 32], strides = [1, 1]} : vector<16x96xf32> to vector<16x32xf32>
    %264 = vector.extract_strided_slice %262 {offsets = [0, 32], sizes = [16, 32], strides = [1, 1]} : vector<16x96xf32> to vector<16x32xf32>
    %265 = vector.extract_strided_slice %262 {offsets = [0, 64], sizes = [16, 32], strides = [1, 1]} : vector<16x96xf32> to vector<16x32xf32>
    %cst_95 = arith.constant dense<0xFF800000> : vector<16xf32>
    %266 = vector.multi_reduction <maximumf>, %263, %cst_95 [1] : vector<16x32xf32> to vector<16xf32>
    %267 = vector.shape_cast %266 : vector<16xf32> to vector<16x1xf32>
    %268 = vector.broadcast %267 : vector<16x1xf32> to vector<16x32xf32>
    %269 = arith.subf %263, %268 : vector<16x32xf32>
    %270 = math.exp %269 : vector<16x32xf32>
    %cst_96 = arith.constant dense<0.000000e+00> : vector<16x32xf32>
    %271 = tpu.matmul %270, %0, %cst_96 {dimension_numbers = #tpu.dot_dimension_numbers<[1], [0], [0], [1], [0, 0, 1, 1], [], []>} : vector<16x32xf32>, vector<32x32xf32>, vector<16x32xf32> -> vector<16x32xf32>
    %272 = tpu.reciprocal %271 {approx = true} : vector<16x32xf32> -> vector<16x32xf32>
    %273 = arith.mulf %270, %272 : vector<16x32xf32>
    %cst_97 = arith.constant dense<0xFF800000> : vector<32xf32>
    %274 = vector.multi_reduction <maximumf>, %264, %cst_97 [0] : vector<16x32xf32> to vector<32xf32>
    %275 = vector.shape_cast %274 : vector<32xf32> to vector<1x32xf32>
    %276 = vector.broadcast %275 : vector<1x32xf32> to vector<16x32xf32>
    %277 = arith.subf %264, %276 : vector<16x32xf32>
    %278 = math.exp %277 : vector<16x32xf32>
    %cst_98 = arith.constant dense<0.000000e+00> : vector<32xf32>
    %279 = vector.multi_reduction <add>, %278, %cst_98 [0] : vector<16x32xf32> to vector<32xf32>
    %280 = vector.shape_cast %279 : vector<32xf32> to vector<1x32xf32>
    %281 = tpu.reciprocal %280 {approx = true} : vector<1x32xf32> -> vector<1x32xf32>
    %282 = vector.broadcast %281 : vector<1x32xf32> to vector<16x32xf32>
    %283 = arith.mulf %278, %282 : vector<16x32xf32>
    %cst_99 = arith.constant dense<0.000000e+00> : vector<32x32xf32>
    %284 = tpu.matmul %283, %265, %cst_99 {dimension_numbers = #tpu.dot_dimension_numbers<[0], [0], [1], [1], [0, 1, 1, 1], [], []>} : vector<16x32xf32>, vector<16x32xf32>, vector<32x32xf32> -> vector<32x32xf32>
    %285 = arith.mulf %284, %0 : vector<32x32xf32>
    %cst_100 = arith.constant dense<0.000000e+00> : vector<16x32xf32>
    %286 = tpu.matmul %273, %285, %cst_100 {dimension_numbers = #tpu.dot_dimension_numbers<[1], [0], [0], [1], [0, 0, 1, 1], [], []>} : vector<16x32xf32>, vector<32x32xf32>, vector<16x32xf32> -> vector<16x32xf32>
    %c920 = arith.constant 920 : index
    %c0_101 = arith.constant 0 : index
    %287 = vector.load %arg3[%c920, %c0_101] : memref<1432x128xf32, #tpu.memory_space<vmem>>, vector<32x32xf32>
    %cst_102 = arith.constant dense<0.000000e+00> : vector<16x32xf32>
    %288 = tpu.matmul %286, %287, %cst_102 {dimension_numbers = #tpu.dot_dimension_numbers<[1], [0], [0], [1], [0, 0, 1, 1], [], []>} : vector<16x32xf32>, vector<32x32xf32>, vector<16x32xf32> -> vector<16x32xf32>
    %289 = arith.addf %238, %288 : vector<16x32xf32>
    %c952 = arith.constant 952 : index
    %c0_103 = arith.constant 0 : index
    %290 = vector.load %arg3[%c952, %c0_103] : memref<1432x128xf32, #tpu.memory_space<vmem>>, vector<1x32xf32>
    %291 = vector.broadcast %290 : vector<1x32xf32> to vector<16x32xf32>
    %292 = arith.addf %289, %291 : vector<16x32xf32>
    %c960 = arith.constant 960 : index
    %c0_104 = arith.constant 0 : index
    %293 = vector.load %arg3[%c960, %c0_104] : memref<1432x128xf32, #tpu.memory_space<vmem>>, vector<1x32xf32>
    %c968 = arith.constant 968 : index
    %c0_105 = arith.constant 0 : index
    %294 = vector.load %arg3[%c968, %c0_105] : memref<1432x128xf32, #tpu.memory_space<vmem>>, vector<1x32xf32>
    %cst_106 = arith.constant dense<0.000000e+00> : vector<16xf32>
    %295 = vector.multi_reduction <add>, %292, %cst_106 [1] : vector<16x32xf32> to vector<16xf32>
    %296 = vector.shape_cast %295 : vector<16xf32> to vector<16x1xf32>
    %cst_107 = arith.constant 3.200000e+01 : f32
    %297 = vector.broadcast %cst_107 : f32 to vector<16x1xf32>
    %298 = arith.divf %296, %297 : vector<16x1xf32>
    %299 = vector.broadcast %298 : vector<16x1xf32> to vector<16x32xf32>
    %300 = arith.subf %292, %299 : vector<16x32xf32>
    %301 = arith.mulf %300, %300 : vector<16x32xf32>
    %cst_108 = arith.constant dense<0.000000e+00> : vector<16xf32>
    %302 = vector.multi_reduction <add>, %301, %cst_108 [1] : vector<16x32xf32> to vector<16xf32>
    %303 = vector.shape_cast %302 : vector<16xf32> to vector<16x1xf32>
    %cst_109 = arith.constant 3.200000e+01 : f32
    %304 = vector.broadcast %cst_109 : f32 to vector<16x1xf32>
    %305 = arith.divf %303, %304 : vector<16x1xf32>
    %cst_110 = arith.constant 9.99999974E-6 : f32
    %306 = vector.broadcast %cst_110 : f32 to vector<16x1xf32>
    %307 = arith.addf %305, %306 : vector<16x1xf32>
    %308 = math.rsqrt %307 : vector<16x1xf32>
    %309 = vector.broadcast %308 : vector<16x1xf32> to vector<16x32xf32>
    %310 = arith.mulf %300, %309 : vector<16x32xf32>
    %311 = vector.broadcast %293 : vector<1x32xf32> to vector<16x32xf32>
    %312 = arith.mulf %310, %311 : vector<16x32xf32>
    %313 = vector.broadcast %294 : vector<1x32xf32> to vector<16x32xf32>
    %314 = arith.addf %312, %313 : vector<16x32xf32>
    %c976 = arith.constant 976 : index
    %c0_111 = arith.constant 0 : index
    %315 = vector.load %arg3[%c976, %c0_111] : memref<1432x128xf32, #tpu.memory_space<vmem>>, vector<32x128xf32>
    %cst_112 = arith.constant dense<0.000000e+00> : vector<16x128xf32>
    %316 = tpu.matmul %314, %315, %cst_112 {dimension_numbers = #tpu.dot_dimension_numbers<[1], [0], [0], [1], [0, 0, 1, 1], [], []>} : vector<16x32xf32>, vector<32x128xf32>, vector<16x128xf32> -> vector<16x128xf32>
    %c1008 = arith.constant 1008 : index
    %c0_113 = arith.constant 0 : index
    %317 = vector.load %arg3[%c1008, %c0_113] : memref<1432x128xf32, #tpu.memory_space<vmem>>, vector<1x128xf32>
    %318 = vector.broadcast %317 : vector<1x128xf32> to vector<16x128xf32>
    %319 = arith.addf %316, %318 : vector<16x128xf32>
    %cst_114 = arith.constant 5.000000e-01 : f32
    %320 = vector.broadcast %cst_114 : f32 to vector<16x128xf32>
    %321 = arith.mulf %320, %319 : vector<16x128xf32>
    %cst_115 = arith.constant 0.707106769 : f32
    %322 = vector.broadcast %cst_115 : f32 to vector<16x128xf32>
    %323 = arith.mulf %319, %322 : vector<16x128xf32>
    %324 = math.erf %323 : vector<16x128xf32>
    %cst_116 = arith.constant 1.000000e+00 : f32
    %325 = vector.broadcast %cst_116 : f32 to vector<16x128xf32>
    %326 = arith.addf %325, %324 : vector<16x128xf32>
    %327 = arith.mulf %321, %326 : vector<16x128xf32>
    %c1016 = arith.constant 1016 : index
    %c0_117 = arith.constant 0 : index
    %328 = vector.load %arg3[%c1016, %c0_117] : memref<1432x128xf32, #tpu.memory_space<vmem>>, vector<128x32xf32>
    %cst_118 = arith.constant dense<0.000000e+00> : vector<16x32xf32>
    %329 = tpu.matmul %327, %328, %cst_118 {dimension_numbers = #tpu.dot_dimension_numbers<[1], [0], [0], [1], [0, 0, 1, 1], [], []>} : vector<16x128xf32>, vector<128x32xf32>, vector<16x32xf32> -> vector<16x32xf32>
    %330 = arith.addf %292, %329 : vector<16x32xf32>
    %c1144 = arith.constant 1144 : index
    %c0_119 = arith.constant 0 : index
    %331 = vector.load %arg3[%c1144, %c0_119] : memref<1432x128xf32, #tpu.memory_space<vmem>>, vector<1x32xf32>
    %332 = vector.broadcast %331 : vector<1x32xf32> to vector<16x32xf32>
    %333 = arith.addf %330, %332 : vector<16x32xf32>
    %334 = vector.extract_strided_slice %25 {offsets = [0, 96], sizes = [1, 32], strides = [1, 1]} : vector<1x128xf32> to vector<1x32xf32>
    %335 = vector.broadcast %334 : vector<1x32xf32> to vector<16x32xf32>
    %336 = arith.addf %333, %335 : vector<16x32xf32>
    %c1152 = arith.constant 1152 : index
    %c0_120 = arith.constant 0 : index
    %337 = vector.load %arg3[%c1152, %c0_120] : memref<1432x128xf32, #tpu.memory_space<vmem>>, vector<1x32xf32>
    %c1160 = arith.constant 1160 : index
    %c0_121 = arith.constant 0 : index
    %338 = vector.load %arg3[%c1160, %c0_121] : memref<1432x128xf32, #tpu.memory_space<vmem>>, vector<1x32xf32>
    %cst_122 = arith.constant dense<0.000000e+00> : vector<16xf32>
    %339 = vector.multi_reduction <add>, %336, %cst_122 [1] : vector<16x32xf32> to vector<16xf32>
    %340 = vector.shape_cast %339 : vector<16xf32> to vector<16x1xf32>
    %cst_123 = arith.constant 3.200000e+01 : f32
    %341 = vector.broadcast %cst_123 : f32 to vector<16x1xf32>
    %342 = arith.divf %340, %341 : vector<16x1xf32>
    %343 = vector.broadcast %342 : vector<16x1xf32> to vector<16x32xf32>
    %344 = arith.subf %336, %343 : vector<16x32xf32>
    %345 = arith.mulf %344, %344 : vector<16x32xf32>
    %cst_124 = arith.constant dense<0.000000e+00> : vector<16xf32>
    %346 = vector.multi_reduction <add>, %345, %cst_124 [1] : vector<16x32xf32> to vector<16xf32>
    %347 = vector.shape_cast %346 : vector<16xf32> to vector<16x1xf32>
    %cst_125 = arith.constant 3.200000e+01 : f32
    %348 = vector.broadcast %cst_125 : f32 to vector<16x1xf32>
    %349 = arith.divf %347, %348 : vector<16x1xf32>
    %cst_126 = arith.constant 9.99999974E-6 : f32
    %350 = vector.broadcast %cst_126 : f32 to vector<16x1xf32>
    %351 = arith.addf %349, %350 : vector<16x1xf32>
    %352 = math.rsqrt %351 : vector<16x1xf32>
    %353 = vector.broadcast %352 : vector<16x1xf32> to vector<16x32xf32>
    %354 = arith.mulf %344, %353 : vector<16x32xf32>
    %355 = vector.broadcast %337 : vector<1x32xf32> to vector<16x32xf32>
    %356 = arith.mulf %354, %355 : vector<16x32xf32>
    %357 = vector.broadcast %338 : vector<1x32xf32> to vector<16x32xf32>
    %358 = arith.addf %356, %357 : vector<16x32xf32>
    %c1168 = arith.constant 1168 : index
    %c0_127 = arith.constant 0 : index
    %359 = vector.load %arg3[%c1168, %c0_127] : memref<1432x128xf32, #tpu.memory_space<vmem>>, vector<32x96xf32>
    %cst_128 = arith.constant dense<0.000000e+00> : vector<16x96xf32>
    %360 = tpu.matmul %358, %359, %cst_128 {dimension_numbers = #tpu.dot_dimension_numbers<[1], [0], [0], [1], [0, 0, 1, 1], [], []>} : vector<16x32xf32>, vector<32x96xf32>, vector<16x96xf32> -> vector<16x96xf32>
    %361 = vector.extract_strided_slice %360 {offsets = [0, 0], sizes = [16, 32], strides = [1, 1]} : vector<16x96xf32> to vector<16x32xf32>
    %362 = vector.extract_strided_slice %360 {offsets = [0, 32], sizes = [16, 32], strides = [1, 1]} : vector<16x96xf32> to vector<16x32xf32>
    %363 = vector.extract_strided_slice %360 {offsets = [0, 64], sizes = [16, 32], strides = [1, 1]} : vector<16x96xf32> to vector<16x32xf32>
    %cst_129 = arith.constant dense<0xFF800000> : vector<16xf32>
    %364 = vector.multi_reduction <maximumf>, %361, %cst_129 [1] : vector<16x32xf32> to vector<16xf32>
    %365 = vector.shape_cast %364 : vector<16xf32> to vector<16x1xf32>
    %366 = vector.broadcast %365 : vector<16x1xf32> to vector<16x32xf32>
    %367 = arith.subf %361, %366 : vector<16x32xf32>
    %368 = math.exp %367 : vector<16x32xf32>
    %cst_130 = arith.constant dense<0.000000e+00> : vector<16x32xf32>
    %369 = tpu.matmul %368, %0, %cst_130 {dimension_numbers = #tpu.dot_dimension_numbers<[1], [0], [0], [1], [0, 0, 1, 1], [], []>} : vector<16x32xf32>, vector<32x32xf32>, vector<16x32xf32> -> vector<16x32xf32>
    %370 = tpu.reciprocal %369 {approx = true} : vector<16x32xf32> -> vector<16x32xf32>
    %371 = arith.mulf %368, %370 : vector<16x32xf32>
    %cst_131 = arith.constant dense<0xFF800000> : vector<32xf32>
    %372 = vector.multi_reduction <maximumf>, %362, %cst_131 [0] : vector<16x32xf32> to vector<32xf32>
    %373 = vector.shape_cast %372 : vector<32xf32> to vector<1x32xf32>
    %374 = vector.broadcast %373 : vector<1x32xf32> to vector<16x32xf32>
    %375 = arith.subf %362, %374 : vector<16x32xf32>
    %376 = math.exp %375 : vector<16x32xf32>
    %cst_132 = arith.constant dense<0.000000e+00> : vector<32xf32>
    %377 = vector.multi_reduction <add>, %376, %cst_132 [0] : vector<16x32xf32> to vector<32xf32>
    %378 = vector.shape_cast %377 : vector<32xf32> to vector<1x32xf32>
    %379 = tpu.reciprocal %378 {approx = true} : vector<1x32xf32> -> vector<1x32xf32>
    %380 = vector.broadcast %379 : vector<1x32xf32> to vector<16x32xf32>
    %381 = arith.mulf %376, %380 : vector<16x32xf32>
    %cst_133 = arith.constant dense<0.000000e+00> : vector<32x32xf32>
    %382 = tpu.matmul %381, %363, %cst_133 {dimension_numbers = #tpu.dot_dimension_numbers<[0], [0], [1], [1], [0, 1, 1, 1], [], []>} : vector<16x32xf32>, vector<16x32xf32>, vector<32x32xf32> -> vector<32x32xf32>
    %383 = arith.mulf %382, %0 : vector<32x32xf32>
    %cst_134 = arith.constant dense<0.000000e+00> : vector<16x32xf32>
    %384 = tpu.matmul %371, %383, %cst_134 {dimension_numbers = #tpu.dot_dimension_numbers<[1], [0], [0], [1], [0, 0, 1, 1], [], []>} : vector<16x32xf32>, vector<32x32xf32>, vector<16x32xf32> -> vector<16x32xf32>
    %c1200 = arith.constant 1200 : index
    %c0_135 = arith.constant 0 : index
    %385 = vector.load %arg3[%c1200, %c0_135] : memref<1432x128xf32, #tpu.memory_space<vmem>>, vector<32x32xf32>
    %cst_136 = arith.constant dense<0.000000e+00> : vector<16x32xf32>
    %386 = tpu.matmul %384, %385, %cst_136 {dimension_numbers = #tpu.dot_dimension_numbers<[1], [0], [0], [1], [0, 0, 1, 1], [], []>} : vector<16x32xf32>, vector<32x32xf32>, vector<16x32xf32> -> vector<16x32xf32>
    %387 = arith.addf %336, %386 : vector<16x32xf32>
    %c1232 = arith.constant 1232 : index
    %c0_137 = arith.constant 0 : index
    %388 = vector.load %arg3[%c1232, %c0_137] : memref<1432x128xf32, #tpu.memory_space<vmem>>, vector<1x32xf32>
    %389 = vector.broadcast %388 : vector<1x32xf32> to vector<16x32xf32>
    %390 = arith.addf %387, %389 : vector<16x32xf32>
    %c1240 = arith.constant 1240 : index
    %c0_138 = arith.constant 0 : index
    %391 = vector.load %arg3[%c1240, %c0_138] : memref<1432x128xf32, #tpu.memory_space<vmem>>, vector<1x32xf32>
    %c1248 = arith.constant 1248 : index
    %c0_139 = arith.constant 0 : index
    %392 = vector.load %arg3[%c1248, %c0_139] : memref<1432x128xf32, #tpu.memory_space<vmem>>, vector<1x32xf32>
    %cst_140 = arith.constant dense<0.000000e+00> : vector<16xf32>
    %393 = vector.multi_reduction <add>, %390, %cst_140 [1] : vector<16x32xf32> to vector<16xf32>
    %394 = vector.shape_cast %393 : vector<16xf32> to vector<16x1xf32>
    %cst_141 = arith.constant 3.200000e+01 : f32
    %395 = vector.broadcast %cst_141 : f32 to vector<16x1xf32>
    %396 = arith.divf %394, %395 : vector<16x1xf32>
    %397 = vector.broadcast %396 : vector<16x1xf32> to vector<16x32xf32>
    %398 = arith.subf %390, %397 : vector<16x32xf32>
    %399 = arith.mulf %398, %398 : vector<16x32xf32>
    %cst_142 = arith.constant dense<0.000000e+00> : vector<16xf32>
    %400 = vector.multi_reduction <add>, %399, %cst_142 [1] : vector<16x32xf32> to vector<16xf32>
    %401 = vector.shape_cast %400 : vector<16xf32> to vector<16x1xf32>
    %cst_143 = arith.constant 3.200000e+01 : f32
    %402 = vector.broadcast %cst_143 : f32 to vector<16x1xf32>
    %403 = arith.divf %401, %402 : vector<16x1xf32>
    %cst_144 = arith.constant 9.99999974E-6 : f32
    %404 = vector.broadcast %cst_144 : f32 to vector<16x1xf32>
    %405 = arith.addf %403, %404 : vector<16x1xf32>
    %406 = math.rsqrt %405 : vector<16x1xf32>
    %407 = vector.broadcast %406 : vector<16x1xf32> to vector<16x32xf32>
    %408 = arith.mulf %398, %407 : vector<16x32xf32>
    %409 = vector.broadcast %391 : vector<1x32xf32> to vector<16x32xf32>
    %410 = arith.mulf %408, %409 : vector<16x32xf32>
    %411 = vector.broadcast %392 : vector<1x32xf32> to vector<16x32xf32>
    %412 = arith.addf %410, %411 : vector<16x32xf32>
    %c1256 = arith.constant 1256 : index
    %c0_145 = arith.constant 0 : index
    %413 = vector.load %arg3[%c1256, %c0_145] : memref<1432x128xf32, #tpu.memory_space<vmem>>, vector<32x128xf32>
    %cst_146 = arith.constant dense<0.000000e+00> : vector<16x128xf32>
    %414 = tpu.matmul %412, %413, %cst_146 {dimension_numbers = #tpu.dot_dimension_numbers<[1], [0], [0], [1], [0, 0, 1, 1], [], []>} : vector<16x32xf32>, vector<32x128xf32>, vector<16x128xf32> -> vector<16x128xf32>
    %c1288 = arith.constant 1288 : index
    %c0_147 = arith.constant 0 : index
    %415 = vector.load %arg3[%c1288, %c0_147] : memref<1432x128xf32, #tpu.memory_space<vmem>>, vector<1x128xf32>
    %416 = vector.broadcast %415 : vector<1x128xf32> to vector<16x128xf32>
    %417 = arith.addf %414, %416 : vector<16x128xf32>
    %cst_148 = arith.constant 5.000000e-01 : f32
    %418 = vector.broadcast %cst_148 : f32 to vector<16x128xf32>
    %419 = arith.mulf %418, %417 : vector<16x128xf32>
    %cst_149 = arith.constant 0.707106769 : f32
    %420 = vector.broadcast %cst_149 : f32 to vector<16x128xf32>
    %421 = arith.mulf %417, %420 : vector<16x128xf32>
    %422 = math.erf %421 : vector<16x128xf32>
    %cst_150 = arith.constant 1.000000e+00 : f32
    %423 = vector.broadcast %cst_150 : f32 to vector<16x128xf32>
    %424 = arith.addf %423, %422 : vector<16x128xf32>
    %425 = arith.mulf %419, %424 : vector<16x128xf32>
    %c1296 = arith.constant 1296 : index
    %c0_151 = arith.constant 0 : index
    %426 = vector.load %arg3[%c1296, %c0_151] : memref<1432x128xf32, #tpu.memory_space<vmem>>, vector<128x32xf32>
    %cst_152 = arith.constant dense<0.000000e+00> : vector<16x32xf32>
    %427 = tpu.matmul %425, %426, %cst_152 {dimension_numbers = #tpu.dot_dimension_numbers<[1], [0], [0], [1], [0, 0, 1, 1], [], []>} : vector<16x128xf32>, vector<128x32xf32>, vector<16x32xf32> -> vector<16x32xf32>
    %428 = arith.addf %390, %427 : vector<16x32xf32>
    %c1424 = arith.constant 1424 : index
    %c0_153 = arith.constant 0 : index
    %429 = vector.load %arg3[%c1424, %c0_153] : memref<1432x128xf32, #tpu.memory_space<vmem>>, vector<1x32xf32>
    %430 = vector.broadcast %429 : vector<1x32xf32> to vector<16x32xf32>
    %431 = arith.addf %428, %430 : vector<16x32xf32>
    %c256 = arith.constant 256 : index
    %c0_154 = arith.constant 0 : index
    %432 = vector.load %arg3[%c256, %c0_154] : memref<1432x128xf32, #tpu.memory_space<vmem>>, vector<1x32xf32>
    %c264 = arith.constant 264 : index
    %c0_155 = arith.constant 0 : index
    %433 = vector.load %arg3[%c264, %c0_155] : memref<1432x128xf32, #tpu.memory_space<vmem>>, vector<1x32xf32>
    %cst_156 = arith.constant dense<0.000000e+00> : vector<16xf32>
    %434 = vector.multi_reduction <add>, %431, %cst_156 [1] : vector<16x32xf32> to vector<16xf32>
    %435 = vector.shape_cast %434 : vector<16xf32> to vector<16x1xf32>
    %cst_157 = arith.constant 3.200000e+01 : f32
    %436 = vector.broadcast %cst_157 : f32 to vector<16x1xf32>
    %437 = arith.divf %435, %436 : vector<16x1xf32>
    %438 = vector.broadcast %437 : vector<16x1xf32> to vector<16x32xf32>
    %439 = arith.subf %431, %438 : vector<16x32xf32>
    %440 = arith.mulf %439, %439 : vector<16x32xf32>
    %cst_158 = arith.constant dense<0.000000e+00> : vector<16xf32>
    %441 = vector.multi_reduction <add>, %440, %cst_158 [1] : vector<16x32xf32> to vector<16xf32>
    %442 = vector.shape_cast %441 : vector<16xf32> to vector<16x1xf32>
    %cst_159 = arith.constant 3.200000e+01 : f32
    %443 = vector.broadcast %cst_159 : f32 to vector<16x1xf32>
    %444 = arith.divf %442, %443 : vector<16x1xf32>
    %cst_160 = arith.constant 9.99999974E-6 : f32
    %445 = vector.broadcast %cst_160 : f32 to vector<16x1xf32>
    %446 = arith.addf %444, %445 : vector<16x1xf32>
    %447 = math.rsqrt %446 : vector<16x1xf32>
    %448 = vector.broadcast %447 : vector<16x1xf32> to vector<16x32xf32>
    %449 = arith.mulf %439, %448 : vector<16x32xf32>
    %450 = vector.broadcast %432 : vector<1x32xf32> to vector<16x32xf32>
    %451 = arith.mulf %449, %450 : vector<16x32xf32>
    %452 = vector.broadcast %433 : vector<1x32xf32> to vector<16x32xf32>
    %453 = arith.addf %451, %452 : vector<16x32xf32>
    %c272 = arith.constant 272 : index
    %c0_161 = arith.constant 0 : index
    %454 = vector.load %arg3[%c272, %c0_161] : memref<1432x128xf32, #tpu.memory_space<vmem>>, vector<32x128xf32>
    %cst_162 = arith.constant dense<0.000000e+00> : vector<16x128xf32>
    %455 = tpu.matmul %453, %454, %cst_162 {dimension_numbers = #tpu.dot_dimension_numbers<[1], [0], [0], [1], [0, 0, 1, 1], [], []>} : vector<16x32xf32>, vector<32x128xf32>, vector<16x128xf32> -> vector<16x128xf32>
    %c304 = arith.constant 304 : index
    %c0_163 = arith.constant 0 : index
    %456 = vector.load %arg3[%c304, %c0_163] : memref<1432x128xf32, #tpu.memory_space<vmem>>, vector<1x128xf32>
    %457 = vector.broadcast %456 : vector<1x128xf32> to vector<16x128xf32>
    %458 = arith.addf %455, %457 : vector<16x128xf32>
    %c0_164 = arith.constant 0 : index
    %c0_165 = arith.constant 0 : index
    %c0_166 = arith.constant 0 : index
    %459 = vector.load %arg4[%c0_164, %c0_165, %c0_166] : memref<1x16x128xf32, #tpu.memory_space<vmem>>, vector<1x16x128xf32>
    %460 = vector.shape_cast %459 : vector<1x16x128xf32> to vector<16x128xf32>
    %461 = vector.shape_cast %458 : vector<16x128xf32> to vector<1x16x128xf32>
    tpu.vector_store %arg4[%c0_164, %c0_165, %c0_166], %461 {strides = array<i32>} : memref<1x16x128xf32, #tpu.memory_space<vmem>>, vector<1x16x128xf32>,
    return
  }
  func.func @transform_0(%arg0: i32, %arg1: memref<2xi32, #tpu.memory_space<smem>>) -> (i32, i32, i32) {
    %c0_i32 = arith.constant 0 : i32
    %c0_i32_0 = arith.constant 0 : i32
    %c0_i32_1 = arith.constant 0 : i32
    return %arg0, %c0_i32, %c0_i32_0 : i32, i32, i32
  }
  func.func @transform_1(%arg0: i32, %arg1: memref<2xi32, #tpu.memory_space<smem>>) -> (i32, i32) {
    %c0_i32 = arith.constant 0 : i32
    %c0_i32_0 = arith.constant 0 : i32
    %c0_i32_1 = arith.constant 0 : i32
    return %c0_i32, %c0_i32_0 : i32, i32
  }
  func.func @transform_2(%arg0: i32, %arg1: memref<2xi32, #tpu.memory_space<smem>>) -> (i32, i32, i32) {
    %c0_i32 = arith.constant 0 : i32
    %c0_i32_0 = arith.constant 0 : i32
    %c0_i32_1 = arith.constant 0 : i32
    return %arg0, %c0_i32, %c0_i32_0 : i32, i32, i32
  }
}

</mosaic_0001>

<bundles_post_ra>
// kernel: forward.1
= control target key start
LH: loop header
LB: loop body
LE: loop exit
PB: predicated region body
PF: predicated region fallthrough
CT: control target
= control target key end

     0   :  { %s6076_s0 = inlined_call_operand.vmem [shape: s32[2], index: 0, kind: input, shape index: {}]   ;;  %s6077_s1 = inlined_call_operand.vmem [shape: s32[2,16,1], index: 1, kind: input, shape index: {}]   ;;  %s6078_s2 = inlined_call_operand.hbm [shape: f32[1432,128], index: 2, kind: input, shape index: {}]   ;;  %s6079_s3 = inlined_call_operand.hbm [shape: f32[2,16,128], index: 3, kind: output, shape index: {}]  }
   0x1   :  { %s8_s14 = sshll.u32 %s6076_s0, 4  ;;  %s9_s14 = int_to_ptr.vmem [resolvable:$true] %s8_s14 }
   0x2   :  { %s5447_s15 = scalar_lea.vmem %s9_s14, 16  ;;  %p5452_p1 = scmp.lt.s32.totalorder %s9_s14, %s9_s14 }
   0x3   :  { %p5448_p0 = scmp.ne.s32.totalorder %s9_s14, %s5447_s15  ;;  %p5453_p2 = scmp.lt.s32.totalorder %s5447_s15, %s5447_s15 }
   0x5   :  { %p5454_p3 = por %p5453_p2, %p5452_p1 }
   0x7   :  { %p5455_p4 = pnand %p5454_p3, %p5448_p0 }
   0x9   :  { %5458 = shalt.err (!%p5455_p4)  }
   0xa   :  { %s5557_s16 = smov [#allocation3]  }
   0xb   :  { %11 = dma.vmem_to_smem %s9_s14, 16, %s5557_s16, [#allocation2] }
   0xc   :  { %5531 = dma.done.wait [#allocation2], 16 }
   0xd   :  { %5532 = vsyncadd [#allocation2], 4294967280 }
   0xe   :  { %13 = sfence }
   0xf   :  { %14 = vsyncpa [#allocation5], 0 }
  0x10   :  { %15 = vsyncpa [#allocation6], 0 }
  0x11   :  { %17 = vsyncpa [#allocation6 + $0x1], 0  ;;  %s5600_s17 = smov 0   ;;  %s5602_s18 = smov 0  }
  0x12   :  { %s5604_s0 = smov 0   ;;  %s5606_s19 = smov 0  }
  0x13 LB: > { %s5621_s20 = sadd.s32 4294967295, %s5555_s19   ;;  %s4062_s21 = sadd.s32 4294967294, %s5555_s19   ;;  %s5555_s19 = sphi %s5606_s19, %s6095_s19   ;;  %s5551_s0 = sphi %s5604_s0, %s6094_s0   ;;  %s5547_s18 = sphi %s5602_s18, %s6093_s18   ;;  %s5543_s17 = sphi %s5600_s17, %s6092_s17  }
  0x14   : > { %s5625_s22 = sadd.s32 1, %s5555_s19   ;;  %s77_s23 = sadd.s32 1, %s5551_s0 }
  0x15   : > { %s74_s24 = ssub.s32 %s5555_s19, %s5625_s22  ;;  %p87_p5 = scmp.ne.s32.totalorder %s5551_s0, %s5547_s18 }
  0x16   : > { %p75_p6 = scmp.eq.s32.totalorder %s74_s24, 0  ;;  %p88_p7 = scmp.eq.s32.totalorder %s5621_s20, 1 }
  0x17   : > { %p93_p8 = scmp.ne.s32.totalorder %s5547_s18, %s5543_s17  ;;  %p94_p9 = scmp.eq.s32.totalorder %s4062_s21, 1 }
  0x18   : > { %s5636_s25 = scalar_select %p75_p6, %s5551_s0, %s77_s23  }
  0x19   : > { %p5638_p10 = por %p88_p7, %p87_p5  ;;  %p5642_p11 = por %p94_p9, %p93_p8 }
  0x1a   : > { %p4063_p12 = scmp.ge.s32.totalorder %s5555_s19, 1  ;;  %p101_p13 = scmp.lt.s32.totalorder %s5555_s19, 3 }
  0x1b   : > { %s6083_s26 = scalar_select %p5638_p10, 1, 0 }
  0x1c   : > { %s6084_s27 = scalar_select %p5642_p11, 1, 0 }
  0x1d   : > { %p6080_p0 = scmp.eq.s32.totalorder %s5621_s20, 0  ;;  %p5649_p1 = pnand %p4063_p12, %p101_p13 }
  0x1e   : > { %s5558_s29 = smov [#allocation4]   ;;  %s5459_s7 = scalar_lea.hbm %s6078_s2, 22912 }
  0x1f   : > { %s6085_s28 = scalar_select %p5649_p1, 1, 0 }
  0x20   : > { %s113_s30 = sshll.u32 %s5558_s29, 4  ;;  %p5244_p2 = pneg %p5649_p1  ;;  %s114_s30 = int_to_ptr.vmem [resolvable:$true] %s113_s30 }
  0x21   : > { %p5460_p4 = scmp.ne.s32.totalorder %s6078_s2, %s5459_s7  ;;  %p5466_p8 = scmp.lt.u32.totalorder %s5459_s7, %s6078_s2 }
  0x22   : > { %p5657_p3 = pnand %p6080_p0, %p5244_p2 }
  0x24   : > { %p5461_p5 = pneg %p5657_p3 }
  0x26   : > { %p5462_p6 = pnand %p5461_p5, %p5460_p4 }
  0x28   : > { %p5463_p7 = pneg %p5462_p6 }
  0x2a   : > { %p5468_p9 = pnand %p5466_p8, %p5463_p7 }
  0x2c   : > { %5471 = shalt.err (!%p5468_p9)
}
  0x2d   : > { %s5472_s12 = scalar_lea.vmem %s114_s30, 22912  ;;  %p5480_p0 = scmp.lt.s32.totalorder %s114_s30, %s114_s30 }
  0x2e   : > { %p5473_p12 = scmp.ne.s32.totalorder %s114_s30, %s5472_s12  ;;  %p5481_p11 = scmp.lt.s32.totalorder %s5472_s12, %s5472_s12 }
  0x30   : > { %p5475_p13 = pnand %p5473_p12, %p5461_p5  ;;  %p5482_p10 = por %p5481_p11, %p5480_p0 }
  0x32   : > { %p5476_p2 = pneg %p5475_p13 }
  0x34   : > { %p5483_p1 = pnand %p5482_p10, %p5476_p2 }
  0x36   : > { %5486 = shalt.err (!%p5483_p1)
}
  0x37   : > { %s5559_s13 = smov 128   ;;  %s5560_s14 = smov 8  }
  0x38   : > { %5247 = dma.hbm_to_vmem [thread:$0]  (!%p5657_p3), %s6078_s2, 22912, %s114_s30, [#allocation5], %s5559_s13, %s5559_s13, %s5560_s14  }
  0x39   : > { %p6087_p4 = scmp.ne.s32.totalorder %s6085_s28, 0 }
  0x3a   : > { %p6088_p6 = scmp.eq.s32.totalorder (!%p6087_p4), %s5621_s20, 0 }
  0x3b   : > { %137 = sbr.rel (%p6087_p4) target bundleno = 10234 (0x27fa), region = 28 }
  0x42   : > { %5534 = dma.done.wait (%p6088_p6), [#allocation5], 22912   ;;  %p6089_p5 = pmov %p6088_p6 }
  0x43   : > { %v5561_v0 = vmov 0.0|0.0   ;;  %vm5562_vm0 = vmmov 0   ;;  %v5563_v1 = vmov 0.0   ;;  %s168_s21 = sld [smem:[#allocation3 + %s5621_s20]]  ;;  %v5564_v2 = vmov 0   ;;  %p159_p10 = scmp.lt.s32.totalorder %s5621_s20, 1 }
  0x44   : > { %5536 = vsyncadd (%p6089_p5), [#allocation5], 4294944384  ;;  %4888 = vmatprep.subr.bf16.mxu0 %v5561_v0  ;;  %4432 = vmatprep.mubr.msk.f32.mxu0 %vm5562_vm0, %v5563_v1  ;;  %v280_v3 = vld [vmem:[#allocation4 + $0x50] sm:$0xff]  ;;  %v281_v4 = vld [vmem:[#allocation4 + $0x58] sm:$0xff]  ;;  %v5565_v27 = vmov 683565275  }
  0x45   : > { %5306 = vset.pattern.permute.xlu0 %v5564_v2  ;;  %4894 = vmatprep.subr.bf16.mxu1 %v5561_v0  ;;  %s160_s23 = scalar_select %p159_p10, %s5621_s20, 1  ;;  %v282_v5 = vld [vmem:[#allocation4 + $0x60] sm:$0xff]  ;;  %v4889_v6 = vpack.c.bf16 %v281_v4, %v280_v3  ;;  %v283_v7 = vld [vmem:[#allocation4 + $0x68] sm:$0xff]  ;;  %v5566_v29 = vmov 2475754826   ;;  %vm285_vm14 = vcmask 261120  }
  0x46   : > { %4467 = vmatprep.mubr.msk.f32.mxu1 %vm5562_vm0, %v5563_v1  ;;  %v171_v8 = vld [vmem:[#allocation4] sm:$0x1]  ;;  %v4892_v10 = vpack.c.bf16 %v283_v7, %v282_v5  ;;  %v174_v12 = vld [vmem:[#allocation4 + $0x8] sm:$0x1]  ;;  %v5567_v31 = vmov 2131351028  }
  0x47   : > { %s4174_s28 = sshll.u32 %s160_s23, 4  ;;  %4890 = vmatpush3.bf16.msra.mxu0 %v4889_v6  ;;  %v5568_v33 = vmov 2102212464   ;;  %v5569_v35 = vmov 920167782   ;;  %vm480_vm0 = vcmask 130048  }
  0x48   : > { %s163_s4 = scalar_lea.vmem %s6077_s1, %s4174_s28  ;;  %4891 = vmatprep.subr.bf16.mxu0 %v5561_v0  ;;  %v5570_v42 = vmov 1326507024   ;;  %s5571_s6 = smov 64  }
  0x49   : > { %s169_s24 = scvt.s32.f32 %s168_s21  ;;  %v460_v9 = vld [vmem:[%s163_s4] sm:$0xff]  ;;  %v461_v13 = vld [vmem:[%s163_s4 + $0x8] sm:$0xff]  ;;  %s5572_s7 = smov 96  }
  0x4a   : > { %465 = vperm.xlu0 %5306, %v460_v9   ;;  %s5573_s8 = smov 32   ;;  %s156_s9 = sand.u32 1, %s5547_s18  }
  0x4b   : > { %s170_s5 = smul.f32 4.0, %s169_s24  ;;  %4893 = vmatpush3.bf16.msra.mxu0 %v4892_v10  ;;  %s4068_s10 = sshll.u32 %s156_s9, 4 }
  0x4c   : > { %s158_s11 = scalar_lea.vmem [#allocation7], %s4068_s10  ;;  %s4175_s13 = sshll.u32 %s5621_s20, 8 }
  0x4d   : > { %v172_v11 = vstv %s170_s5  ;;  %s3988_s12 = sshll.u32 %s158_s11, 4  ;;  %s6033_s16 = scalar_lea.hbm %s6079_s3, %s4175_s13  ;;  %s6028_s12 = int_to_ptr.vmem [resolvable:$true] %s3988_s12 }
  0x4e   : > { %v173_v14 = vmul.f32 %v172_v11, %v171_v8  ;;  %468 = vperm.xlu0 %5306, %v461_v13   ;;  %s6035_s21 = scalar_lea.sflag [#allocation6], %s156_s9  ;;  %s5487_s23 = scalar_lea.vmem %s6028_s12, 256 }
  0x4f   : > { %p5488_p11 = scmp.ne.s32.totalorder %s6028_s12, %s5487_s23  ;;  %p6090_p0 = scmp.ne.s32.totalorder %s6083_s26, 0 }
  0x50   : > { %v5694_v15 = vadd.f32 %v174_v12, %v173_v14  ;;  %s5574_s20 = smov [#allocation7]  }
  0x51   : > { %p5489_p1 = pnand %p5488_p11, %p6090_p0  ;;  %s5491_s24 = sshll.u32 %s5574_s20, 4  ;;  %s5492_s24 = int_to_ptr.vmem [resolvable:$false] %s5491_s24 }
  0x52   : > { %v179_v16 = vand.u32 2139095040, %v5694_v15  ;;  %v176_v18 = vand.u32 2147483647, %v5694_v15  ;;  %vm178_vm8 = vcmp.lt.s32.totalorder %v5694_v15, 0  ;;  %vm268_vm13 = vweird.f32 %v5694_v15  ;;  %s5493_s28 = scalar_lea.vmem %s5492_s24, 512  ;;  %p5494_p7 = scmp.lt.s32.totalorder %s6028_s12, %s5492_s24 }
  0x53   : > { %p5490_p3 = pneg %p5489_p1  ;;  %p5495_p8 = scmp.lt.s32.totalorder %s5493_s28, %s5487_s23 }
  0x54   : > { %v180_v17 = vshrl.u32 %v179_v16, 23  ;;  %v183_v21 = vand.u32 8388607, %v176_v18  ;;  %vm177_vm9 = vcmp.le.f32.partialorder %v176_v18, 0.7853982 }
  0x55   : > { %p5496_p9 = por %p5495_p8, %p5494_p7 }
  0x56   : > { %v4071_v19 = vadd.s32 4294967169, %v180_v17  ;;  %v184_v24 = vor.u32 8388608, %v183_v21 }
  0x57   : > { %p5497_p12 = pnand %p5496_p9, %p5490_p3 }
  0x58   : > { %v186_v20 = vadd.s32 1, %v4071_v19  ;;  %v224_v44 = vshll.u32 %v184_v24, 8 }
  0x5a   : > { %vm187_vm1 = vcmp.gt.s32.totalorder %v186_v20, 0 }
  0x5b   : > { %v188_v22 = vsel %vm187_vm1, %v186_v20, 0 }
  0x5c   : > { %v190_v23 = vand.u32 31, %v188_v22  ;;  %v189_v25 = vshrl.u32 %v188_v22, 5 }
  0x5e   : > { %v191_v26 = vsub.s32 32, %v190_v23  ;;  %v193_v28 = vshll.u32 %v5565_v27, %v190_v23  ;;  %v196_v30 = vshll.u32 %v5566_v29, %v190_v23  ;;  %v199_v32 = vshll.u32 %v5567_v31, %v190_v23 }
  0x5f   : > { %v202_v34 = vshll.u32 %v5568_v33, %v190_v23  ;;  %v205_v36 = vshll.u32 %v5569_v35, %v190_v23  ;;  %vm208_vm2 = vcmp.lt.s32.totalorder %v189_v25, 1  ;;  %vm211_vm3 = vcmp.lt.s32.totalorder %v189_v25, 4 }
  0x60   : > { %v192_v37 = vshrl.u32 %v5565_v27, %v191_v26  ;;  %v194_v38 = vshrl.u32 %v5566_v29, %v191_v26  ;;  %v197_v39 = vshrl.u32 %v5567_v31, %v191_v26  ;;  %v200_v40 = vshrl.u32 %v5568_v33, %v191_v26 }
  0x61   : > { %v203_v41 = vshrl.u32 %v5569_v35, %v191_v26  ;;  %v206_v43 = vshrl.u32 %v5570_v42, %v191_v26  ;;  %vm209_vm4 = vcmp.lt.s32.totalorder %v189_v25, 2  ;;  %vm210_vm5 = vcmp.lt.s32.totalorder %v189_v25, 3 }
  0x62   : > { %v195_v45 = vor.u32 %v194_v38, %v193_v28  ;;  %v198_v46 = vor.u32 %v197_v39, %v196_v30  ;;  %v201_v47 = vor.u32 %v200_v40, %v199_v32 }
  0x63   : > { %v204_v48 = vor.u32 %v203_v41, %v202_v34  ;;  %v207_v49 = vor.u32 %v206_v43, %v205_v36 }
  0x64   : > { %v212_v50 = vsel %vm208_vm2, %v192_v37, %v195_v45  ;;  %v213_v51 = vsel %vm211_vm3, %v201_v47, 2102212464  ;;  %v216_v52 = vsel %vm208_vm2, %v195_v45, %v198_v46  ;;  %v220_v53 = vsel %vm208_vm2, %v198_v46, %v201_v47 }
  0x65   : > { %v214_v54 = vsel %vm210_vm5, %v198_v46, %v213_v51  ;;  %v217_v55 = vsel %vm211_vm3, %v204_v48, 920167782  ;;  %v221_v56 = vsel %vm211_vm3, %v207_v49, 1326507024  ;;  %v373_v46 = vld [vmem:[#allocation4 + $0x78] sm:$0xff]  ;;  %v375_v49 = vld [vmem:[#allocation4 + $0x88] sm:$0xff] }
  0x66   : > { %v218_v57 = vsel %vm210_vm5, %v201_v47, %v217_v55  ;;  %v222_v58 = vsel %vm210_vm5, %v204_v48, %v221_v56  ;;  %v215_v59 = vsel %vm209_vm4, %v212_v50, %v214_v54  ;;  %v374_v47 = vld [vmem:[#allocation4 + $0x80] sm:$0xff]  ;;  %v376_v50 = vld [vmem:[#allocation4 + $0x90] sm:$0xff]  ;;  %v462_v54 = vlaneseq  ;;  %v379_v56 = vld [vmem:[#allocation4 + $0xa8] sm:$0xff] }
  0x67   : > { %v219_v60 = vsel %vm209_vm4, %v216_v52, %v218_v57  ;;  %v223_v61 = vsel %vm209_vm4, %v220_v53, %v222_v58  ;;  %v231_v4 = vmul.u32 %v224_v44, %v215_v59  ;;  %v4895_v48 = vpack.c.bf16 %v374_v47, %v373_v46  ;;  %v377_v52 = vld [vmem:[#allocation4 + $0x98] sm:$0xff]  ;;  %v378_v53 = vld [vmem:[#allocation4 + $0xa0] sm:$0xff]  ;;  %v380_v57 = vld [vmem:[#allocation4 + $0xb0] sm:$0xff] }
  0x68   : > { %v5700_v62 = vmul.u32.u64.low %v224_v44, %v223_v61  ;;  %v5701_v63 = vmul.u32.u64.high %v224_v44, %v223_v61, %v5700_v62  ;;  %v5703_v2 = vmul.u32.u64.low %v224_v44, %v219_v60  ;;  %v5704_v3 = vmul.u32.u64.high %v224_v44, %v219_v60, %v5703_v2  ;;  %v476_v59 = vld [vmem:[#allocation4 + $0x40] sm:$0xff]  ;;  %v477_v60 = vld [vmem:[#allocation4 + $0x48] sm:$0xff] }
  0x69   : > { %4896 = vmatpush3.bf16.msra.mxu1 %v4895_v48  ;;  %v4898_v51 = vpack.c.bf16 %v376_v50, %v375_v49  ;;  %v4901_v55 = vpack.c.bf16 %v378_v53, %v377_v52  ;;  %v463_v58 = vand.u32 127, %v462_v54  ;;  %v4918_v61 = vpack.c.bf16 %v477_v60, %v476_v59  ;;  %v613_v60 = vld [vmem:[#allocation4 + $0x158] sm:$0xff] }
  0x6a   : > { %vm233_vm6 = vc.u32 %v5701_v63, %v5703_v2  ;;  %v234_v5 = vadd.s32 1, %v5704_v3  ;;  %v232_v17 = vadd.s32 %v5703_v2, %v5701_v63  ;;  %4897 = vmatprep.subr.bf16.mxu1 %v5561_v0  ;;  %v4904_v63 = vpack.c.bf16 %v380_v57, %v379_v56  ;;  %v611_v57 = vld [vmem:[#allocation4 + $0x148] sm:$0xff] }
  0x6b   : > { %4919 = vmatprep.subr.bf16.mxu0 %v4918_v61  ;;  %vm793_vm4 = vcmask 523520  }
  0x6c   : > { %v235_v6 = vsel %vm233_vm6, %v234_v5, %v5704_v3  ;;  %v381_v3 = vld [vmem:[#allocation4 + $0xb8] sm:$0xff] }
  0x6d   : > { %v236_v7 = vadd.s32 %v235_v6, %v231_v4  ;;  %4899 = vmatpush3.bf16.msra.mxu1 %v4898_v51  ;;  %v382_v4 = vld [vmem:[#allocation4 + $0xc0] sm:$0xff] }
  0x6e   : > { %4900 = vmatprep.subr.bf16.mxu1 %v5561_v0  ;;  %v4907_v6 = vpack.c.bf16 %v382_v4, %v381_v3 }
  0x6f   : > { %v237_v8 = vadd.s32 536870912, %v236_v7 }
  0x71   : > { %v238_v9 = vshrl.u32 %v237_v8, 30  ;;  %4902 = vmatpush3.bf16.msra.mxu1 %v4901_v55  ;;  %v384_v8 = vld [vmem:[#allocation4 + $0xd0] sm:$0xff] }
  0x72   : > { %4903 = vmatprep.subr.bf16.mxu1 %v5561_v0 }
  0x73   : > { %v239_v10 = vshll.u32 %v238_v9, 30  ;;  %v262_v30 = vsub.s32 4, %v238_v9 }
  0x75   : > { %v240_v11 = vsub.s32 %v236_v7, %v239_v10  ;;  %v263_v33 = vsel %vm178_vm8, %v262_v30, %v238_v9  ;;  %4905 = vmatpush3.bf16.msra.mxu1 %v4904_v63  ;;  %v383_v7 = vld [vmem:[#allocation4 + $0xc8] sm:$0xff]  ;;  %v385_v10 = vld [vmem:[#allocation4 + $0xd8] sm:$0xff] }
  0x76   : > { %v265_v36 = vsel %vm177_vm9, 0, %v263_v33  ;;  %4906 = vmatprep.subr.bf16.mxu1 %v5561_v0  ;;  %v4910_v9 = vpack.c.bf16 %v384_v8, %v383_v7  ;;  %v4080_v8 = vld [vmem:[#allocation4 + $0x138] ss:$0 sm:$0xff] }
  0x77   : > { %v242_v12 = vsub.s32 0, %v240_v11  ;;  %v269_v37 = vadd.s32 3, %v265_v36 }
  0x79   : > { %v4072_v13 = vmin.u32 %v242_v12, %v240_v11  ;;  %v270_v38 = vand.u32 3, %v269_v37  ;;  %4908 = vmatpush3.bf16.msra.mxu1 %v4907_v6  ;;  %v478_v37 = vld [vmem:[#allocation4 + $0x30] sm:$0xff] }
  0x7a   : > { %4909 = vmatprep.subr.bf16.mxu1 %v5561_v0 }
  0x7b   : > { %v244_v14 = vclz %v4072_v13  ;;  %vm275_vm10 = vcmp.eq.s32.totalorder %v270_v38, 2  ;;  %vm272_vm11 = vcmp.eq.s32.totalorder %v270_v38, 0  ;;  %vm271_vm12 = vcmp.lt.s32.totalorder %v270_v38, 2  ;;  %v388_v13 = vld [vmem:[#allocation4 + $0xf0] sm:$0xff] }
  0x7d   : > { %v4073_v16 = vadd.s32 4294967294, %v244_v14  ;;  %4911 = vmatpush3.bf16.msra.mxu1 %v4910_v9 }
  0x7e   : > { %4912 = vmatprep.subr.bf16.mxu1 %v5561_v0 }
  0x7f   : > { %vm4074_vm7 = vcmp.lt.s32.totalorder %v4073_v16, 0 }
  0x80   : > { %v247_v19 = vsel %vm4074_vm7, 0, %v4073_v16  ;;  %v284_v16 = vld [vmem:[#allocation4 + $0x70] sm:$0x1] }
  0x81   : > { %v248_v20 = vsub.s32 32, %v247_v19  ;;  %v249_v21 = vshll.u32 %v240_v11, %v247_v19  ;;  %v252_v22 = vsub.s32 4294967266, %v247_v19  ;;  %v386_v11 = vld [vmem:[#allocation4 + $0xe0] sm:$0xff] }
  0x82   : > { %v4913_v12 = vpack.c.bf16 %v386_v11, %v385_v10  ;;  %v4081_v10 = vld [vmem:[#allocation4 + $0x140] ss:$0 sm:$0xff] }
  0x83   : > { %v250_v23 = vshrl.u32 %v232_v17, %v248_v20  ;;  %v253_v24 = vadd.s32 127, %v252_v22 }
  0x84   : > { %4914 = vmatpush3.bf16.msra.mxu1 %v4913_v12 }
  0x85   : > { %v251_v25 = vor.u32 %v250_v23, %v249_v21  ;;  %v254_v26 = vshll.u32 %v253_v24, 23  ;;  %4915 = vmatprep.subr.bf16.mxu1 %v5561_v0 }
  0x87   : > { %v255_v27 = vor.u32 4788187, %v254_v26  ;;  %v258_v28 = vcvt.s32.f32 %v251_v25 }
  0x89   : > { %v256_v29 = vand.u32 2147483647, %v255_v27 }
  0x8b   : > { %v259_v31 = vmul.f32 %v258_v28, %v256_v29 }
  0x8d   : > { %v260_v32 = vxor.u32 2147483648, %v259_v31 }
  0x8f   : > { %v261_v34 = vsel %vm178_vm8, %v260_v32, %v259_v31 }
  0x90   : > { %v264_v35 = vsel %vm177_vm9, %v5694_v15, %v261_v34  ;;  %v565_v34 = vshrl.u32 %v462_v54, 7 }
  0x91   : > { %5327 = vcosq.f32 %v264_v35 }
  0x92   : > { %5329 = vsinq.f32 %v264_v35  ;;  %v389_v35 = vld [vmem:[#allocation4 + $0xf8] sm:$0x1]  ;;  %v566_v36 = vsub.s32 0, %v565_v34 }
  0x9b   : > { %v5328_v39 = vpop.eup %5327 }
  0x9c   : > { %v5330_v40 = vpop.eup %5329  ;;  %v276_v41 = vxor.u32 2147483648, %v5328_v39 }
  0x9d   : > { %v273_v42 = vxor.u32 2147483648, %v5330_v40 }
  0x9e   : > { %v277_v18 = vsel %vm275_vm10, %v276_v41, %v5330_v40  ;;  %v479_v41 = vld [vmem:[#allocation4 + $0x38] sm:$0xff] }
  0x9f   : > { %v274_v43 = vsel %vm272_vm11, %v5328_v39, %v273_v42 }
  0xa0   : > { %v278_v44 = vsel %vm271_vm12, %v274_v43, %v277_v18 }
  0xa1   : > { %v279_v45 = vsel %vm268_vm13, nan, %v278_v44 }
  0xa2   : > { %4433 = vmatmul.mubr.msk.f32.vlgmr.msra.gmra.mrb[0].mxu0 %vm285_vm14, %v279_v45 }
  0xa3   : > { %4921 = vmatpush3.bf16.msra.mxu0 %v4918_v61  ;;  %v614_v61 = vld [vmem:[#allocation4 + $0x160] sm:$0xff] }
  0xc9   : > { %v466_v15 = vpop.permute.xlu0 %465 }
  0xca   : > { %vm470_vm15 = vcmp.eq.s32.totalorder %v463_v58, %v466_v15 }
  0xcb   : > { %v4076_v2 = vsel %vm470_vm15, 1.0, %v5563_v1 }
  0xcc   : > { %4474 = vmatprep.mubr.msk.f32.mxu0 %vm480_vm0, %v4076_v2 }
  0xcd   : > { %v469_v62 = vpop.permute.xlu0 %468 }
  0xce   : > { %vm471_vm1 = vcmp.eq.s32.totalorder %v463_v58, %v469_v62  ;;  %v612_v58 = vld [vmem:[#allocation4 + $0x150] sm:$0xff]  ;;  %v4926_v62 = vpack.c.bf16 %v614_v61, %v613_v60 }
  0xcf   : > { %v4077_v5 = vsel %vm471_vm1, 1.0, %v5563_v1  ;;  %v387_v1 = vld [vmem:[#allocation4 + $0xe8] sm:$0xff]  ;;  %v4922_v59 = vpack.c.bf16 %v612_v58, %v611_v57 }
  0xd0   : > { %4475 = vmatmul.mubr.msk.f32.vlgmr.msra.gmra.mrb[2].mxu0 %vm480_vm0, %v4077_v5  ;;  %v4916_v14 = vpack.c.bf16 %v388_v13, %v387_v1 }
  0xd1   : > { %4923 = vmatprep.subr.bf16.mxu0 %v4922_v59 }
  0xd2   : > { %4917 = vmatpush3.bf16.msra.mxu1 %v4916_v14  ;;  %4925 = vmatpush3.bf16.msra.mxu0 %v4922_v59 }
  0xd3   : > { %4927 = vmatprep.subr.bf16.mxu0 %v4926_v62 }
  0xd6   : > { %4929 = vmatpush3.bf16.msra.mxu0 %v4926_v62 }
 0x175   : > { %v355_v17 = vpop.f32.mrb[0].mxu0 }
 0x176   : > { %v356_v19 = vadd.f32 %v355_v17, %v284_v16  ;;  %v4434_v20 = vpop.f32.mrb[1].mxu0 }
 0x178   : > { %v360_v21 = vmin.f32 %v356_v19, 20.0  ;;  %vm359_vm3 = vcmp.gt.f32.partialorder %v356_v19, 20.0 }
 0x17a   : > { %v361_v22 = vmul.f32 1.442695, %v360_v21 }
 0x17c   : > { %5331 = vpow2.f32 %v361_v22 }
 0x186   : > { %v5332_v23 = vpop.eup %5331 }
 0x187   : > { %v363_v24 = vadd.f32 1.0, %v5332_v23  ;;  %v366_v25 = vmul.f32 -0.5, %v5332_v23  ;;  %v369_v27 = vand.u32 2147483647, %v5332_v23 }
 0x189   : > { %5333 = vlog2.f32 %v363_v24  ;;  %v367_v26 = vadd.f32 1.0, %v366_v25  ;;  %vm370_vm2 = vcmp.lt.f32.partialorder %v369_v27, 0.0004427343 }
 0x18b   : > { %v368_v30 = vmul.f32 %v5332_v23, %v367_v26 }
 0x193   : > { %v5334_v28 = vpop.eup %5333 }
 0x194   : > { %v365_v29 = vmul.f32 0.6931472, %v5334_v28 }
 0x196   : > { %v371_v0 = vsel %vm370_vm2, %v368_v30, %v365_v29 }
 0x197   : > { %v372_v31 = vsel %vm359_vm3, %v356_v19, %v371_v0  ;;  %v5765_v0 = vld [vmem:[#allocation4 + $0x10] sm:$0xff] }
 0x198   : > { %4468 = vmatmul.mubr.f32.vlgmr.msra.gmra.mrb[0].mxu1 %v372_v31  ;;  %v5767_v31 = vld [vmem:[#allocation4 + $0x18] sm:$0xff] }
 0x199   : > { %v5773_v34 = vpack.c.bf16 %v5767_v31, %v5765_v0 }
 0x19b   : > { %4931 = vmatprep.subr.bf16.mxu0 %v5773_v34 }
 0x1a3   : > { %v4476_v32 = vpop.f32.mrb[2].mxu0 }
 0x1a4   : > { %v553_v33 = vpop.f32.mrb[3].mxu0  ;;  %v5733_v43 = vadd.f32 %v4476_v32, %v479_v41 }
 0x1a5   : > { %v5729_v42 = vadd.f32 %v553_v33, %v478_v37  ;;  %v5777_v37 = vld [vmem:[#allocation4 + $0x20] sm:$0xff] }
 0x26b   : > { %v456_v38 = vpop.f32.mrb[0].mxu1 }
 0x26c   : > { %v457_v39 = vadd.f32 %v456_v38, %v389_v35  ;;  %v4469_v40 = vpop.f32.mrb[1].mxu1  ;;  %v5779_v38 = vld [vmem:[#allocation4 + $0x28] sm:$0xff] }
 0x26e   : > { %v5731_v18 = vrot.slane %v457_v39, %v566_v36  ;;  %v5783_v39 = vpack.c.bf16 %v5779_v38, %v5777_v37 }
 0x270   : > { %v5737_v44 = vadd.f32 %v5731_v18, %v5729_v42  ;;  %v5743_v46 = vadd.f32 %v5731_v18, %v5733_v43 }
 0x272   : > { %v572_v45 = vsel %vm285_vm14, %v5737_v44, 0.0  ;;  %v575_v47 = vsel %vm285_vm14, %v5743_v46, 0.0 }
 0x273   : > { %573 = vadd.xlane.f32.xlu1 %v572_v45 }
 0x277   : > { %576 = vadd.xlane.f32.xlu1 %v575_v47 }
 0x300   : > { %v574_v48 = vpop.xlane.xlu1 %573 }
 0x301   : > { %v579_v49 = vmul.f32 0.03125, %v574_v48 }
 0x303   : > { %v581_v50 = vsub.f32 %v5737_v44, %v579_v49 }
 0x304   : > { %v577_v51 = vpop.xlane.xlu1 %576 }
 0x305   : > { %v580_v52 = vmul.f32 0.03125, %v577_v51  ;;  %v583_v53 = vmul.f32 %v581_v50, %v581_v50 }
 0x307   : > { %v582_v54 = vsub.f32 %v5743_v46, %v580_v52  ;;  %v585_v15 = vsel %vm285_vm14, %v583_v53, 0.0 }
 0x308   : > { %586 = vadd.xlane.f32.xlu0 %v585_v15 }
 0x309   : > { %v584_v55 = vmul.f32 %v582_v54, %v582_v54 }
 0x30b   : > { %v588_v56 = vsel %vm285_vm14, %v584_v55, 0.0 }
 0x30c   : > { %589 = vadd.xlane.f32.xlu1 %v588_v56 }
 0x395   : > { %v587_v63 = vpop.xlane.xlu0 %586 }
 0x396   : > { %v591_v2 = vmul.f32 0.03125, %v587_v63 }
 0x398   : > { %v593_v3 = vadd.f32 1e-05, %v591_v2 }
 0x399   : > { %v590_v4 = vpop.xlane.xlu1 %589 }
 0x39a   : > { %5335 = vrsqrt.f32 %v593_v3  ;;  %v592_v5 = vmul.f32 0.03125, %v590_v4 }
 0x39c   : > { %v594_v6 = vadd.f32 1e-05, %v592_v5 }
 0x39e   : > { %5337 = vrsqrt.f32 %v594_v6 }
 0x3a4   : > { %v5336_v7 = vpop.eup %5335 }
 0x3a5   : > { %v597_v9 = vmul.f32 %v5336_v7, %v581_v50 }
 0x3a7   : > { %v603_v11 = vmul.f32 %v4080_v8, %v597_v9 }
 0x3a8   : > { %v5338_v12 = vpop.eup %5337 }
 0x3a9   : > { %v598_v1 = vmul.f32 %v5338_v12, %v582_v54  ;;  %v609_v13 = vadd.f32 %v4081_v10, %v603_v11 }
 0x3ab   : > { %v604_v14 = vmul.f32 %v4080_v8, %v598_v1  ;;  %4485 = vmatprep.mubr.msk.f32.mxu0 %vm285_vm14, %v609_v13 }
 0x3ad   : > { %v610_v16 = vadd.f32 %v4081_v10, %v604_v14 }
 0x3af   : > { %4486 = vmatmul.mubr.msk.f32.vlgmr.msra.gmra.mrb[4].mxu0 %vm285_vm14, %v610_v16 }
 0x3b0   : > { %4933 = vmatpush3.bf16.msra.mxu0 %v5773_v34 }
 0x3b1   : > { %4935 = vmatprep.subr.bf16.mxu0 %v5783_v39 }
 0x3b4   : > { %4937 = vmatpush3.bf16.msra.mxu0 %v5783_v39 }
 0x482   : > { %v5753_v17 = vpop.f32.mrb[4].mxu0 }
 0x483   : > { %v795_v19 = vsel %vm793_vm4, %v5753_v17, -inf  ;;  %v5757_v20 = vpop.f32.mrb[5].mxu0  ;;  %v699_v21 = vsel %vm285_vm14, %v5753_v17, -inf }
 0x484   : > { %v794_v22 = vsel %vm793_vm4, %v5757_v20, -inf  ;;  %700 = vmax.xlane.f32.xlu0 %v699_v21  ;;  %v5307_v23 = vpack.i.bf16 %v5753_v17, %v5757_v20  ;;  %v696_v57 = vsel %vm285_vm14, %v5757_v20, -inf }
 0x485   : > { %v796_v24 = vmax.f32 %v794_v22, %v795_v19 }
 0x487   : > { %v797_v25 = vrot.slane %v796_v24, 4 }
 0x489   : > { %v798_v26 = vmax.f32 %v796_v24, %v797_v25 }
 0x48b   : > { %v799_v27 = vrot.slane %v798_v26, 2 }
 0x48d   : > { %v800_v28 = vmax.f32 %v798_v26, %v799_v27  ;;  %v1051_v27 = vld [vmem:[#allocation4 + $0x168] sm:$0xff] }
 0x48f   : > { %v801_v29 = vrot.slane %v800_v28, 1 }
 0x491   : > { %v802_v30 = vmax.f32 %v800_v28, %v801_v29  ;;  %v1052_v28 = vld [vmem:[#allocation4 + $0x170] sm:$0xff] }
 0x493   : > { %v803_v32 = vsub.f32 %v5757_v20, %v802_v30  ;;  %v804_v33 = vsub.f32 %v5753_v17, %v802_v30 }
 0x495   : > { %v805_v35 = vmul.f32 1.442695, %v803_v32  ;;  %v807_v36 = vmul.f32 1.442695, %v804_v33  ;;  %v4950_v32 = vpack.c.bf16 %v1052_v28, %v1051_v27  ;;  %v4096_v27 = vld [vmem:[#allocation4 + $0x198] ss:$0 sm:$0xff] }
 0x497   : > { %5339 = vpow2.f32 %v805_v35  ;;  %v1053_v35 = vld [vmem:[#allocation4 + $0x178] sm:$0xff] }
 0x498   : > { %5341 = vpow2.f32 %v807_v36  ;;  %v1054_v36 = vld [vmem:[#allocation4 + $0x180] sm:$0xff] }
 0x49a   : > { %5308 = vrot.lane.b32.xlu0 %v5307_v23, %s5571_s6 }
 0x4a1   : > { %v5340_v40 = vpop.eup %5339 }
 0x4a2   : > { %v5342_v41 = vpop.eup %5341  ;;  %v809_v45 = vsel %vm793_vm4, %v5340_v40, 0.0 }
 0x4a3   : > { %v810_v47 = vsel %vm793_vm4, %v5342_v41, 0.0 }
 0x4a4   : > { %v811_v48 = vadd.f32 %v810_v47, %v809_v45 }
 0x4a6   : > { %v812_v49 = vrot.slane %v811_v48, 4 }
 0x4a8   : > { %v813_v50 = vadd.f32 %v812_v49, %v811_v48  ;;  %v4094_v49 = vld [vmem:[#allocation4 + $0x188] ss:$0 sm:$0xff] }
 0x4aa   : > { %v814_v51 = vrot.slane %v813_v50, 2 }
 0x4ac   : > { %v815_v52 = vadd.f32 %v814_v51, %v813_v50 }
 0x4ae   : > { %v816_v53 = vrot.slane %v815_v52, 1 }
 0x4b0   : > { %v817_v54 = vadd.f32 %v816_v53, %v815_v52 }
 0x4b2   : > { %5343 = vrcp.f32 %v817_v54 }
 0x4bc   : > { %v5344_v15 = vpop.eup %5343 }
 0x4bd   : > { %v819_v55 = vmul.f32 %v5344_v15, %v5340_v40  ;;  %v820_v56 = vmul.f32 %v5344_v15, %v5342_v41  ;;  %v4954_v41 = vpack.c.bf16 %v1054_v36, %v1053_v35  ;;  %v1291_v36 = vld [vmem:[#allocation4 + $0x1f8] sm:$0xff] }
 0x4bf   : > { %823 = vrot.lane.b32.xlu1 %v819_v55, %s5572_s7 }
 0x4c3   : > { %825 = vrot.lane.b32.xlu1 %v820_v56, %s5572_s7 }
 0x4e7   : > { %697 = vmax.xlane.f32.xlu1 %v696_v57 }
 0x511   : > { %v701_v58 = vpop.xlane.xlu0 %700 }
 0x512   : > { %v703_v59 = vsub.f32 %v5753_v17, %v701_v58 }
 0x514   : > { %v706_v6 = vmul.f32 1.442695, %v703_v59 }
 0x515   : > { %v5309_v60 = vpop.permute.xlu0 %5308 }
 0x516   : > { %v5311_v61 = vunpack.i.h.bf16 %v5309_v60  ;;  %v5310_v62 = vunpack.i.l.bf16 %v5309_v60 }
 0x518   : > { %v4938_v63 = vpack.c.bf16 %v5311_v61, %v5310_v62 }
 0x51a   : > { %4939 = vmatprep.subr.bf16.mxu0 %v4938_v63 }
 0x531   : > { %v824_v2 = vpop.permute.xlu1 %823 }
 0x532   : > { %829 = vxpose.xlu0.b32.start [1/2] (short) (narrow) %v824_v2, 32  ;;  %v1185_v2 = vld [vmem:[#allocation4 + $0x1a0] sm:$0xff] }
 0x535   : > { %v826_v3 = vpop.permute.xlu1 %825 }
 0x536   : > { %830 = vxpose.xlu0.b32.end [2/2] (short) (narrow) %v826_v3, 32  ;;  %v1186_v3 = vld [vmem:[#allocation4 + $0x1a8] sm:$0xff] }
 0x574   : > { %v698_v4 = vpop.xlane.xlu1 %697 }
 0x575   : > { %v702_v5 = vsub.f32 %v5757_v20, %v698_v4  ;;  %v4958_v4 = vpack.c.bf16 %v1186_v3, %v1185_v2 }
 0x577   : > { %v704_v7 = vmul.f32 1.442695, %v702_v5  ;;  %v1187_v5 = vld [vmem:[#allocation4 + $0x1b0] sm:$0xff] }
 0x579   : > { %5345 = vpow2.f32 %v704_v7 }
 0x57a   : > { %5347 = vpow2.f32 %v706_v6  ;;  %v1188_v6 = vld [vmem:[#allocation4 + $0x1b8] sm:$0xff] }
 0x57b   : > { %v4962_v7 = vpack.c.bf16 %v1188_v6, %v1187_v5 }
 0x583   : > { %v5346_v8 = vpop.eup %5345 }
 0x584   : > { %v5348_v9 = vpop.eup %5347  ;;  %4496 = vmatprep.mubr.msk.f32.mxu0 %vm285_vm14, %v5346_v8 }
 0x585   : > { %4497 = vmatmul.mubr.msk.f32.vlgmr.msra.gmra.mrb[6].mxu0 %vm285_vm14, %v5348_v9 }
 0x586   : > { %4941 = vmatpush3.bf16.msra.mxu0 %v4938_v63 }
 0x5b2   : > { %v845_v10 = vpop.trf.xlu0 }
 0x5b3   : > { %4503 = vmatprep.mubr.msk.f32.mxu0 %vm480_vm0, %v845_v10  ;;  %v1287_v10 = vld [vmem:[#allocation4 + $0x1d8] sm:$0xff] }
 0x5b6   : > { %v846_v11 = vpop.trf.xlu0 }
 0x5b7   : > { %4504 = vmatmul.mubr.msk.f32.vlgmr.msra.gmra.mrb[8].mxu0 %vm480_vm0, %v846_v11 }
 0x5ba   : > { %v847_v12 = vpop.trf.xlu0 }
 0x5bb   : > { %4506 = vmatprep.mubr.msk.f32.mxu0 %vm480_vm0, %v847_v12  ;;  %v1288_v12 = vld [vmem:[#allocation4 + $0x1e0] sm:$0xff] }
 0x5be   : > { %v848_v1 = vpop.trf.xlu0 }
 0x5bf   : > { %4507 = vmatmul.mubr.msk.f32.gmra.mrb[10].mxu0 %vm480_vm0, %v848_v1  ;;  %v4970_v1 = vpack.c.bf16 %v1288_v12, %v1287_v10 }
 0x658   : > { %v4498_v13 = vpop.f32.mrb[6].mxu0 }
 0x659   : > { %v780_v14 = vpop.f32.mrb[7].mxu0 }
 0x65a   : > { %5349 = vrcp.f32 %v780_v14  ;;  %v1290_v14 = vld [vmem:[#allocation4 + $0x1f0] sm:$0xff] }
 0x65b   : > { %5351 = vrcp.f32 %v4498_v13  ;;  %v1289_v13 = vld [vmem:[#allocation4 + $0x1e8] sm:$0xff] }
 0x664   : > { %v5350_v16 = vpop.eup %5349 }
 0x665   : > { %v791_v17 = vmul.f32 %v5350_v16, %v5346_v8  ;;  %v5352_v33 = vpop.eup %5351  ;;  %v1285_v8 = vld [vmem:[#allocation4 + $0x1c8] sm:$0xff]  ;;  %v4974_v16 = vpack.c.bf16 %v1290_v14, %v1289_v13 }
 0x666   : > { %v792_v40 = vmul.f32 %v5352_v33, %v5348_v9  ;;  %v1286_v9 = vld [vmem:[#allocation4 + $0x1d0] sm:$0xff] }
 0x667   : > { %4517 = vmatprep.mubr.msk.f32.mxu0 %vm285_vm14, %v791_v17  ;;  %v4966_v11 = vpack.c.bf16 %v1286_v9, %v1285_v8 }
 0x669   : > { %4967 = vmatprep.subr.bf16.mxu1 %v4966_v11 }
 0x66a   : > { %4969 = vmatpush3.bf16.msra.mxu1 %v4966_v11  ;;  %v4100_v11 = vld [vmem:[#allocation4 + $0x248] ss:$0 sm:$0xff] }
 0x66b   : > { %4971 = vmatprep.subr.bf16.mxu1 %v4970_v1 }
 0x66e   : > { %4973 = vmatpush3.bf16.msra.mxu1 %v4970_v1 }
 0x66f   : > { %4975 = vmatprep.subr.bf16.mxu1 %v4974_v16 }
 0x672   : > { %4977 = vmatpush3.bf16.msra.mxu1 %v4974_v16 }
 0x68a   : > { %v4505_v19 = vpop.f32.mrb[8].mxu0 }
 0x68b   : > { %v967_v20 = vmul.f32 %v4505_v19, %v5767_v31  ;;  %v947_v21 = vpop.f32.mrb[9].mxu0 }
 0x68c   : > { %v966_v22 = vmul.f32 %v947_v21, %v5765_v0 }
 0x68e   : > { %v4942_v23 = vpack.c.bf16 %v967_v20, %v966_v22 }
 0x690   : > { %4943 = vmatprep.subr.bf16.mxu0 %v4942_v23 }
 0x691   : > { %4945 = vmatpush3.bf16.msra.mxu0 %v4942_v23 }
 0x692   : > { %v4508_v24 = vpop.f32.mrb[10].mxu0 }
 0x693   : > { %v969_v25 = vmul.f32 %v4508_v24, %v5779_v38  ;;  %v957_v26 = vpop.f32.mrb[11].mxu0 }
 0x694   : > { %v968_v29 = vmul.f32 %v957_v26, %v5777_v37 }
 0x696   : > { %v4946_v30 = vpack.c.bf16 %v969_v25, %v968_v29  ;;  %v4095_v25 = vld [vmem:[#allocation4 + $0x190] ss:$0 sm:$0xff] }
 0x698   : > { %4947 = vmatprep.subr.bf16.mxu0 %v4946_v30 }
 0x699   : > { %4949 = vmatpush3.bf16.msra.mxu0 %v4946_v30 }
 0x69a   : > { %4951 = vmatprep.subr.bf16.mxu0 %v4950_v32 }
 0x69c   : > { %4518 = vmatmul.mubr.msk.f32.vlgmr.msra.gmra.mrb[12].mxu0 %vm285_vm14, %v792_v40  ;;  %v1292_v40 = vld [vmem:[#allocation4 + $0x200] sm:$0xff] }
 0x69d   : > { %4953 = vmatpush3.bf16.msra.mxu0 %v4950_v32 }
 0x69e   : > { %4955 = vmatprep.subr.bf16.mxu0 %v4954_v41 }
 0x6a1   : > { %4957 = vmatpush3.bf16.msra.mxu0 %v4954_v41  ;;  %v4978_v41 = vpack.c.bf16 %v1292_v40, %v1291_v36  ;;  %v1433_v36 = vld [vmem:[#allocation4 + $0x270] sm:$0xff]  ;;  %v1434_v40 = vld [vmem:[#allocation4 + $0x278] sm:$0xff] }
 0x6a2   : > { %4959 = vmatprep.subr.bf16.mxu0 %v4958_v4 }
 0x6a3   : > { %4979 = vmatprep.subr.bf16.mxu1 %v4978_v41 }
 0x6a4   : > { %4981 = vmatpush3.bf16.msra.mxu1 %v4978_v41  ;;  %v5002_v41 = vpack.c.bf16 %v1434_v40, %v1433_v36 }
 0x76f   : > { %v4519_v45 = vpop.f32.mrb[12].mxu0 }
 0x770   : > { %v1042_v47 = vpop.f32.mrb[13].mxu0 }
 0x771   : > { %4528 = vmatprep.mubr.msk.f32.mxu0 %vm285_vm14, %v1042_v47  ;;  %v1294_v47 = vld [vmem:[#allocation4 + $0x210] sm:$0xff] }
 0x772   : > { %4529 = vmatmul.mubr.msk.f32.vlgmr.msra.gmra.mrb[14].mxu0 %vm285_vm14, %v4519_v45  ;;  %v1293_v45 = vld [vmem:[#allocation4 + $0x208] sm:$0xff] }
 0x773   : > { %4961 = vmatpush3.bf16.msra.mxu0 %v4958_v4 }
 0x774   : > { %4963 = vmatprep.subr.bf16.mxu0 %v4962_v7 }
 0x777   : > { %4965 = vmatpush3.bf16.msra.mxu0 %v4962_v7 }
 0x845   : > { %v4530_v48 = vpop.f32.mrb[14].mxu0 }
 0x846   : > { %v1127_v50 = vpop.f32.mrb[15].mxu0  ;;  %v1137_v51 = vadd.f32 %v4530_v48, %v5743_v46  ;;  %v4982_v48 = vpack.c.bf16 %v1294_v47, %v1293_v45 }
 0x847   : > { %v1136_v52 = vadd.f32 %v1127_v50, %v5737_v44  ;;  %v1296_v50 = vld [vmem:[#allocation4 + $0x220] sm:$0xff] }
 0x848   : > { %v5814_v54 = vadd.f32 %v4094_v49, %v1137_v51  ;;  %4983 = vmatprep.subr.bf16.mxu1 %v4982_v48 }
 0x849   : > { %v5812_v53 = vadd.f32 %v4094_v49, %v1136_v52  ;;  %4985 = vmatpush3.bf16.msra.mxu1 %v4982_v48  ;;  %v1295_v49 = vld [vmem:[#allocation4 + $0x218] sm:$0xff]  ;;  %v1297_v52 = vld [vmem:[#allocation4 + $0x228] sm:$0xff] }
 0x84a   : > { %v1150_v55 = vsel %vm285_vm14, %v5814_v54, 0.0  ;;  %v4986_v51 = vpack.c.bf16 %v1296_v50, %v1295_v49 }
 0x84b   : > { %v1147_v15 = vsel %vm285_vm14, %v5812_v53, 0.0 }
 0x84c   : > { %1148 = vadd.xlane.f32.xlu1 %v1147_v15  ;;  %4987 = vmatprep.subr.bf16.mxu1 %v4986_v51  ;;  %v1298_v15 = vld [vmem:[#allocation4 + $0x230] sm:$0xff] }
 0x84d   : > { %4989 = vmatpush3.bf16.msra.mxu1 %v4986_v51 }
 0x850   : > { %1151 = vadd.xlane.f32.xlu1 %v1150_v55  ;;  %v4990_v55 = vpack.c.bf16 %v1298_v15, %v1297_v52  ;;  %v4101_v15 = vld [vmem:[#allocation4 + $0x250] ss:$0 sm:$0xff] }
 0x852   : > { %4991 = vmatprep.subr.bf16.mxu1 %v4990_v55 }
 0x853   : > { %4993 = vmatpush3.bf16.msra.mxu1 %v4990_v55 }
 0x8d9   : > { %v1149_v56 = vpop.xlane.xlu1 %1148 }
 0x8da   : > { %v1153_v57 = vmul.f32 0.03125, %v1149_v56  ;;  %v1299_v56 = vld [vmem:[#allocation4 + $0x238] sm:$0xff] }
 0x8dc   : > { %v1155_v58 = vsub.f32 %v5812_v53, %v1153_v57  ;;  %v1300_v57 = vld [vmem:[#allocation4 + $0x240] sm:$0xff] }
 0x8dd   : > { %v1152_v59 = vpop.xlane.xlu1 %1151 }
 0x8de   : > { %v1154_v46 = vmul.f32 0.03125, %v1152_v59  ;;  %v1157_v60 = vmul.f32 %v1155_v58, %v1155_v58  ;;  %v4097_v59 = vld [vmem:[#allocation4 + $0x1c0] ss:$0 sm:$0xff] }
 0x8e0   : > { %v1156_v44 = vsub.f32 %v5814_v54, %v1154_v46  ;;  %v1159_v61 = vsel %vm285_vm14, %v1157_v60, 0.0 }
 0x8e1   : > { %1160 = vadd.xlane.f32.xlu1 %v1159_v61 }
 0x8e2   : > { %v1158_v62 = vmul.f32 %v1156_v44, %v1156_v44 }
 0x8e4   : > { %v1162_v63 = vsel %vm285_vm14, %v1158_v62, 0.0 }
 0x8e5   : > { %1163 = vadd.xlane.f32.xlu1 %v1162_v63 }
 0x8f6   : > { %1386 = vrot.lane.b32.xlu1 %v5731_v18, %s5572_s7 }
 0x96e   : > { %v1161_v17 = vpop.xlane.xlu1 %1160 }
 0x96f   : > { %v1165_v19 = vmul.f32 0.03125, %v1161_v17 }
 0x971   : > { %v1167_v20 = vadd.f32 1e-05, %v1165_v19 }
 0x972   : > { %v1164_v21 = vpop.xlane.xlu1 %1163 }
 0x973   : > { %5353 = vrsqrt.f32 %v1167_v20  ;;  %v1166_v22 = vmul.f32 0.03125, %v1164_v21 }
 0x975   : > { %v1168_v23 = vadd.f32 1e-05, %v1166_v22 }
 0x976   : > { %v1387_v16 = vpop.permute.xlu1 %1386 }
 0x977   : > { %5355 = vrsqrt.f32 %v1168_v23 }
 0x97d   : > { %v5354_v24 = vpop.eup %5353 }
 0x97e   : > { %v1171_v26 = vmul.f32 %v5354_v24, %v1155_v58  ;;  %v4994_v58 = vpack.c.bf16 %v1300_v57, %v1299_v56  ;;  %v4102_v56 = vld [vmem:[#allocation4 + $0x258] ss:$0 sm:$0xff] }
 0x980   : > { %v1177_v28 = vmul.f32 %v4095_v25, %v1171_v26  ;;  %4995 = vmatprep.subr.bf16.mxu1 %v4994_v58 }
 0x981   : > { %v5356_v29 = vpop.eup %5355  ;;  %4997 = vmatpush3.bf16.msra.mxu1 %v4994_v58 }
 0x982   : > { %v1172_v30 = vmul.f32 %v5356_v29, %v1156_v44  ;;  %v1183_v32 = vadd.f32 %v4096_v27, %v1177_v28 }
 0x984   : > { %v1178_v33 = vmul.f32 %v4095_v25, %v1172_v30  ;;  %4539 = vmatprep.mubr.msk.f32.mxu0 %vm285_vm14, %v1183_v32  ;;  %v1431_v32 = vld [vmem:[#allocation4 + $0x260] sm:$0xff] }
 0x986   : > { %v1184_v35 = vadd.f32 %v4096_v27, %v1178_v33  ;;  %v1432_v33 = vld [vmem:[#allocation4 + $0x268] sm:$0xff] }
 0x988   : > { %4540 = vmatmul.mubr.msk.f32.vlgmr.msra.gmra.mrb[16].mxu0 %vm285_vm14, %v1184_v35  ;;  %v4998_v35 = vpack.c.bf16 %v1432_v33, %v1431_v32 }
 0x98a   : > { %4999 = vmatprep.subr.bf16.mxu0 %v4998_v35 }
 0x98b   : > { %5001 = vmatpush3.bf16.msra.mxu0 %v4998_v35 }
 0x98c   : > { %5003 = vmatprep.subr.bf16.mxu0 %v5002_v41 }
 0x98f   : > { %5005 = vmatpush3.bf16.msra.mxu0 %v5002_v41 }
 0x990   : > { %5007 = vmatprep.subr.bf16.mxu0 %v5773_v34 }
 0xa5b   : > { %v4541_v46 = vpop.f32.mrb[16].mxu0 }
 0xa5c   : > { %v1272_v60 = vadd.f32 %v4541_v46, %v4097_v59  ;;  %v1266_v44 = vpop.f32.mrb[17].mxu0 }
 0xa5d   : > { %v1267_v61 = vadd.f32 %v4097_v59, %v1266_v44 }
 0xa5e   : > { %v1278_v62 = vmul.f32 0.70710677, %v1272_v60  ;;  %v1276_v7 = vmul.f32 0.5, %v1272_v60 }
 0xa5f   : > { %v1277_v63 = vmul.f32 0.70710677, %v1267_v61  ;;  %v1275_v5 = vmul.f32 0.5, %v1267_v61 }
 0xa60   : > { %5357 = verf.f32 %v1278_v62 }
 0xa61   : > { %5359 = verf.f32 %v1277_v63 }
 0xa6a   : > { %v5358_v2 = vpop.eup %5357 }
 0xa6b   : > { %v5360_v3 = vpop.eup %5359  ;;  %v1282_v4 = vadd.f32 1.0, %v5358_v2 }
 0xa6c   : > { %v1281_v6 = vadd.f32 1.0, %v5360_v3 }
 0xa6d   : > { %v1284_v9 = vmul.f32 %v1282_v4, %v1276_v7 }
 0xa6e   : > { %v1283_v8 = vmul.f32 %v1281_v6, %v1275_v5 }
 0xa70   : > { %4574 = vmatprep.mubr.f32.mxu1 %v1283_v8 }
 0xa71   : > { %4575 = vmatmul.mubr.f32.vlgmr.msra.gmra.mrb[2].mxu1 %v1284_v9 }
 0xb44   : > { %v4576_v10 = vpop.f32.mrb[2].mxu1 }
 0xb45   : > { %v1377_v12 = vadd.f32 %v4576_v10, %v5814_v54  ;;  %v1367_v1 = vpop.f32.mrb[3].mxu1 }
 0xb46   : > { %v1376_v13 = vadd.f32 %v1367_v1, %v5812_v53 }
 0xb47   : > { %v1384_v14 = vadd.f32 %v4100_v11, %v1377_v12 }
 0xb48   : > { %v1383_v17 = vadd.f32 %v4100_v11, %v1376_v13 }
 0xb49   : > { %v5830_v19 = vadd.f32 %v1387_v16, %v1384_v14 }
 0xb4a   : > { %v5832_v20 = vadd.f32 %v1387_v16, %v1383_v17 }
 0xb4b   : > { %v1396_v21 = vsel %vm285_vm14, %v5830_v19, 0.0 }
 0xb4c   : > { %1397 = vadd.xlane.f32.xlu1 %v1396_v21  ;;  %v1393_v22 = vsel %vm285_vm14, %v5832_v20, 0.0 }
 0xb4d   : > { %1394 = vadd.xlane.f32.xlu0 %v1393_v22 }
 0xbd9   : > { %v1398_v23 = vpop.xlane.xlu1 %1397 }
 0xbda   : > { %v1400_v54 = vmul.f32 0.03125, %v1398_v23  ;;  %v1395_v24 = vpop.xlane.xlu0 %1394 }
 0xbdb   : > { %v1399_v25 = vmul.f32 0.03125, %v1395_v24 }
 0xbdc   : > { %v1402_v53 = vsub.f32 %v5830_v19, %v1400_v54 }
 0xbdd   : > { %v1401_v26 = vsub.f32 %v5832_v20, %v1399_v25 }
 0xbde   : > { %v1404_v29 = vmul.f32 %v1402_v53, %v1402_v53 }
 0xbdf   : > { %v1403_v27 = vmul.f32 %v1401_v26, %v1401_v26 }
 0xbe0   : > { %v1408_v30 = vsel %vm285_vm14, %v1404_v29, 0.0 }
 0xbe1   : > { %v1405_v28 = vsel %vm285_vm14, %v1403_v27, 0.0 }
 0xbe2   : > { %1406 = vadd.xlane.f32.xlu1 %v1405_v28 }
 0xbe6   : > { %1409 = vadd.xlane.f32.xlu1 %v1408_v30 }
 0xc6f   : > { %v1407_v45 = vpop.xlane.xlu1 %1406 }
 0xc70   : > { %v1411_v47 = vmul.f32 0.03125, %v1407_v45 }
 0xc72   : > { %v1413_v48 = vadd.f32 1e-05, %v1411_v47 }
 0xc73   : > { %v1410_v49 = vpop.xlane.xlu1 %1409 }
 0xc74   : > { %5361 = vrsqrt.f32 %v1413_v48  ;;  %v1412_v50 = vmul.f32 0.03125, %v1410_v49 }
 0xc76   : > { %v1414_v51 = vadd.f32 1e-05, %v1412_v50 }
 0xc78   : > { %5363 = vrsqrt.f32 %v1414_v51 }
 0xc7e   : > { %v5362_v52 = vpop.eup %5361 }
 0xc7f   : > { %v1417_v55 = vmul.f32 %v5362_v52, %v1401_v26 }
 0xc81   : > { %v1423_v57 = vmul.f32 %v4101_v15, %v1417_v55 }
 0xc82   : > { %v5364_v58 = vpop.eup %5363 }
 0xc83   : > { %v1418_v59 = vmul.f32 %v5364_v58, %v1402_v53  ;;  %v1429_v46 = vadd.f32 %v4102_v56, %v1423_v57 }
 0xc85   : > { %v1424_v60 = vmul.f32 %v4101_v15, %v1418_v59  ;;  %4585 = vmatprep.mubr.msk.f32.mxu0 %vm285_vm14, %v1429_v46  ;;  %v1870_v46 = vld [vmem:[#allocation4 + $0x280] sm:$0xff] }
 0xc87   : > { %v1430_v44 = vadd.f32 %v4102_v56, %v1424_v60  ;;  %v1871_v60 = vld [vmem:[#allocation4 + $0x288] sm:$0xff] }
 0xc89   : > { %4586 = vmatmul.mubr.msk.f32.vlgmr.msra.gmra.mrb[18].mxu0 %vm285_vm14, %v1430_v44  ;;  %v1872_v44 = vld [vmem:[#allocation4 + $0x290] sm:$0xff] }
 0xc8a   : > { %5009 = vmatpush3.bf16.msra.mxu0 %v5773_v34 }
 0xc8b   : > { %5011 = vmatprep.subr.bf16.mxu0 %v5783_v39 }
 0xc8e   : > { %5013 = vmatpush3.bf16.msra.mxu0 %v5783_v39 }
 0xd5c   : > { %v4587_v61 = vpop.f32.mrb[18].mxu0 }
 0xd5d   : > { %v1614_v62 = vsel %vm793_vm4, %v4587_v61, -inf  ;;  %v1507_v63 = vpop.f32.mrb[19].mxu0  ;;  %v1519_v30 = vsel %vm285_vm14, %v4587_v61, -inf }
 0xd5e   : > { %v1613_v2 = vsel %vm793_vm4, %v1507_v63, -inf  ;;  %v5312_v3 = vpack.i.bf16 %v4587_v61, %v1507_v63  ;;  %v1516_v32 = vsel %vm285_vm14, %v1507_v63, -inf }
 0xd5f   : > { %v1615_v4 = vmax.f32 %v1613_v2, %v1614_v62  ;;  %v1873_v62 = vld [vmem:[#allocation4 + $0x298] sm:$0xff] }
 0xd61   : > { %v1616_v5 = vrot.slane %v1615_v4, 4 }
 0xd63   : > { %v1617_v6 = vmax.f32 %v1615_v4, %v1616_v5 }
 0xd65   : > { %v1618_v7 = vrot.slane %v1617_v6, 2 }
 0xd67   : > { %v1619_v8 = vmax.f32 %v1617_v6, %v1618_v7 }
 0xd69   : > { %v1620_v9 = vrot.slane %v1619_v8, 1 }
 0xd6b   : > { %v1621_v10 = vmax.f32 %v1619_v8, %v1620_v9 }
 0xd6d   : > { %v1622_v11 = vsub.f32 %v1507_v63, %v1621_v10  ;;  %v1623_v12 = vsub.f32 %v4587_v61, %v1621_v10 }
 0xd6f   : > { %v1624_v1 = vmul.f32 1.442695, %v1622_v11  ;;  %v1626_v13 = vmul.f32 1.442695, %v1623_v12 }
 0xd71   : > { %5365 = vpow2.f32 %v1624_v1 }
 0xd72   : > { %5367 = vpow2.f32 %v1626_v13 }
 0xd7b   : > { %v5366_v14 = vpop.eup %5365 }
 0xd7c   : > { %v5368_v16 = vpop.eup %5367  ;;  %v1628_v17 = vsel %vm793_vm4, %v5366_v14, 0.0 }
 0xd7d   : > { %v1629_v21 = vsel %vm793_vm4, %v5368_v16, 0.0 }
 0xd7e   : > { %v1630_v22 = vadd.f32 %v1629_v21, %v1628_v17 }
 0xd80   : > { %v1631_v23 = vrot.slane %v1630_v22, 4 }
 0xd82   : > { %v1632_v54 = vadd.f32 %v1631_v23, %v1630_v22  ;;  %v4115_v22 = vld [vmem:[#allocation4 + $0x2a0] ss:$0 sm:$0xff] }
 0xd84   : > { %v1633_v24 = vrot.slane %v1632_v54, 2 }
 0xd86   : > { %v1634_v25 = vadd.f32 %v1633_v24, %v1632_v54 }
 0xd88   : > { %v1635_v53 = vrot.slane %v1634_v25, 1 }
 0xd8a   : > { %v1636_v26 = vadd.f32 %v1635_v53, %v1634_v25 }
 0xd8c   : > { %5369 = vrcp.f32 %v1636_v26 }
 0xd96   : > { %v5370_v27 = vpop.eup %5369 }
 0xd97   : > { %v1639_v28 = vmul.f32 %v5370_v27, %v5368_v16  ;;  %v1638_v29 = vmul.f32 %v5370_v27, %v5366_v14 }
 0xd99   : > { %1644 = vrot.lane.b32.xlu0 %v1639_v28, %s5572_s7  ;;  %1642 = vrot.lane.b32.xlu1 %v1638_v29, %s5572_s7 }
 0xdb8   : > { %1520 = vmax.xlane.f32.xlu0 %v1519_v30 }
 0xdbd   : > { %1517 = vmax.xlane.f32.xlu1 %v1516_v32 }
 0xdce   : > { %5313 = vrot.lane.b32.xlu1 %v5312_v3, %s5571_s6 }
 0xe0b   : > { %v1643_v33 = vpop.permute.xlu1 %1642  ;;  %v1645_v35 = vpop.permute.xlu0 %1644 }
 0xe0c   : > { %1648 = vxpose.xlu0.b32.start [1/2] (short) (narrow) %v1643_v33, 32 }
 0xe10   : > { %1649 = vxpose.xlu0.b32.end [2/2] (short) (narrow) %v1645_v35, 32 }
 0xe45   : > { %v1521_v36 = vpop.xlane.xlu0 %1520 }
 0xe46   : > { %v1523_v40 = vsub.f32 %v4587_v61, %v1521_v36  ;;  %v5026_v61 = vpack.c.bf16 %v1871_v60, %v1870_v46  ;;  %v2004_v36 = vld [vmem:[#allocation4 + $0x2b8] sm:$0xff] }
 0xe48   : > { %v1526_v47 = vmul.f32 1.442695, %v1523_v40  ;;  %5027 = vmatprep.subr.bf16.mxu1 %v5026_v61  ;;  %v2005_v40 = vld [vmem:[#allocation4 + $0x2c0] sm:$0xff] }
 0xe49   : > { %5029 = vmatpush3.bf16.msra.mxu1 %v5026_v61 }
 0xe4a   : > { %v1518_v41 = vpop.xlane.xlu1 %1517 }
 0xe4b   : > { %v1522_v45 = vsub.f32 %v1507_v63, %v1518_v41  ;;  %v5030_v63 = vpack.c.bf16 %v1873_v62, %v1872_v44  ;;  %v5034_v41 = vpack.c.bf16 %v2005_v40, %v2004_v36 }
 0xe4d   : > { %v1524_v48 = vmul.f32 1.442695, %v1522_v45  ;;  %5031 = vmatprep.subr.bf16.mxu1 %v5030_v63  ;;  %v2006_v45 = vld [vmem:[#allocation4 + $0x2c8] sm:$0xff] }
 0xe4e   : > { %v5314_v49 = vpop.permute.xlu1 %5313  ;;  %5033 = vmatpush3.bf16.msra.mxu1 %v5030_v63 }
 0xe4f   : > { %5371 = vpow2.f32 %v1524_v48  ;;  %v5316_v50 = vunpack.i.h.bf16 %v5314_v49  ;;  %v5315_v51 = vunpack.i.l.bf16 %v5314_v49  ;;  %v2104_v49 = vld [vmem:[#allocation4 + $0x2e0] sm:$0xff] }
 0xe50   : > { %5373 = vpow2.f32 %v1526_v47  ;;  %v2007_v47 = vld [vmem:[#allocation4 + $0x2d0] sm:$0xff] }
 0xe51   : > { %v5014_v52 = vpack.c.bf16 %v5316_v50, %v5315_v51  ;;  %v5038_v48 = vpack.c.bf16 %v2007_v47, %v2006_v45  ;;  %v2105_v50 = vld [vmem:[#allocation4 + $0x2e8] sm:$0xff]  ;;  %v2106_v51 = vld [vmem:[#allocation4 + $0x2f0] sm:$0xff] }
 0xe53   : > { %5015 = vmatprep.subr.bf16.mxu0 %v5014_v52 }
 0xe59   : > { %v5372_v15 = vpop.eup %5371 }
 0xe5a   : > { %v5374_v55 = vpop.eup %5373  ;;  %4596 = vmatprep.mubr.msk.f32.mxu0 %vm285_vm14, %v5372_v15 }
 0xe5b   : > { %4597 = vmatmul.mubr.msk.f32.vlgmr.msra.gmra.mrb[20].mxu0 %vm285_vm14, %v5374_v55 }
 0xe5c   : > { %5017 = vmatpush3.bf16.msra.mxu0 %v5014_v52  ;;  %v5042_v52 = vpack.c.bf16 %v2105_v50, %v2104_v49 }
 0xe5e   : > { %5043 = vmatprep.subr.bf16.mxu1 %v5042_v52 }
 0xe8c   : > { %v1664_v56 = vpop.trf.xlu0 }
 0xe8d   : > { %4603 = vmatprep.mubr.msk.f32.mxu0 %vm480_vm0, %v1664_v56  ;;  %v2108_v56 = vld [vmem:[#allocation4 + $0x300] sm:$0xff] }
 0xe90   : > { %v1665_v57 = vpop.trf.xlu0 }
 0xe91   : > { %4604 = vmatmul.mubr.msk.f32.vlgmr.msra.gmra.mrb[22].mxu0 %vm480_vm0, %v1665_v57  ;;  %v2109_v57 = vld [vmem:[#allocation4 + $0x308] sm:$0xff] }
 0xe94   : > { %v1666_v58 = vpop.trf.xlu0 }
 0xe95   : > { %4606 = vmatprep.mubr.msk.f32.mxu0 %vm480_vm0, %v1666_v58  ;;  %v5050_v58 = vpack.c.bf16 %v2109_v57, %v2108_v56 }
 0xe98   : > { %v1667_v59 = vpop.trf.xlu0 }
 0xe99   : > { %4607 = vmatmul.mubr.msk.f32.gmra.mrb[24].mxu0 %vm480_vm0, %v1667_v59 }
 0xf2e   : > { %v4598_v2 = vpop.f32.mrb[20].mxu0 }
 0xf2f   : > { %v1600_v3 = vpop.f32.mrb[21].mxu0 }
 0xf30   : > { %5375 = vrcp.f32 %v1600_v3 }
 0xf31   : > { %5377 = vrcp.f32 %v4598_v2  ;;  %v4116_v2 = vld [vmem:[#allocation4 + $0x2a8] ss:$0 sm:$0xff] }
 0xf3a   : > { %v5376_v4 = vpop.eup %5375 }
 0xf3b   : > { %v1611_v5 = vmul.f32 %v5376_v4, %v5372_v15  ;;  %v5378_v16 = vpop.eup %5377  ;;  %v2107_v15 = vld [vmem:[#allocation4 + $0x2f8] sm:$0xff]  ;;  %v4117_v4 = vld [vmem:[#allocation4 + $0x2b0] ss:$0 sm:$0xff] }
 0xf3c   : > { %v1612_v17 = vmul.f32 %v5378_v16, %v5374_v55  ;;  %v5046_v55 = vpack.c.bf16 %v2107_v15, %v2106_v51 }
 0xf3d   : > { %4617 = vmatprep.mubr.msk.f32.mxu0 %vm285_vm14, %v1611_v5 }
 0xf64   : > { %v4605_v6 = vpop.f32.mrb[22].mxu0 }
 0xf65   : > { %v1786_v7 = vmul.f32 %v4605_v6, %v5767_v31  ;;  %v1766_v8 = vpop.f32.mrb[23].mxu0 }
 0xf66   : > { %v1785_v9 = vmul.f32 %v1766_v8, %v5765_v0 }
 0xf68   : > { %v5018_v10 = vpack.c.bf16 %v1786_v7, %v1785_v9 }
 0xf6a   : > { %5019 = vmatprep.subr.bf16.mxu0 %v5018_v10 }
 0xf6b   : > { %5021 = vmatpush3.bf16.msra.mxu0 %v5018_v10 }
 0xf6c   : > { %v4608_v11 = vpop.f32.mrb[24].mxu0 }
 0xf6d   : > { %v1788_v12 = vmul.f32 %v4608_v11, %v5779_v38  ;;  %v1776_v1 = vpop.f32.mrb[25].mxu0  ;;  %v2110_v11 = vld [vmem:[#allocation4 + $0x310] sm:$0xff] }
 0xf6e   : > { %v1787_v13 = vmul.f32 %v1776_v1, %v5777_v37 }
 0xf70   : > { %v5022_v14 = vpack.c.bf16 %v1788_v12, %v1787_v13  ;;  %v2111_v12 = vld [vmem:[#allocation4 + $0x318] sm:$0xff]  ;;  %v2112_v13 = vld [vmem:[#allocation4 + $0x320] sm:$0xff] }
 0xf71   : > { %v5054_v1 = vpack.c.bf16 %v2111_v12, %v2110_v11 }
 0xf72   : > { %5023 = vmatprep.subr.bf16.mxu0 %v5022_v14 }
 0xf73   : > { %5025 = vmatpush3.bf16.msra.mxu0 %v5022_v14  ;;  %v2113_v14 = vld [vmem:[#allocation4 + $0x328] sm:$0xff] }
 0xf74   : > { %5035 = vmatprep.subr.bf16.mxu0 %v5034_v41  ;;  %v5058_v16 = vpack.c.bf16 %v2113_v14, %v2112_v13 }
 0xf76   : > { %4618 = vmatmul.mubr.msk.f32.vlgmr.msra.gmra.mrb[26].mxu0 %vm285_vm14, %v1612_v17  ;;  %v2114_v17 = vld [vmem:[#allocation4 + $0x330] sm:$0xff] }
 0xf77   : > { %5037 = vmatpush3.bf16.msra.mxu0 %v5034_v41 }
 0xf78   : > { %5039 = vmatprep.subr.bf16.mxu0 %v5038_v48 }
 0xf7b   : > { %5041 = vmatpush3.bf16.msra.mxu0 %v5038_v48  ;;  %v4121_v48 = vld [vmem:[#allocation4 + $0x360] ss:$0 sm:$0xff] }
0x1049   : > { %v4619_v31 = vpop.f32.mrb[26].mxu0 }
0x104a   : > { %v1861_v21 = vpop.f32.mrb[27].mxu0 }
0x104b   : > { %4628 = vmatprep.mubr.msk.f32.mxu1 %vm285_vm14, %v1861_v21 }
0x104c   : > { %4629 = vmatmul.mubr.msk.f32.vlgmr.msra.gmra.mrb[4].mxu1 %vm285_vm14, %v4619_v31  ;;  %v2115_v31 = vld [vmem:[#allocation4 + $0x338] sm:$0xff] }
0x104d   : > { %5045 = vmatpush3.bf16.msra.mxu1 %v5042_v52  ;;  %v5062_v21 = vpack.c.bf16 %v2115_v31, %v2114_v17  ;;  %v4122_v17 = vld [vmem:[#allocation4 + $0x368] ss:$0 sm:$0xff] }
0x104e   : > { %5047 = vmatprep.subr.bf16.mxu1 %v5046_v55 }
0x1051   : > { %5049 = vmatpush3.bf16.msra.mxu1 %v5046_v55 }
0x1052   : > { %5051 = vmatprep.subr.bf16.mxu1 %v5050_v58 }
0x1055   : > { %5053 = vmatpush3.bf16.msra.mxu1 %v5050_v58 }
0x1056   : > { %5055 = vmatprep.subr.bf16.mxu1 %v5054_v1 }
0x1059   : > { %5057 = vmatpush3.bf16.msra.mxu1 %v5054_v1 }
0x105a   : > { %5059 = vmatprep.subr.bf16.mxu1 %v5058_v16 }
0x105d   : > { %5061 = vmatpush3.bf16.msra.mxu1 %v5058_v16 }
0x105e   : > { %5063 = vmatprep.subr.bf16.mxu1 %v5062_v21 }
0x1061   : > { %5065 = vmatpush3.bf16.msra.mxu1 %v5062_v21 }
0x111f   : > { %v4630_v0 = vpop.f32.mrb[4].mxu1 }
0x1120   : > { %v1946_v23 = vpop.f32.mrb[5].mxu1  ;;  %v1956_v38 = vadd.f32 %v4630_v0, %v5830_v19  ;;  %v2116_v0 = vld [vmem:[#allocation4 + $0x340] sm:$0xff] }
0x1121   : > { %v1955_v37 = vadd.f32 %v1946_v23, %v5832_v20 }
0x1122   : > { %v5875_v24 = vadd.f32 %v4115_v22, %v1956_v38  ;;  %v2118_v38 = vld [vmem:[#allocation4 + $0x350] sm:$0xff] }
0x1123   : > { %v5873_v54 = vadd.f32 %v4115_v22, %v1955_v37  ;;  %v2117_v22 = vld [vmem:[#allocation4 + $0x348] sm:$0xff]  ;;  %v2119_v37 = vld [vmem:[#allocation4 + $0x358] sm:$0xff] }
0x1124   : > { %v1969_v53 = vsel %vm285_vm14, %v5875_v24, 0.0  ;;  %v5066_v23 = vpack.c.bf16 %v2117_v22, %v2116_v0  ;;  %v4123_v22 = vld [vmem:[#allocation4 + $0x370] ss:$0 sm:$0xff] }
0x1125   : > { %v1966_v25 = vsel %vm285_vm14, %v5873_v54, 0.0 }
0x1126   : > { %1967 = vadd.xlane.f32.xlu1 %v1966_v25  ;;  %5067 = vmatprep.subr.bf16.mxu1 %v5066_v23  ;;  %v5070_v25 = vpack.c.bf16 %v2119_v37, %v2118_v38 }
0x1127   : > { %5069 = vmatpush3.bf16.msra.mxu1 %v5066_v23 }
0x1128   : > { %5071 = vmatprep.subr.bf16.mxu1 %v5070_v25 }
0x112a   : > { %1970 = vadd.xlane.f32.xlu1 %v1969_v53  ;;  %v4118_v53 = vld [vmem:[#allocation4 + $0x2d8] ss:$0 sm:$0xff] }
0x112b   : > { %5073 = vmatpush3.bf16.msra.mxu1 %v5070_v25 }
0x11b3   : > { %v1968_v26 = vpop.xlane.xlu1 %1967 }
0x11b4   : > { %v1972_v27 = vmul.f32 0.03125, %v1968_v26 }
0x11b6   : > { %v1974_v28 = vsub.f32 %v5873_v54, %v1972_v27 }
0x11b7   : > { %v1971_v29 = vpop.xlane.xlu1 %1970 }
0x11b8   : > { %v1973_v19 = vmul.f32 0.03125, %v1971_v29  ;;  %v1976_v30 = vmul.f32 %v1974_v28, %v1974_v28 }
0x11ba   : > { %v1975_v20 = vsub.f32 %v5875_v24, %v1973_v19  ;;  %v1978_v32 = vsel %vm285_vm14, %v1976_v30, 0.0 }
0x11bb   : > { %1979 = vadd.xlane.f32.xlu0 %v1978_v32 }
0x11bc   : > { %v1977_v33 = vmul.f32 %v1975_v20, %v1975_v20 }
0x11be   : > { %v1981_v35 = vsel %vm285_vm14, %v1977_v33, 0.0 }
0x11bf   : > { %1982 = vadd.xlane.f32.xlu1 %v1981_v35 }
0x11d0   : > { %2206 = vrot.lane.b32.xlu1 %v5731_v18, %s5571_s6 }
0x1248   : > { %v1980_v59 = vpop.xlane.xlu0 %1979 }
0x1249   : > { %v1984_v46 = vmul.f32 0.03125, %v1980_v59 }
0x124b   : > { %v1986_v60 = vadd.f32 1e-05, %v1984_v46 }
0x124c   : > { %v1983_v44 = vpop.xlane.xlu1 %1982 }
0x124d   : > { %5379 = vrsqrt.f32 %v1986_v60  ;;  %v1985_v61 = vmul.f32 0.03125, %v1983_v44 }
0x124f   : > { %v1987_v62 = vadd.f32 1e-05, %v1985_v61 }
0x1250   : > { %v2207_v56 = vpop.permute.xlu1 %2206 }
0x1251   : > { %5381 = vrsqrt.f32 %v1987_v62 }
0x1257   : > { %v5380_v63 = vpop.eup %5379 }
0x1258   : > { %v1990_v3 = vmul.f32 %v5380_v63, %v1974_v28 }
0x125a   : > { %v1996_v5 = vmul.f32 %v4116_v2, %v1990_v3 }
0x125b   : > { %v5382_v6 = vpop.eup %5381 }
0x125c   : > { %v1991_v7 = vmul.f32 %v5382_v6, %v1975_v20  ;;  %v2002_v8 = vadd.f32 %v4117_v4, %v1996_v5  ;;  %v2252_v5 = vld [vmem:[#allocation4 + $0x380] sm:$0xff] }
0x125e   : > { %v1997_v9 = vmul.f32 %v4116_v2, %v1991_v7  ;;  %4639 = vmatprep.mubr.msk.f32.mxu0 %vm285_vm14, %v2002_v8  ;;  %v2253_v7 = vld [vmem:[#allocation4 + $0x388] sm:$0xff]  ;;  %v2254_v8 = vld [vmem:[#allocation4 + $0x390] sm:$0xff] }
0x1260   : > { %v2003_v10 = vadd.f32 %v4117_v4, %v1997_v9  ;;  %v2251_v4 = vld [vmem:[#allocation4 + $0x378] sm:$0xff]  ;;  %v5078_v9 = vpack.c.bf16 %v2254_v8, %v2253_v7 }
0x1261   : > { %v5074_v6 = vpack.c.bf16 %v2252_v5, %v2251_v4 }
0x1262   : > { %4640 = vmatmul.mubr.msk.f32.vlgmr.msra.gmra.mrb[28].mxu0 %vm285_vm14, %v2003_v10 }
0x1263   : > { %5075 = vmatprep.subr.bf16.mxu0 %v5074_v6 }
0x1264   : > { %5077 = vmatpush3.bf16.msra.mxu0 %v5074_v6 }
0x1265   : > { %5079 = vmatprep.subr.bf16.mxu0 %v5078_v9 }
0x1268   : > { %5081 = vmatpush3.bf16.msra.mxu0 %v5078_v9 }
0x1269   : > { %5083 = vmatprep.subr.bf16.mxu0 %v5773_v34 }
0x1335   : > { %v4641_v26 = vpop.f32.mrb[28].mxu0 }
0x1336   : > { %v2091_v27 = vadd.f32 %v4641_v26, %v4118_v53  ;;  %v2085_v28 = vpop.f32.mrb[29].mxu0 }
0x1337   : > { %v2086_v29 = vadd.f32 %v4118_v53, %v2085_v28 }
0x1338   : > { %v2097_v19 = vmul.f32 0.70710677, %v2091_v27  ;;  %v2095_v40 = vmul.f32 0.5, %v2091_v27 }
0x1339   : > { %v2096_v30 = vmul.f32 0.70710677, %v2086_v29  ;;  %v2094_v35 = vmul.f32 0.5, %v2086_v29 }
0x133a   : > { %5383 = verf.f32 %v2097_v19 }
0x133b   : > { %5385 = verf.f32 %v2096_v30 }
0x1344   : > { %v5384_v20 = vpop.eup %5383 }
0x1345   : > { %v5386_v32 = vpop.eup %5385  ;;  %v2101_v33 = vadd.f32 1.0, %v5384_v20 }
0x1346   : > { %v2100_v36 = vadd.f32 1.0, %v5386_v32 }
0x1347   : > { %v2103_v45 = vmul.f32 %v2101_v33, %v2095_v40 }
0x1348   : > { %v2102_v41 = vmul.f32 %v2100_v36, %v2094_v35 }
0x134a   : > { %4674 = vmatprep.mubr.f32.mxu1 %v2102_v41 }
0x134b   : > { %4675 = vmatmul.mubr.f32.vlgmr.msra.gmra.mrb[6].mxu1 %v2103_v45 }
0x141e   : > { %v4676_v47 = vpop.f32.mrb[6].mxu1 }
0x141f   : > { %v2196_v49 = vadd.f32 %v4676_v47, %v5875_v24  ;;  %v2186_v50 = vpop.f32.mrb[7].mxu1 }
0x1420   : > { %v2195_v51 = vadd.f32 %v2186_v50, %v5873_v54 }
0x1421   : > { %v2203_v52 = vadd.f32 %v4121_v48, %v2196_v49 }
0x1422   : > { %v2202_v15 = vadd.f32 %v4121_v48, %v2195_v51 }
0x1423   : > { %v2205_v55 = vadd.f32 %v2203_v52, %v5733_v43 }
0x1424   : > { %v2204_v57 = vadd.f32 %v2202_v15, %v5729_v42 }
0x1425   : > { %v5893_v58 = vadd.f32 %v2207_v56, %v2205_v55 }
0x1426   : > { %v5895_v59 = vadd.f32 %v2207_v56, %v2204_v57 }
0x1427   : > { %v2216_v46 = vsel %vm285_vm14, %v5893_v58, 0.0 }
0x1428   : > { %2217 = vadd.xlane.f32.xlu0 %v2216_v46  ;;  %v2213_v24 = vsel %vm285_vm14, %v5895_v59, 0.0 }
0x1429   : > { %2214 = vadd.xlane.f32.xlu1 %v2213_v24 }
0x14b5   : > { %v2218_v54 = vpop.xlane.xlu0 %2217 }
0x14b6   : > { %v2220_v60 = vmul.f32 0.03125, %v2218_v54  ;;  %v2215_v44 = vpop.xlane.xlu1 %2214 }
0x14b7   : > { %v2219_v61 = vmul.f32 0.03125, %v2215_v44 }
0x14b8   : > { %v2222_v43 = vsub.f32 %v5893_v58, %v2220_v60 }
0x14b9   : > { %v2221_v42 = vsub.f32 %v5895_v59, %v2219_v61 }
0x14ba   : > { %v2224_v62 = vmul.f32 %v2222_v43, %v2222_v43 }
0x14bb   : > { %v2223_v63 = vmul.f32 %v2221_v42, %v2221_v42 }
0x14bc   : > { %v2228_v2 = vsel %vm285_vm14, %v2224_v62, 0.0 }
0x14bd   : > { %2229 = vadd.xlane.f32.xlu1 %v2228_v2  ;;  %v2225_v3 = vsel %vm285_vm14, %v2223_v63, 0.0 }
0x14be   : > { %2226 = vadd.xlane.f32.xlu0 %v2225_v3 }
0x154a   : > { %v2230_v10 = vpop.xlane.xlu1 %2229 }
0x154b   : > { %v2232_v11 = vmul.f32 0.03125, %v2230_v10  ;;  %v2227_v12 = vpop.xlane.xlu0 %2226 }
0x154c   : > { %v2231_v1 = vmul.f32 0.03125, %v2227_v12 }
0x154d   : > { %v2234_v13 = vadd.f32 1e-05, %v2232_v11 }
0x154e   : > { %v2233_v14 = vadd.f32 1e-05, %v2231_v1 }
0x154f   : > { %5387 = vrsqrt.f32 %v2234_v13 }
0x1550   : > { %5389 = vrsqrt.f32 %v2233_v14 }
0x1559   : > { %v5388_v16 = vpop.eup %5387 }
0x155a   : > { %v5390_v31 = vpop.eup %5389  ;;  %v2238_v21 = vmul.f32 %v5388_v16, %v2222_v43 }
0x155b   : > { %v2237_v0 = vmul.f32 %v5390_v31, %v2221_v42 }
0x155c   : > { %v2244_v23 = vmul.f32 %v4122_v17, %v2238_v21 }
0x155d   : > { %v2243_v38 = vmul.f32 %v4122_v17, %v2237_v0 }
0x155e   : > { %v2250_v25 = vadd.f32 %v4123_v22, %v2244_v23  ;;  %v5927_v23 = vld [vmem:[#allocation4 + $0x18] sm:$0xff] }
0x155f   : > { %v2249_v37 = vadd.f32 %v4123_v22, %v2243_v38 }
0x1561   : > { %4685 = vmatprep.mubr.msk.f32.mxu0 %vm285_vm14, %v2249_v37 }
0x1562   : > { %4686 = vmatmul.mubr.msk.f32.vlgmr.msra.gmra.mrb[30].mxu0 %vm285_vm14, %v2250_v25  ;;  %v5930_v25 = vld [vmem:[#allocation4 + $0x10] sm:$0xff] }
0x1563   : > { %5085 = vmatpush3.bf16.msra.mxu0 %v5773_v34 }
0x1564   : > { %5087 = vmatprep.subr.bf16.mxu0 %v5783_v39 }
0x1567   : > { %5089 = vmatpush3.bf16.msra.mxu0 %v5783_v39 }
0x1635   : > { %v4687_v53 = vpop.f32.mrb[30].mxu0 }
0x1636   : > { %v2434_v26 = vsel %vm793_vm4, %v4687_v53, -inf  ;;  %v2327_v27 = vpop.f32.mrb[31].mxu0  ;;  %v2339_v61 = vsel %vm285_vm14, %v4687_v53, -inf }
0x1637   : > { %v2433_v28 = vsel %vm793_vm4, %v2327_v27, -inf  ;;  %v5317_v29 = vpack.i.bf16 %v4687_v53, %v2327_v27  ;;  %v2336_v43 = vsel %vm285_vm14, %v2327_v27, -inf }
0x1638   : > { %v2435_v19 = vmax.f32 %v2433_v28, %v2434_v26  ;;  %v5933_v28 = vld [vmem:[#allocation4 + $0x28] sm:$0xff] }
0x163a   : > { %v2436_v30 = vrot.slane %v2435_v19, 4 }
0x163c   : > { %v2437_v20 = vmax.f32 %v2435_v19, %v2436_v30  ;;  %v2690_v30 = vld [vmem:[#allocation4 + $0x398] sm:$0xff] }
0x163e   : > { %v2438_v32 = vrot.slane %v2437_v20, 2 }
0x1640   : > { %v2439_v33 = vmax.f32 %v2437_v20, %v2438_v32  ;;  %v2691_v20 = vld [vmem:[#allocation4 + $0x3a0] sm:$0xff] }
0x1641   : > { %v5936_v32 = vld [vmem:[#allocation4 + $0x20] sm:$0xff] }
0x1642   : > { %v2440_v35 = vrot.slane %v2439_v33, 1 }
0x1644   : > { %v2441_v36 = vmax.f32 %v2439_v33, %v2440_v35 }
0x1646   : > { %v2442_v40 = vsub.f32 %v2327_v27, %v2441_v36  ;;  %v2443_v41 = vsub.f32 %v4687_v53, %v2441_v36  ;;  %v5102_v36 = vpack.c.bf16 %v2691_v20, %v2690_v30 }
0x1648   : > { %v2444_v45 = vmul.f32 1.442695, %v2442_v40  ;;  %v2446_v47 = vmul.f32 1.442695, %v2443_v41  ;;  %v2692_v41 = vld [vmem:[#allocation4 + $0x3a8] sm:$0xff] }
0x164a   : > { %5391 = vpow2.f32 %v2444_v45  ;;  %v2693_v45 = vld [vmem:[#allocation4 + $0x3b0] sm:$0xff] }
0x164b   : > { %5393 = vpow2.f32 %v2446_v47 }
0x1654   : > { %v5392_v48 = vpop.eup %5391 }
0x1655   : > { %v5394_v49 = vpop.eup %5393  ;;  %v2448_v50 = vsel %vm793_vm4, %v5392_v48, 0.0 }
0x1656   : > { %v2449_v51 = vsel %vm793_vm4, %v5394_v49, 0.0 }
0x1657   : > { %v2450_v52 = vadd.f32 %v2449_v51, %v2448_v50 }
0x1659   : > { %v2451_v15 = vrot.slane %v2450_v52, 4 }
0x165b   : > { %v2452_v55 = vadd.f32 %v2451_v15, %v2450_v52  ;;  %v4136_v52 = vld [vmem:[#allocation4 + $0x3b8] ss:$0 sm:$0xff] }
0x165d   : > { %v2453_v56 = vrot.slane %v2452_v55, 2 }
0x165f   : > { %v2454_v57 = vadd.f32 %v2453_v56, %v2452_v55 }
0x1661   : > { %v2455_v46 = vrot.slane %v2454_v57, 1 }
0x1663   : > { %v2456_v24 = vadd.f32 %v2455_v46, %v2454_v57 }
0x1665   : > { %5395 = vrcp.f32 %v2456_v24 }
0x166f   : > { %v5396_v54 = vpop.eup %5395 }
0x1670   : > { %v2459_v60 = vmul.f32 %v5396_v54, %v5394_v49  ;;  %v2458_v44 = vmul.f32 %v5396_v54, %v5392_v48  ;;  %v5106_v48 = vpack.c.bf16 %v2693_v45, %v2692_v41  ;;  %v2932_v45 = vld [vmem:[#allocation4 + $0x438] sm:$0xff] }
0x1672   : > { %2464 = vrot.lane.b32.xlu1 %v2459_v60, %s5572_s7  ;;  %2462 = vrot.lane.b32.xlu0 %v2458_v44, %s5572_s7 }
0x1691   : > { %2340 = vmax.xlane.f32.xlu0 %v2339_v61 }
0x1696   : > { %2337 = vmax.xlane.f32.xlu1 %v2336_v43 }
0x16a7   : > { %5318 = vrot.lane.b32.xlu0 %v5317_v29, %s5571_s6 }
0x16e4   : > { %v2463_v42 = vpop.permute.xlu0 %2462  ;;  %v2465_v62 = vpop.permute.xlu1 %2464 }
0x16e5   : > { %2468 = vxpose.xlu1.b32.start [1/2] (short) (narrow) %v2463_v42, 32 }
0x16e9   : > { %2469 = vxpose.xlu1.b32.end [2/2] (short) (narrow) %v2465_v62, 32 }
0x171e   : > { %v2341_v63 = vpop.xlane.xlu0 %2340 }
0x171f   : > { %v2343_v2 = vsub.f32 %v4687_v53, %v2341_v63 }
0x1721   : > { %v2346_v8 = vmul.f32 1.442695, %v2343_v2 }
0x1722   : > { %v5319_v3 = vpop.permute.xlu0 %5318 }
0x1723   : > { %v5321_v4 = vunpack.i.h.bf16 %v5319_v3  ;;  %v5320_v5 = vunpack.i.l.bf16 %v5319_v3  ;;  %v2338_v6 = vpop.xlane.xlu1 %2337  ;;  %v2824_v3 = vld [vmem:[#allocation4 + $0x3d0] sm:$0xff] }
0x1724   : > { %v2342_v7 = vsub.f32 %v2327_v27, %v2338_v6  ;;  %v2826_v6 = vld [vmem:[#allocation4 + $0x3e0] sm:$0xff] }
0x1725   : > { %v5090_v9 = vpack.c.bf16 %v5321_v4, %v5320_v5  ;;  %v2825_v4 = vld [vmem:[#allocation4 + $0x3d8] sm:$0xff] }
0x1726   : > { %v2344_v10 = vmul.f32 1.442695, %v2342_v7  ;;  %v5110_v5 = vpack.c.bf16 %v2825_v4, %v2824_v3  ;;  %v2827_v7 = vld [vmem:[#allocation4 + $0x3e8] sm:$0xff] }
0x1727   : > { %5091 = vmatprep.subr.bf16.mxu0 %v5090_v9 }
0x1728   : > { %5397 = vpow2.f32 %v2344_v10  ;;  %5111 = vmatprep.subr.bf16.mxu1 %v5110_v5  ;;  %v2925_v10 = vld [vmem:[#allocation4 + $0x400] sm:$0xff] }
0x1729   : > { %5399 = vpow2.f32 %v2346_v8  ;;  %5113 = vmatpush3.bf16.msra.mxu1 %v5110_v5  ;;  %v5114_v8 = vpack.c.bf16 %v2827_v7, %v2826_v6 }
0x172b   : > { %5115 = vmatprep.subr.bf16.mxu1 %v5114_v8 }
0x172d   : > { %5117 = vmatpush3.bf16.msra.mxu1 %v5114_v8 }
0x1732   : > { %v5398_v11 = vpop.eup %5397 }
0x1733   : > { %v5400_v12 = vpop.eup %5399  ;;  %4696 = vmatprep.mubr.msk.f32.mxu0 %vm285_vm14, %v5398_v11 }
0x1734   : > { %4697 = vmatmul.mubr.msk.f32.vlgmr.msra.gmra.mrb[32].mxu0 %vm285_vm14, %v5400_v12 }
0x1735   : > { %5093 = vmatpush3.bf16.msra.mxu0 %v5090_v9  ;;  %v2924_v9 = vld [vmem:[#allocation4 + $0x3f8] sm:$0xff] }
0x1765   : > { %v2484_v1 = vpop.trf.xlu1 }
0x1766   : > { %4703 = vmatprep.mubr.msk.f32.mxu0 %vm480_vm0, %v2484_v1  ;;  %v2927_v1 = vld [vmem:[#allocation4 + $0x410] sm:$0xff] }
0x1769   : > { %v2485_v13 = vpop.trf.xlu1 }
0x176a   : > { %4704 = vmatmul.mubr.msk.f32.vlgmr.msra.gmra.mrb[34].mxu0 %vm480_vm0, %v2485_v13 }
0x176d   : > { %v2486_v14 = vpop.trf.xlu1 }
0x176e   : > { %4706 = vmatprep.mubr.msk.f32.mxu0 %vm480_vm0, %v2486_v14  ;;  %v2928_v14 = vld [vmem:[#allocation4 + $0x418] sm:$0xff] }
0x1771   : > { %v2487_v16 = vpop.trf.xlu1 }
0x1772   : > { %4707 = vmatmul.mubr.msk.f32.gmra.mrb[36].mxu0 %vm480_vm0, %v2487_v16  ;;  %v2929_v16 = vld [vmem:[#allocation4 + $0x420] sm:$0xff] }
0x1807   : > { %v4698_v17 = vpop.f32.mrb[32].mxu0 }
0x1808   : > { %v2420_v31 = vpop.f32.mrb[33].mxu0 }
0x1809   : > { %5401 = vrcp.f32 %v2420_v31 }
0x180a   : > { %5403 = vrcp.f32 %v4698_v17 }
0x1813   : > { %v5402_v21 = vpop.eup %5401 }
0x1814   : > { %v2431_v0 = vmul.f32 %v5402_v21, %v5398_v11  ;;  %v5404_v40 = vpop.eup %5403  ;;  %v2926_v11 = vld [vmem:[#allocation4 + $0x408] sm:$0xff] }
0x1815   : > { %v2432_v47 = vmul.f32 %v5404_v40, %v5400_v12  ;;  %v5118_v12 = vpack.c.bf16 %v2925_v10, %v2924_v9  ;;  %v5122_v13 = vpack.c.bf16 %v2927_v1, %v2926_v11  ;;  %v2931_v40 = vld [vmem:[#allocation4 + $0x430] sm:$0xff]  ;;  %v4142_v9 = vld [vmem:[#allocation4 + $0x478] ss:$0 sm:$0xff] }
0x1816   : > { %4717 = vmatprep.mubr.msk.f32.mxu0 %vm285_vm14, %v2431_v0 }
0x183d   : > { %v4705_v22 = vpop.f32.mrb[34].mxu0 }
0x183e   : > { %v2606_v38 = vmul.f32 %v5927_v23, %v4705_v22  ;;  %v2586_v37 = vpop.f32.mrb[35].mxu0 }
0x183f   : > { %v2605_v53 = vmul.f32 %v5930_v25, %v2586_v37 }
0x1841   : > { %v5094_v26 = vpack.c.bf16 %v2606_v38, %v2605_v53  ;;  %v4137_v53 = vld [vmem:[#allocation4 + $0x3c0] ss:$0 sm:$0xff] }
0x1843   : > { %5095 = vmatprep.subr.bf16.mxu0 %v5094_v26 }
0x1844   : > { %5097 = vmatpush3.bf16.msra.mxu0 %v5094_v26 }
0x1845   : > { %v4708_v27 = vpop.f32.mrb[36].mxu0 }
0x1846   : > { %v2608_v29 = vmul.f32 %v5933_v28, %v4708_v27  ;;  %v2596_v19 = vpop.f32.mrb[37].mxu0  ;;  %v4138_v27 = vld [vmem:[#allocation4 + $0x3c8] ss:$0 sm:$0xff] }
0x1847   : > { %v2607_v33 = vmul.f32 %v5936_v32, %v2596_v19 }
0x1849   : > { %v5098_v35 = vpack.c.bf16 %v2608_v29, %v2607_v33 }
0x184b   : > { %5099 = vmatprep.subr.bf16.mxu0 %v5098_v35 }
0x184c   : > { %5101 = vmatpush3.bf16.msra.mxu0 %v5098_v35 }
0x184d   : > { %5103 = vmatprep.subr.bf16.mxu0 %v5102_v36 }
0x184f   : > { %4718 = vmatmul.mubr.msk.f32.vlgmr.msra.gmra.mrb[38].mxu0 %vm285_vm14, %v2432_v47  ;;  %v2933_v47 = vld [vmem:[#allocation4 + $0x440] sm:$0xff] }
0x1850   : > { %5105 = vmatpush3.bf16.msra.mxu0 %v5102_v36  ;;  %v2930_v36 = vld [vmem:[#allocation4 + $0x428] sm:$0xff] }
0x1851   : > { %5107 = vmatprep.subr.bf16.mxu0 %v5106_v48  ;;  %v5130_v41 = vpack.c.bf16 %v2931_v40, %v2930_v36 }
0x1854   : > { %5109 = vmatpush3.bf16.msra.mxu0 %v5106_v48  ;;  %v5134_v48 = vpack.c.bf16 %v2933_v47, %v2932_v45 }
0x1855   : > { %5119 = vmatprep.subr.bf16.mxu0 %v5118_v12 }
0x1922   : > { %v4719_v49 = vpop.f32.mrb[38].mxu0 }
0x1923   : > { %v2681_v50 = vpop.f32.mrb[39].mxu0 }
0x1924   : > { %4728 = vmatprep.mubr.msk.f32.mxu0 %vm285_vm14, %v2681_v50  ;;  %v2935_v50 = vld [vmem:[#allocation4 + $0x450] sm:$0xff] }
0x1925   : > { %4729 = vmatmul.mubr.msk.f32.vlgmr.msra.gmra.mrb[40].mxu0 %vm285_vm14, %v4719_v49  ;;  %v2934_v49 = vld [vmem:[#allocation4 + $0x448] sm:$0xff] }
0x1926   : > { %5121 = vmatpush3.bf16.msra.mxu0 %v5118_v12 }
0x1927   : > { %5123 = vmatprep.subr.bf16.mxu0 %v5122_v13 }
0x192a   : > { %5125 = vmatpush3.bf16.msra.mxu0 %v5122_v13 }
0x19f8   : > { %v4730_v51 = vpop.f32.mrb[40].mxu0 }
0x19f9   : > { %v2766_v15 = vpop.f32.mrb[41].mxu0  ;;  %v2776_v55 = vadd.f32 %v4730_v51, %v5893_v58  ;;  %v5138_v51 = vpack.c.bf16 %v2935_v50, %v2934_v49  ;;  %v4143_v50 = vld [vmem:[#allocation4 + $0x480] ss:$0 sm:$0xff] }
0x19fa   : > { %v2775_v56 = vadd.f32 %v2766_v15, %v5895_v59  ;;  %v2937_v15 = vld [vmem:[#allocation4 + $0x460] sm:$0xff] }
0x19fb   : > { %v5946_v46 = vadd.f32 %v4136_v52, %v2776_v55 }
0x19fc   : > { %v5944_v57 = vadd.f32 %v4136_v52, %v2775_v56  ;;  %v2936_v52 = vld [vmem:[#allocation4 + $0x458] sm:$0xff]  ;;  %v2938_v56 = vld [vmem:[#allocation4 + $0x468] sm:$0xff] }
0x19fd   : > { %v2789_v54 = vsel %vm285_vm14, %v5946_v46, 0.0  ;;  %v5142_v55 = vpack.c.bf16 %v2937_v15, %v2936_v52  ;;  %v4144_v52 = vld [vmem:[#allocation4 + $0x488] ss:$0 sm:$0xff] }
0x19fe   : > { %v2786_v24 = vsel %vm285_vm14, %v5944_v57, 0.0 }
0x19ff   : > { %2787 = vadd.xlane.f32.xlu0 %v2786_v24  ;;  %v2939_v24 = vld [vmem:[#allocation4 + $0x470] sm:$0xff] }
0x1a03   : > { %2790 = vadd.xlane.f32.xlu0 %v2789_v54  ;;  %v5146_v54 = vpack.c.bf16 %v2939_v24, %v2938_v56 }
0x1a8c   : > { %v2788_v60 = vpop.xlane.xlu0 %2787 }
0x1a8d   : > { %v2792_v44 = vmul.f32 0.03125, %v2788_v60  ;;  %v4139_v60 = vld [vmem:[#allocation4 + $0x3f0] ss:$0 sm:$0xff] }
0x1a8f   : > { %v2794_v61 = vsub.f32 %v5944_v57, %v2792_v44 }
0x1a90   : > { %v2791_v43 = vpop.xlane.xlu0 %2790 }
0x1a91   : > { %v2793_v58 = vmul.f32 0.03125, %v2791_v43  ;;  %v2796_v42 = vmul.f32 %v2794_v61, %v2794_v61 }
0x1a93   : > { %v2795_v59 = vsub.f32 %v5946_v46, %v2793_v58  ;;  %v2798_v62 = vsel %vm285_vm14, %v2796_v42, 0.0 }
0x1a94   : > { %2799 = vadd.xlane.f32.xlu0 %v2798_v62 }
0x1a95   : > { %v2797_v63 = vmul.f32 %v2795_v59, %v2795_v59 }
0x1a97   : > { %v2801_v2 = vsel %vm285_vm14, %v2797_v63, 0.0 }
0x1a98   : > { %2802 = vadd.xlane.f32.xlu1 %v2801_v2 }
0x1aaa   : > { %3024 = vrot.lane.b32.xlu0 %v5731_v18, %s5573_s8  ;;  %v5126_v18 = vpack.c.bf16 %v2929_v16, %v2928_v14 }
0x1aac   : > { %5127 = vmatprep.subr.bf16.mxu0 %v5126_v18 }
0x1aad   : > { %5129 = vmatpush3.bf16.msra.mxu0 %v5126_v18 }
0x1aae   : > { %5131 = vmatprep.subr.bf16.mxu0 %v5130_v41 }
0x1ab1   : > { %5133 = vmatpush3.bf16.msra.mxu0 %v5130_v41 }
0x1ab2   : > { %5135 = vmatprep.subr.bf16.mxu0 %v5134_v48 }
0x1ab5   : > { %5137 = vmatpush3.bf16.msra.mxu0 %v5134_v48 }
0x1ab6   : > { %5139 = vmatprep.subr.bf16.mxu0 %v5138_v51 }
0x1ab9   : > { %5141 = vmatpush3.bf16.msra.mxu0 %v5138_v51 }
0x1aba   : > { %5143 = vmatprep.subr.bf16.mxu0 %v5142_v55 }
0x1abd   : > { %5145 = vmatpush3.bf16.msra.mxu0 %v5142_v55 }
0x1abe   : > { %5147 = vmatprep.subr.bf16.mxu0 %v5146_v54 }
0x1ac1   : > { %5149 = vmatpush3.bf16.msra.mxu0 %v5146_v54 }
0x1b21   : > { %v2800_v17 = vpop.xlane.xlu0 %2799 }
0x1b22   : > { %v2804_v31 = vmul.f32 0.03125, %v2800_v17 }
0x1b24   : > { %v2806_v21 = vadd.f32 1e-05, %v2804_v31 }
0x1b25   : > { %v2803_v0 = vpop.xlane.xlu1 %2802  ;;  %v3025_v13 = vpop.permute.xlu0 %3024 }
0x1b26   : > { %5405 = vrsqrt.f32 %v2806_v21  ;;  %v2805_v22 = vmul.f32 0.03125, %v2803_v0 }
0x1b28   : > { %v2807_v38 = vadd.f32 1e-05, %v2805_v22 }
0x1b2a   : > { %5407 = vrsqrt.f32 %v2807_v38 }
0x1b30   : > { %v5406_v37 = vpop.eup %5405 }
0x1b31   : > { %v2810_v26 = vmul.f32 %v5406_v37, %v2794_v61 }
0x1b33   : > { %v2816_v29 = vmul.f32 %v4137_v53, %v2810_v26 }
0x1b34   : > { %v5408_v19 = vpop.eup %5407 }
0x1b35   : > { %v2811_v30 = vmul.f32 %v5408_v19, %v2795_v59  ;;  %v2822_v20 = vadd.f32 %v4138_v27, %v2816_v29  ;;  %v3069_v29 = vld [vmem:[#allocation4 + $0x490] sm:$0xff]  ;;  %v3070_v19 = vld [vmem:[#allocation4 + $0x498] sm:$0xff] }
0x1b37   : > { %v2817_v33 = vmul.f32 %v4137_v53, %v2811_v30  ;;  %4739 = vmatprep.mubr.msk.f32.mxu1 %vm285_vm14, %v2822_v20  ;;  %v5150_v30 = vpack.c.bf16 %v3070_v19, %v3069_v29  ;;  %v3071_v20 = vld [vmem:[#allocation4 + $0x4a0] sm:$0xff] }
0x1b39   : > { %v2823_v35 = vadd.f32 %v4138_v27, %v2817_v33  ;;  %5151 = vmatprep.subr.bf16.mxu1 %v5150_v30  ;;  %v3072_v33 = vld [vmem:[#allocation4 + $0x4a8] sm:$0xff] }
0x1b3b   : > { %4740 = vmatmul.mubr.msk.f32.vlgmr.msra.gmra.mrb[8].mxu1 %vm285_vm14, %v2823_v35  ;;  %v5154_v35 = vpack.c.bf16 %v3072_v33, %v3071_v20 }
0x1b3c   : > { %5153 = vmatpush3.bf16.msra.mxu1 %v5150_v30 }
0x1b3d   : > { %5155 = vmatprep.subr.bf16.mxu1 %v5154_v35 }
0x1b40   : > { %5157 = vmatpush3.bf16.msra.mxu1 %v5154_v35 }
0x1b41   : > { %5159 = vmatprep.subr.bf16.mxu1 %v5773_v34 }
0x1c0e   : > { %v4741_v44 = vpop.f32.mrb[8].mxu1 }
0x1c0f   : > { %v2911_v61 = vadd.f32 %v4741_v44, %v4139_v60  ;;  %v2905_v43 = vpop.f32.mrb[9].mxu1 }
0x1c10   : > { %v2906_v58 = vadd.f32 %v4139_v60, %v2905_v43 }
0x1c11   : > { %v2917_v42 = vmul.f32 0.70710677, %v2911_v61  ;;  %v2915_v5 = vmul.f32 0.5, %v2911_v61 }
0x1c12   : > { %v2916_v59 = vmul.f32 0.70710677, %v2906_v58  ;;  %v2914_v3 = vmul.f32 0.5, %v2906_v58 }
0x1c13   : > { %5409 = verf.f32 %v2917_v42 }
0x1c14   : > { %5411 = verf.f32 %v2916_v59 }
0x1c1d   : > { %v5410_v62 = vpop.eup %5409 }
0x1c1e   : > { %v5412_v63 = vpop.eup %5411  ;;  %v2921_v2 = vadd.f32 1.0, %v5410_v62 }
0x1c1f   : > { %v2920_v4 = vadd.f32 1.0, %v5412_v63 }
0x1c20   : > { %v2923_v7 = vmul.f32 %v2921_v2, %v2915_v5 }
0x1c21   : > { %v2922_v6 = vmul.f32 %v2920_v4, %v2914_v3 }
0x1c23   : > { %4774 = vmatprep.mubr.f32.mxu0 %v2922_v6 }
0x1c24   : > { %4775 = vmatmul.mubr.f32.vlgmr.msra.gmra.mrb[42].mxu0 %v2923_v7 }
0x1cf7   : > { %v4776_v8 = vpop.f32.mrb[42].mxu0 }
0x1cf8   : > { %v3016_v10 = vadd.f32 %v4776_v8, %v5946_v46  ;;  %v3006_v11 = vpop.f32.mrb[43].mxu0 }
0x1cf9   : > { %v3015_v12 = vadd.f32 %v3006_v11, %v5944_v57 }
0x1cfa   : > { %v3023_v1 = vadd.f32 %v4142_v9, %v3016_v10 }
0x1cfb   : > { %v3022_v14 = vadd.f32 %v4142_v9, %v3015_v12 }
0x1cfc   : > { %v5961_v16 = vadd.f32 %v3025_v13, %v3023_v1 }
0x1cfd   : > { %v5963_v18 = vadd.f32 %v3025_v13, %v3022_v14 }
0x1cfe   : > { %v3034_v17 = vsel %vm285_vm14, %v5961_v16, 0.0 }
0x1cff   : > { %3035 = vadd.xlane.f32.xlu1 %v3034_v17  ;;  %v3031_v31 = vsel %vm285_vm14, %v5963_v18, 0.0 }
0x1d00   : > { %3032 = vadd.xlane.f32.xlu0 %v3031_v31 }
0x1d8c   : > { %v3036_v21 = vpop.xlane.xlu1 %3035 }
0x1d8d   : > { %v3038_v46 = vmul.f32 0.03125, %v3036_v21  ;;  %v3033_v0 = vpop.xlane.xlu0 %3032 }
0x1d8e   : > { %v3037_v22 = vmul.f32 0.03125, %v3033_v0 }
0x1d8f   : > { %v3040_v57 = vsub.f32 %v5961_v16, %v3038_v46 }
0x1d90   : > { %v3039_v38 = vsub.f32 %v5963_v18, %v3037_v22 }
0x1d91   : > { %v3042_v26 = vmul.f32 %v3040_v57, %v3040_v57 }
0x1d92   : > { %v3041_v37 = vmul.f32 %v3039_v38, %v3039_v38 }
0x1d93   : > { %v3046_v27 = vsel %vm285_vm14, %v3042_v26, 0.0 }
0x1d94   : > { %v3043_v53 = vsel %vm285_vm14, %v3041_v37, 0.0 }
0x1d95   : > { %3044 = vadd.xlane.f32.xlu1 %v3043_v53 }
0x1d99   : > { %3047 = vadd.xlane.f32.xlu1 %v3046_v27 }
0x1e22   : > { %v3045_v36 = vpop.xlane.xlu1 %3044 }
0x1e23   : > { %v3049_v40 = vmul.f32 0.03125, %v3045_v36 }
0x1e25   : > { %v3051_v41 = vadd.f32 1e-05, %v3049_v40 }
0x1e26   : > { %v3048_v45 = vpop.xlane.xlu1 %3047 }
0x1e27   : > { %5413 = vrsqrt.f32 %v3051_v41  ;;  %v3050_v47 = vmul.f32 0.03125, %v3048_v45 }
0x1e29   : > { %v3052_v48 = vadd.f32 1e-05, %v3050_v47 }
0x1e2b   : > { %5415 = vrsqrt.f32 %v3052_v48 }
0x1e31   : > { %v5414_v49 = vpop.eup %5413 }
0x1e32   : > { %v3055_v51 = vmul.f32 %v5414_v49, %v3039_v38 }
0x1e34   : > { %v3061_v15 = vmul.f32 %v4143_v50, %v3055_v51 }
0x1e35   : > { %v5416_v55 = vpop.eup %5415 }
0x1e36   : > { %v3056_v56 = vmul.f32 %v5416_v55, %v3040_v57  ;;  %v3067_v24 = vadd.f32 %v4144_v52, %v3061_v15 }
0x1e38   : > { %v3062_v54 = vmul.f32 %v4143_v50, %v3056_v56  ;;  %4785 = vmatprep.mubr.msk.f32.mxu1 %vm285_vm14, %v3067_v24 }
0x1e3a   : > { %v3068_v60 = vadd.f32 %v4144_v52, %v3062_v54 }
0x1e3c   : > { %4786 = vmatmul.mubr.msk.f32.vlgmr.msra.gmra.mrb[10].mxu1 %vm285_vm14, %v3068_v60 }
0x1e3d   : > { %5161 = vmatpush3.bf16.msra.mxu1 %v5773_v34 }
0x1e3e   : > { %5163 = vmatprep.subr.bf16.mxu1 %v5783_v39 }
0x1e41   : > { %5165 = vmatpush3.bf16.msra.mxu1 %v5783_v39 }
0x1f0f   : > { %v4787_v44 = vpop.f32.mrb[10].mxu1 }
0x1f10   : > { %v3252_v61 = vsel %vm793_vm4, %v4787_v44, -inf  ;;  %v3145_v43 = vpop.f32.mrb[11].mxu1  ;;  %v3157_v57 = vsel %vm285_vm14, %v4787_v44, -inf }
0x1f11   : > { %v3251_v58 = vsel %vm793_vm4, %v3145_v43, -inf  ;;  %v5322_v42 = vpack.i.bf16 %v4787_v44, %v3145_v43  ;;  %v3154_v38 = vsel %vm285_vm14, %v3145_v43, -inf }
0x1f12   : > { %v3253_v59 = vmax.f32 %v3251_v58, %v3252_v61 }
0x1f14   : > { %v3254_v62 = vrot.slane %v3253_v59, 4 }
0x1f16   : > { %v3255_v63 = vmax.f32 %v3253_v59, %v3254_v62  ;;  %v3509_v59 = vld [vmem:[#allocation4 + $0x4b8] sm:$0xff] }
0x1f18   : > { %v3256_v2 = vrot.slane %v3255_v63, 2 }
0x1f1a   : > { %v3257_v3 = vmax.f32 %v3255_v63, %v3256_v2 }
0x1f1c   : > { %v3258_v4 = vrot.slane %v3257_v3, 1 }
0x1f1e   : > { %v3259_v5 = vmax.f32 %v3257_v3, %v3258_v4  ;;  %v3510_v4 = vld [vmem:[#allocation4 + $0x4c0] sm:$0xff] }
0x1f20   : > { %v3260_v6 = vsub.f32 %v3145_v43, %v3259_v5  ;;  %v3261_v34 = vsub.f32 %v4787_v44, %v3259_v5 }
0x1f22   : > { %v3262_v7 = vmul.f32 1.442695, %v3260_v6  ;;  %v3264_v8 = vmul.f32 1.442695, %v3261_v34  ;;  %v4157_v34 = vld [vmem:[#allocation4 + $0x4d0] ss:$0 sm:$0xff] }
0x1f24   : > { %5417 = vpow2.f32 %v3262_v7 }
0x1f25   : > { %5419 = vpow2.f32 %v3264_v8 }
0x1f2e   : > { %v5418_v39 = vpop.eup %5417 }
0x1f2f   : > { %v5420_v9 = vpop.eup %5419  ;;  %v3266_v10 = vsel %vm793_vm4, %v5418_v39, 0.0 }
0x1f30   : > { %v3267_v11 = vsel %vm793_vm4, %v5420_v9, 0.0 }
0x1f31   : > { %v3268_v12 = vadd.f32 %v3267_v11, %v3266_v10 }
0x1f33   : > { %v3269_v1 = vrot.slane %v3268_v12, 4 }
0x1f35   : > { %v3270_v13 = vadd.f32 %v3269_v1, %v3268_v12 }
0x1f37   : > { %v3271_v14 = vrot.slane %v3270_v13, 2 }
0x1f39   : > { %v3272_v17 = vadd.f32 %v3271_v14, %v3270_v13 }
0x1f3b   : > { %v3273_v31 = vrot.slane %v3272_v17, 1 }
0x1f3d   : > { %v3274_v21 = vadd.f32 %v3273_v31, %v3272_v17 }
0x1f3f   : > { %5421 = vrcp.f32 %v3274_v21 }
0x1f49   : > { %v5422_v46 = vpop.eup %5421 }
0x1f4a   : > { %v3277_v0 = vmul.f32 %v5422_v46, %v5420_v9  ;;  %v3276_v22 = vmul.f32 %v5422_v46, %v5418_v39 }
0x1f4c   : > { %3282 = vrot.lane.b32.xlu1 %v3277_v0, %s5572_s7  ;;  %3280 = vrot.lane.b32.xlu0 %v3276_v22, %s5572_s7  ;;  %v3642_v22 = vld [vmem:[#allocation4 + $0x4e8] sm:$0xff] }
0x1f6b   : > { %3158 = vmax.xlane.f32.xlu0 %v3157_v57  ;;  %v3643_v57 = vld [vmem:[#allocation4 + $0x4f0] sm:$0xff] }
0x1f70   : > { %3155 = vmax.xlane.f32.xlu1 %v3154_v38  ;;  %v5186_v38 = vpack.c.bf16 %v3643_v57, %v3642_v22  ;;  %v4163_v57 = vld [vmem:[#allocation4 + $0x590] ss:$0 sm:$0xff] }
0x1f72   : > { %5187 = vmatprep.subr.bf16.mxu0 %v5186_v38 }
0x1f73   : > { %5189 = vmatpush3.bf16.msra.mxu0 %v5186_v38 }
0x1f81   : > { %5323 = vrot.lane.b32.xlu0 %v5322_v42, %s5571_s6  ;;  %v3508_v42 = vld [vmem:[#allocation4 + $0x4b0] sm:$0xff] }
0x1f82   : > { %v5178_v2 = vpack.c.bf16 %v3509_v59, %v3508_v42  ;;  %v3750_v59 = vld [vmem:[#allocation4 + $0x550] sm:$0xff] }
0x1fbe   : > { %v3281_v37 = vpop.permute.xlu0 %3280  ;;  %v3283_v53 = vpop.permute.xlu1 %3282 }
0x1fbf   : > { %3286 = vxpose.xlu1.b32.start [1/2] (short) (narrow) %v3281_v37, 32  ;;  %v3644_v37 = vld [vmem:[#allocation4 + $0x4f8] sm:$0xff] }
0x1fc3   : > { %3287 = vxpose.xlu1.b32.end [2/2] (short) (narrow) %v3283_v53, 32  ;;  %v3645_v53 = vld [vmem:[#allocation4 + $0x500] sm:$0xff] }
0x1ff8   : > { %v3159_v26 = vpop.xlane.xlu0 %3158 }
0x1ff9   : > { %v3161_v27 = vsub.f32 %v4787_v44, %v3159_v26  ;;  %v5190_v26 = vpack.c.bf16 %v3645_v53, %v3644_v37 }
0x1ffb   : > { %v3164_v35 = vmul.f32 1.442695, %v3161_v27  ;;  %5191 = vmatprep.subr.bf16.mxu0 %v5190_v26  ;;  %v3742_v27 = vld [vmem:[#allocation4 + $0x510] sm:$0xff] }
0x1ffc   : > { %v5324_v29 = vpop.permute.xlu0 %5323  ;;  %5193 = vmatpush3.bf16.msra.mxu0 %v5190_v26 }
0x1ffd   : > { %v5326_v19 = vunpack.i.h.bf16 %v5324_v29  ;;  %v5325_v30 = vunpack.i.l.bf16 %v5324_v29  ;;  %v3156_v20 = vpop.xlane.xlu1 %3155  ;;  %v3743_v29 = vld [vmem:[#allocation4 + $0x518] sm:$0xff] }
0x1ffe   : > { %v3160_v33 = vsub.f32 %v3145_v43, %v3156_v20  ;;  %v3745_v20 = vld [vmem:[#allocation4 + $0x528] sm:$0xff] }
0x1fff   : > { %v5166_v36 = vpack.c.bf16 %v5326_v19, %v5325_v30  ;;  %v3744_v19 = vld [vmem:[#allocation4 + $0x520] sm:$0xff]  ;;  %v5194_v30 = vpack.c.bf16 %v3743_v29, %v3742_v27 }
0x2000   : > { %v3162_v40 = vmul.f32 1.442695, %v3160_v33  ;;  %v5198_v33 = vpack.c.bf16 %v3745_v20, %v3744_v19 }
0x2001   : > { %5167 = vmatprep.subr.bf16.mxu1 %v5166_v36 }
0x2002   : > { %5423 = vpow2.f32 %v3162_v40 }
0x2003   : > { %5425 = vpow2.f32 %v3164_v35  ;;  %v3746_v35 = vld [vmem:[#allocation4 + $0x530] sm:$0xff] }
0x200c   : > { %v5424_v41 = vpop.eup %5423 }
0x200d   : > { %v5426_v45 = vpop.eup %5425  ;;  %4796 = vmatprep.mubr.msk.f32.mxu1 %vm285_vm14, %v5424_v41 }
0x200e   : > { %4797 = vmatmul.mubr.msk.f32.vlgmr.msra.gmra.mrb[12].mxu1 %vm285_vm14, %v5426_v45 }
0x200f   : > { %5169 = vmatpush3.bf16.msra.mxu1 %v5166_v36  ;;  %v3747_v36 = vld [vmem:[#allocation4 + $0x538] sm:$0xff] }
0x2010   : > { %v5202_v40 = vpack.c.bf16 %v3747_v36, %v3746_v35 }
0x203f   : > { %v3302_v47 = vpop.trf.xlu1 }
0x2040   : > { %4803 = vmatprep.mubr.msk.f32.mxu1 %vm480_vm0, %v3302_v47 }
0x2043   : > { %v3303_v48 = vpop.trf.xlu1 }
0x2044   : > { %4804 = vmatmul.mubr.msk.f32.vlgmr.msra.gmra.mrb[14].mxu1 %vm480_vm0, %v3303_v48 }
0x2047   : > { %v3304_v49 = vpop.trf.xlu1 }
0x2048   : > { %4806 = vmatprep.mubr.msk.f32.mxu1 %vm480_vm0, %v3304_v49 }
0x204b   : > { %v3305_v50 = vpop.trf.xlu1 }
0x204c   : > { %4807 = vmatmul.mubr.msk.f32.gmra.mrb[16].mxu1 %vm480_vm0, %v3305_v50 }
0x20e1   : > { %v4798_v51 = vpop.f32.mrb[12].mxu1 }
0x20e2   : > { %v3238_v52 = vpop.f32.mrb[13].mxu1 }
0x20e3   : > { %5427 = vrcp.f32 %v3238_v52  ;;  %v4158_v52 = vld [vmem:[#allocation4 + $0x4d8] ss:$0 sm:$0xff] }
0x20e4   : > { %5429 = vrcp.f32 %v4798_v51 }
0x20ed   : > { %v5428_v15 = vpop.eup %5427 }
0x20ee   : > { %v3249_v55 = vmul.f32 %v5428_v15, %v5424_v41  ;;  %v5430_v3 = vpop.eup %5429 }
0x20f0   : > { %4817 = vmatprep.mubr.msk.f32.mxu1 %vm285_vm14, %v3249_v55  ;;  %v4159_v55 = vld [vmem:[#allocation4 + $0x4e0] ss:$0 sm:$0xff] }
0x2117   : > { %v4805_v56 = vpop.f32.mrb[14].mxu1 }
0x2118   : > { %v3424_v24 = vmul.f32 %v5927_v23, %v4805_v56  ;;  %v3404_v54 = vpop.f32.mrb[15].mxu1  ;;  %v3511_v23 = vld [vmem:[#allocation4 + $0x4c8] sm:$0xff] }
0x2119   : > { %v3423_v60 = vmul.f32 %v5930_v25, %v3404_v54  ;;  %v3250_v25 = vmul.f32 %v5430_v3, %v5426_v45  ;;  %v5182_v5 = vpack.c.bf16 %v3511_v23, %v3510_v4  ;;  %v3753_v3 = vld [vmem:[#allocation4 + $0x568] sm:$0xff]  ;;  %v3754_v23 = vld [vmem:[#allocation4 + $0x570] sm:$0xff] }
0x211b   : > { %v5170_v44 = vpack.c.bf16 %v3424_v24, %v3423_v60 }
0x211d   : > { %5171 = vmatprep.subr.bf16.mxu1 %v5170_v44 }
0x211e   : > { %5173 = vmatpush3.bf16.msra.mxu1 %v5170_v44 }
0x211f   : > { %v4808_v61 = vpop.f32.mrb[16].mxu1 }
0x2120   : > { %v3426_v43 = vmul.f32 %v5933_v28, %v4808_v61  ;;  %v3414_v58 = vpop.f32.mrb[17].mxu1 }
0x2121   : > { %v3425_v62 = vmul.f32 %v5936_v32, %v3414_v58  ;;  %v3749_v58 = vld [vmem:[#allocation4 + $0x548] sm:$0xff] }
0x2123   : > { %v5174_v63 = vpack.c.bf16 %v3426_v43, %v3425_v62  ;;  %v3748_v43 = vld [vmem:[#allocation4 + $0x540] sm:$0xff]  ;;  %v3751_v62 = vld [vmem:[#allocation4 + $0x558] sm:$0xff] }
0x2124   : > { %v5206_v42 = vpack.c.bf16 %v3749_v58, %v3748_v43  ;;  %v4165_v43 = vld [vmem:[#allocation4 + $0x108] ss:$0 sm:$0xff] }
0x2125   : > { %5175 = vmatprep.subr.bf16.mxu1 %v5174_v63 }
0x2126   : > { %5177 = vmatpush3.bf16.msra.mxu1 %v5174_v63  ;;  %v5210_v63 = vpack.c.bf16 %v3751_v62, %v3750_v59 }
0x2127   : > { %5179 = vmatprep.subr.bf16.mxu1 %v5178_v2 }
0x2129   : > { %4818 = vmatmul.mubr.msk.f32.vlgmr.msra.gmra.mrb[18].mxu1 %vm285_vm14, %v3250_v25  ;;  %v3755_v25 = vld [vmem:[#allocation4 + $0x578] sm:$0xff] }
0x212a   : > { %5181 = vmatpush3.bf16.msra.mxu1 %v5178_v2  ;;  %v3752_v2 = vld [vmem:[#allocation4 + $0x560] sm:$0xff] }
0x212b   : > { %5183 = vmatprep.subr.bf16.mxu1 %v5182_v5  ;;  %v5214_v4 = vpack.c.bf16 %v3753_v3, %v3752_v2  ;;  %v4166_v3 = vld [vmem:[#allocation4 + $0x130] ss:$0 sm:$0xff] }
0x212e   : > { %5185 = vmatpush3.bf16.msra.mxu1 %v5182_v5  ;;  %v5218_v5 = vpack.c.bf16 %v3755_v25, %v3754_v23 }
0x212f   : > { %5195 = vmatprep.subr.bf16.mxu1 %v5194_v30 }
0x21fc   : > { %v4819_v28 = vpop.f32.mrb[18].mxu1 }
0x21fd   : > { %v3499_v6 = vpop.f32.mrb[19].mxu1 }
0x21fe   : > { %4828 = vmatprep.mubr.msk.f32.mxu1 %vm285_vm14, %v3499_v6  ;;  %v3757_v6 = vld [vmem:[#allocation4 + $0x588] sm:$0xff] }
0x21ff   : > { %4829 = vmatmul.mubr.msk.f32.vlgmr.msra.gmra.mrb[20].mxu1 %vm285_vm14, %v4819_v28  ;;  %v3756_v28 = vld [vmem:[#allocation4 + $0x580] sm:$0xff] }
0x2200   : > { %5197 = vmatpush3.bf16.msra.mxu1 %v5194_v30 }
0x2201   : > { %5199 = vmatprep.subr.bf16.mxu1 %v5198_v33 }
0x2204   : > { %5201 = vmatpush3.bf16.msra.mxu1 %v5198_v33 }
0x2205   : > { %5203 = vmatprep.subr.bf16.mxu1 %v5202_v40 }
0x2208   : > { %5205 = vmatpush3.bf16.msra.mxu1 %v5202_v40 }
0x2209   : > { %5207 = vmatprep.subr.bf16.mxu1 %v5206_v42 }
0x220c   : > { %5209 = vmatpush3.bf16.msra.mxu1 %v5206_v42 }
0x220d   : > { %5211 = vmatprep.subr.bf16.mxu1 %v5210_v63 }
0x2210   : > { %5213 = vmatpush3.bf16.msra.mxu1 %v5210_v63 }
0x2211   : > { %5215 = vmatprep.subr.bf16.mxu1 %v5214_v4 }
0x2214   : > { %5217 = vmatpush3.bf16.msra.mxu1 %v5214_v4 }
0x2215   : > { %5219 = vmatprep.subr.bf16.mxu1 %v5218_v5 }
0x2218   : > { %5221 = vmatpush3.bf16.msra.mxu1 %v5218_v5 }
0x22d2   : > { %v4830_v32 = vpop.f32.mrb[20].mxu1 }
0x22d3   : > { %v3584_v7 = vpop.f32.mrb[21].mxu1  ;;  %v3594_v8 = vadd.f32 %v4830_v32, %v5961_v16  ;;  %v5222_v32 = vpack.c.bf16 %v3757_v6, %v3756_v28 }
0x22d4   : > { %v3593_v39 = vadd.f32 %v3584_v7, %v5963_v18 }
0x22d5   : > { %v6006_v10 = vadd.f32 %v4157_v34, %v3594_v8  ;;  %5223 = vmatprep.subr.bf16.mxu1 %v5222_v32 }
0x22d6   : > { %v6004_v9 = vadd.f32 %v4157_v34, %v3593_v39  ;;  %5225 = vmatpush3.bf16.msra.mxu1 %v5222_v32  ;;  %v4160_v34 = vld [vmem:[#allocation4 + $0x508] ss:$0 sm:$0xff] }
0x22d7   : > { %v3607_v12 = vsel %vm285_vm14, %v6006_v10, 0.0 }
0x22d8   : > { %v3604_v11 = vsel %vm285_vm14, %v6004_v9, 0.0 }
0x22d9   : > { %3605 = vadd.xlane.f32.xlu0 %v3604_v11 }
0x22dd   : > { %3608 = vadd.xlane.f32.xlu0 %v3607_v12 }
0x2366   : > { %v3606_v1 = vpop.xlane.xlu0 %3605 }
0x2367   : > { %v3610_v13 = vmul.f32 0.03125, %v3606_v1 }
0x2369   : > { %v3612_v14 = vsub.f32 %v6004_v9, %v3610_v13 }
0x236a   : > { %v3609_v17 = vpop.xlane.xlu0 %3608 }
0x236b   : > { %v3611_v16 = vmul.f32 0.03125, %v3609_v17  ;;  %v3614_v31 = vmul.f32 %v3612_v14, %v3612_v14 }
0x236d   : > { %v3613_v18 = vsub.f32 %v6006_v10, %v3611_v16  ;;  %v3616_v21 = vsel %vm285_vm14, %v3614_v31, 0.0 }
0x236e   : > { %3617 = vadd.xlane.f32.xlu0 %v3616_v21 }
0x236f   : > { %v3615_v46 = vmul.f32 %v3613_v18, %v3613_v18 }
0x2371   : > { %v3619_v0 = vsel %vm285_vm14, %v3615_v46, 0.0 }
0x2372   : > { %3620 = vadd.xlane.f32.xlu1 %v3619_v0 }
0x23fb   : > { %v3618_v41 = vpop.xlane.xlu0 %3617 }
0x23fc   : > { %v3622_v45 = vmul.f32 0.03125, %v3618_v41 }
0x23fe   : > { %v3624_v47 = vadd.f32 1e-05, %v3622_v45  ;;  %v3882_v45 = vld [vmem:[#allocation4 + $0x110] sm:$0xff] }
0x23ff   : > { %v3621_v48 = vpop.xlane.xlu1 %3620 }
0x2400   : > { %5431 = vrsqrt.f32 %v3624_v47  ;;  %v3623_v49 = vmul.f32 0.03125, %v3621_v48  ;;  %v3883_v47 = vld [vmem:[#allocation4 + $0x118] sm:$0xff] }
0x2401   : > { %v5226_v48 = vpack.c.bf16 %v3883_v47, %v3882_v45 }
0x2402   : > { %v3625_v50 = vadd.f32 1e-05, %v3623_v49  ;;  %v3884_v49 = vld [vmem:[#allocation4 + $0x120] sm:$0xff] }
0x2403   : > { %5227 = vmatprep.subr.bf16.mxu0 %v5226_v48 }
0x2404   : > { %5433 = vrsqrt.f32 %v3625_v50  ;;  %v3885_v50 = vld [vmem:[#allocation4 + $0x128] sm:$0xff] }
0x240a   : > { %v5432_v51 = vpop.eup %5431 }
0x240b   : > { %v3628_v15 = vmul.f32 %v5432_v51, %v3612_v14  ;;  %v5230_v51 = vpack.c.bf16 %v3885_v50, %v3884_v49 }
0x240d   : > { %v3634_v56 = vmul.f32 %v4158_v52, %v3628_v15 }
0x240e   : > { %v5434_v24 = vpop.eup %5433 }
0x240f   : > { %v3629_v54 = vmul.f32 %v5434_v24, %v3613_v18  ;;  %v3640_v60 = vadd.f32 %v4159_v55, %v3634_v56 }
0x2411   : > { %v3635_v44 = vmul.f32 %v4158_v52, %v3629_v54  ;;  %4839 = vmatprep.mubr.msk.f32.mxu0 %vm285_vm14, %v3640_v60 }
0x2413   : > { %v3641_v61 = vadd.f32 %v4159_v55, %v3635_v44  ;;  %v4164_v44 = vld [vmem:[#allocation4 + $0x100] ss:$0 sm:$0xff] }
0x2415   : > { %4840 = vmatmul.mubr.msk.f32.vlgmr.msra.gmra.mrb[44].mxu0 %vm285_vm14, %v3641_v61 }
0x2416   : > { %5229 = vmatpush3.bf16.msra.mxu0 %v5226_v48 }
0x2417   : > { %5231 = vmatprep.subr.bf16.mxu0 %v5230_v51 }
0x241a   : > { %5233 = vmatpush3.bf16.msra.mxu0 %v5230_v51 }
0x24e8   : > { %v4841_v7 = vpop.f32.mrb[44].mxu0 }
0x24e9   : > { %v3729_v8 = vadd.f32 %v4841_v7, %v4160_v34  ;;  %v3723_v39 = vpop.f32.mrb[45].mxu0 }
0x24ea   : > { %v3724_v11 = vadd.f32 %v4160_v34, %v3723_v39 }
0x24eb   : > { %v3735_v12 = vmul.f32 0.70710677, %v3729_v8  ;;  %v3733_v18 = vmul.f32 0.5, %v3729_v8 }
0x24ec   : > { %v3734_v1 = vmul.f32 0.70710677, %v3724_v11  ;;  %v3732_v16 = vmul.f32 0.5, %v3724_v11 }
0x24ed   : > { %5435 = verf.f32 %v3735_v12 }
0x24ee   : > { %5437 = verf.f32 %v3734_v1 }
0x24f7   : > { %v5436_v13 = vpop.eup %5435 }
0x24f8   : > { %v5438_v14 = vpop.eup %5437  ;;  %v3739_v17 = vadd.f32 1.0, %v5436_v13 }
0x24f9   : > { %v3738_v31 = vadd.f32 1.0, %v5438_v14 }
0x24fa   : > { %v3741_v46 = vmul.f32 %v3739_v17, %v3733_v18 }
0x24fb   : > { %v3740_v21 = vmul.f32 %v3738_v31, %v3732_v16 }
0x24fd   : > { %4874 = vmatprep.mubr.f32.mxu1 %v3740_v21 }
0x24fe   : > { %4875 = vmatmul.mubr.f32.vlgmr.msra.gmra.mrb[22].mxu1 %v3741_v46 }
0x25d1   : > { %v4876_v0 = vpop.f32.mrb[22].mxu1 }
0x25d2   : > { %v3824_v22 = vpop.f32.mrb[23].mxu1  ;;  %v3834_v38 = vadd.f32 %v4876_v0, %v6006_v10 }
0x25d3   : > { %v3833_v37 = vadd.f32 %v3824_v22, %v6004_v9 }
0x25d4   : > { %v3841_v27 = vadd.f32 %v4163_v57, %v3834_v38 }
0x25d5   : > { %v3840_v53 = vadd.f32 %v4163_v57, %v3833_v37 }
0x25d6   : > { %v3847_v29 = vsel %vm285_vm14, %v3841_v27, 0.0 }
0x25d7   : > { %v3844_v26 = vsel %vm285_vm14, %v3840_v53, 0.0 }
0x25d8   : > { %3845 = vadd.xlane.f32.xlu0 %v3844_v26 }
0x25dc   : > { %3848 = vadd.xlane.f32.xlu0 %v3847_v29 }
0x2665   : > { %v3846_v19 = vpop.xlane.xlu0 %3845 }
0x2666   : > { %v3850_v30 = vmul.f32 0.03125, %v3846_v19 }
0x2668   : > { %v3852_v20 = vsub.f32 %v3840_v53, %v3850_v30 }
0x2669   : > { %v3849_v33 = vpop.xlane.xlu0 %3848 }
0x266a   : > { %v3851_v35 = vmul.f32 0.03125, %v3849_v33  ;;  %v3854_v36 = vmul.f32 %v3852_v20, %v3852_v20 }
0x266c   : > { %v3853_v40 = vsub.f32 %v3841_v27, %v3851_v35  ;;  %v3856_v41 = vsel %vm285_vm14, %v3854_v36, 0.0 }
0x266d   : > { %3857 = vadd.xlane.f32.xlu0 %v3856_v41 }
0x266e   : > { %v3855_v10 = vmul.f32 %v3853_v40, %v3853_v40 }
0x2670   : > { %v3859_v9 = vsel %vm285_vm14, %v3855_v10, 0.0 }
0x2671   : > { %3860 = vadd.xlane.f32.xlu0 %v3859_v9 }
0x26fa   : > { %v3858_v52 = vpop.xlane.xlu0 %3857 }
0x26fb   : > { %v3862_v15 = vmul.f32 0.03125, %v3858_v52 }
0x26fd   : > { %v3864_v55 = vadd.f32 1e-05, %v3862_v15 }
0x26fe   : > { %v3861_v56 = vpop.xlane.xlu0 %3860 }
0x26ff   : > { %5439 = vrsqrt.f32 %v3864_v55  ;;  %v3863_v24 = vmul.f32 0.03125, %v3861_v56 }
0x2701   : > { %v3865_v54 = vadd.f32 1e-05, %v3863_v24 }
0x2703   : > { %5441 = vrsqrt.f32 %v3865_v54 }
0x2709   : > { %v5440_v60 = vpop.eup %5439 }
0x270a   : > { %v3868_v61 = vmul.f32 %v5440_v60, %v3852_v20 }
0x270c   : > { %v3874_v58 = vmul.f32 %v4164_v44, %v3868_v61 }
0x270d   : > { %v5442_v42 = vpop.eup %5441 }
0x270e   : > { %v3869_v59 = vmul.f32 %v5442_v42, %v3853_v40  ;;  %v3880_v62 = vadd.f32 %v4165_v43, %v3874_v58 }
0x2710   : > { %v3875_v63 = vmul.f32 %v4164_v44, %v3869_v59  ;;  %4885 = vmatprep.mubr.msk.f32.mxu0 %vm285_vm14, %v3880_v62 }
0x2712   : > { %v3881_v2 = vadd.f32 %v4165_v43, %v3875_v63 }
0x2714   : > { %4886 = vmatmul.mubr.msk.f32.vlgmr.msra.gmra.mrb[46].mxu0 %vm285_vm14, %v3881_v2 }
0x27e7   : > { %v4887_v4 = vpop.f32.mrb[46].mxu0 }
0x27e8   : > { %v3969_v23 = vadd.f32 %v4887_v4, %v4166_v3  ;;  %v3963_v25 = vpop.f32.mrb[47].mxu0 }
0x27e9   : > { %v3964_v5 = vadd.f32 %v4166_v3, %v3963_v25 }
0x27ea   : > { %3973 = vst [vmem:[%s158_s11 + $0x8] sm:$0xff] %v3969_v23 }
0x27eb   : > { %3972 = vst [vmem:[%s158_s11] sm:$0xff] %v3964_v5 }
0x27ec   : > { %5500 = shalt.err (!%p5497_p12)
}
0x27ed   : > { %s5501_s29 = scalar_lea.hbm %s6033_s16, 256  ;;  %s5505_s5 = scalar_lea.hbm %s6079_s3, 512 }
0x27ee   : > { %p5502_p13 = scmp.ne.s32.totalorder %s6033_s16, %s5501_s29  ;;  %p5506_p6 = scmp.lt.u32.totalorder %s6033_s16, %s6079_s3 }
0x27ef   : > { %p5507_p5 = scmp.lt.u32.totalorder %s5505_s5, %s5501_s29  ;;  %p5509_p11 = scmp.lt.u32.totalorder %s5501_s29, %s6033_s16 }
0x27f0   : > { %p5503_p2 = pnand %p5502_p13, %p6090_p0 }
0x27f1   : > { %p5508_p10 = por %p5507_p5, %p5506_p6 }
0x27f2   : > { %p5504_p4 = pneg %p5503_p2 }
0x27f3   : > { %p5510_p1 = por %p5509_p11, %p5508_p10 }
0x27f5   : > { %p5511_p3 = pnand %p5510_p1, %p5504_p4 }
0x27f7   : > { %5514 = shalt.err (!%p5511_p3)
}
0x27f8   : > { %s5575_s8 = smov 128   ;;  %s5576_s9 = smov 8  }
0x27f9   : > { %5242 = dma.vmem_to_hbm [thread:$0]  (%p6090_p0), %s6028_s12, 256, %s6033_s16, %s6035_s21, %s5575_s8, %s5575_s8, %s5576_s9  }
0x27fa PF: > { %p5254_p7 = scmp.ge.s32.totalorder %s5555_s19, 2  ;;  %s4003_s10 = sand.u32 1, %s5543_s17  }
0x27fb   : > { %p6091_p8 = scmp.ne.s32.totalorder %s6084_s27, 0  ;;  %s4004_s11 = scalar_lea.sflag [#allocation6], %s4003_s10 }
0x27fd   : > { %p5249_p9 = pnand %p5254_p7, %p6091_p8 }
0x27ff   : > { %5538 = dma.done.wait (!%p5249_p9), %s4004_s11, 256  }
0x2800   : > { %5540 = vsyncadd (!%p5249_p9), %s4004_s11, 4294967040  ;;  %p20_p12 = scmp.ge.s32.totalorder %s5625_s22, 4   ;;  %s6092_s17 = smov %s5547_s18 }
0x2801   : > { %s6093_s18 = smov %s5551_s0  ;;  %s6094_s0 = smov %s5636_s25 }
0x2802   : > { %s6095_s19 = smov %s5625_s22  ;;  %22 = sbr.rel (!%p20_p12) target bundleno = 19 (0x13), region = 68 }
0x2809   :  { %4009 = vsyncpa [#allocation5], 1 }
0x280a   :  { %4011 = vsyncpa [#allocation5 + $0x1], 1 }
0x280b   :  { %4012 = vsyncpa [#allocation6], 1 }
0x280c   :  { %4014 = vsyncpa [#allocation6 + $0x1], 1 }

</bundles_post_ra>
